<compile_context>
chip_gen: v7x
topology: tpu7x:2x2x1
jax: 0.10.0
libtpu: 0.0.40
codegen_flags: <defaults>
</compile_context>

<pallas_src>
import functools
import math

import numpy as np
import jax
import jax.numpy as jnp
from jax.experimental import pallas as pl
from jax.experimental.pallas import tpu as pltpu

EPS = 1e-5  # nn.LayerNorm default


# ----------------------------- in-kernel helpers -----------------------------

def _layer_norm(x, g, b):
    mu = jnp.mean(x, axis=-1, keepdims=True)
    var = jnp.mean((x - mu) ** 2, axis=-1, keepdims=True)
    return (x - mu) * jax.lax.rsqrt(var + EPS) * g + b


def _mha_heads(x_q, x_kv, mask_neg, wq, bq, wk, bk, wv, bv, wo, bo, scale):
    """nn.MultiheadAttention (batch_first, eval) for one batch row.

    Per-head weight layout (prepared outside the kernel):
      wq/wk/wv: (H, D, dh), bq/bk/bv: (H, 1, dh), wo: (H, dh, D), bo: (1, D)
    x_q: (Sq, D), x_kv: (Sk, D), mask_neg: (1, 1, Sk) additive key-padding mask.
    All heads are processed with single batched dot_generals (no per-head loop).
    """
    H = wq.shape[0]
    Sq, Dm = x_q.shape
    Sk = x_kv.shape[0]
    dn = (((2,), (1,)), ((0,), (0,)))      # batched matmul: (H,a,c)@(H,c,b)->(H,a,b)

    xq = jnp.broadcast_to(x_q[None], (H, Sq, Dm))
    xk = jnp.broadcast_to(x_kv[None], (H, Sk, Dm))
    q = jax.lax.dot_general(xq, wq, dn, preferred_element_type=jnp.float32) + bq
    k = jax.lax.dot_general(xk, wk, dn, preferred_element_type=jnp.float32) + bk
    v = jax.lax.dot_general(xk, wv, dn, preferred_element_type=jnp.float32) + bv

    # scores: (H, Sq, Sk)
    s = jax.lax.dot_general(q, k, (((2,), (2,)), ((0,), (0,))),
                            preferred_element_type=jnp.float32) * scale
    s = s + mask_neg
    s = s - jnp.max(s, axis=-1, keepdims=True)
    p = jnp.exp(s)
    p = p * pl.reciprocal(jnp.sum(p, axis=-1, keepdims=True), approx=True)

    # context: (H, Sq, dh) -> per-head output projection -> sum over heads
    o = jax.lax.dot_general(p, v, (((2,), (1,)), ((0,), (0,))),
                            preferred_element_type=jnp.float32)
    o = jax.lax.dot_general(o, wo, dn, preferred_element_type=jnp.float32)
    return jnp.sum(o, axis=0) + bo


# --------------------------------- fused kernel -------------------------------

def _fused_forward_kernel(*refs, L, H):
    (tcr_ref, epi_ref, tcr_pad_ref, epi_pad_ref, extras_ref,
     tcr_w, tcr_b, epi_w, epi_b, tcr_pos, epi_pos) = refs[:11]
    i = 11
    lyr = refs[i:i + 16]; i += 16
    t2e = refs[i:i + 10]; i += 10
    e2t = refs[i:i + 10]; i += 10
    (cw1, cb1, cg1, cbe1, rga, rba, rwa, rba2,
     rgb, rbb, rwb, rbb2, wout, bout) = refs[i:i + 14]; i += 14
    o_ref = refs[i]

    D = tcr_w.shape[1]
    dh = D // H
    scale = 1.0 / math.sqrt(dh)

    tcr_raw = tcr_ref[0]          # (S_t, 1024)
    epi_raw = epi_ref[0]          # (S_e, 1024)
    tcr_pad = tcr_pad_ref[0]      # (1, S_t)  1.0 at padded tokens
    epi_pad = epi_pad_ref[0]      # (1, S_e)

    # hoisted mask forms, reused across all layers / directions / pooling
    tcr_neg = (tcr_pad * (-1e9))[None]     # (1, 1, S_t) additive key mask
    epi_neg = (epi_pad * (-1e9))[None]     # (1, 1, S_e)
    tcr_keep = 1.0 - tcr_pad               # (1, S_t)
    epi_keep = 1.0 - epi_pad               # (1, S_e)

    # 1024 -> D projections + positional encodings (activations never leave VMEM)
    t = (jnp.dot(tcr_raw, tcr_w[...], preferred_element_type=jnp.float32)
         + tcr_b[...] + tcr_pos[0])
    e = (jnp.dot(epi_raw, epi_w[...], preferred_element_type=jnp.float32)
         + epi_b[...] + epi_pos[0])

    # self-attention stack over the TCR stream; weights stacked on a leading L axis
    (wq_s, bq_s, wk_s, bk_s, wv_s, bv_s, wo_s, bo_s,
     g1_s, be1_s, w1_s, b1_s, w2_s, b2_s, g2_s, be2_s) = lyr
    for l in range(L):
        attn = _mha_heads(t, t, tcr_neg, wq_s[l], bq_s[l], wk_s[l], bk_s[l],
                          wv_s[l], bv_s[l], wo_s[l], bo_s[l], scale)
        h1 = _layer_norm(t + attn, g1_s[l], be1_s[l])
        ff = jnp.maximum(
            jnp.dot(h1, w1_s[l], preferred_element_type=jnp.float32) + b1_s[l], 0.0)
        ff = jnp.dot(ff, w2_s[l], preferred_element_type=jnp.float32) + b2_s[l]
        t = _layer_norm(h1 + ff, g2_s[l], be2_s[l])

    # bidirectional cross attention (+ add & norm)
    (cwq, cbq, cwk, cbk, cwv, cbv, cwo, cbo, cg, cbe) = t2e
    attn_te = _mha_heads(t, e, epi_neg, cwq[...], cbq[...], cwk[...], cbk[...],
                         cwv[...], cbv[...], cwo[...], cbo[...], scale)
    t_upd = _layer_norm(t + attn_te, cg[...], cbe[...])

    (ewq, ebq, ewk, ebk, ewv, ebv, ewo, ebo, eg, ebe) = e2t
    attn_et = _mha_heads(e, t, tcr_neg, ewq[...], ebq[...], ewk[...], ebk[...],
                         ewv[...], ebv[...], ewo[...], ebo[...], scale)
    e_upd = _layer_norm(e + attn_et, eg[...], ebe[...])

    # masked mean pooling as a (1,S)@(S,D) matmul
    t_len = jnp.maximum(jnp.sum(tcr_keep, axis=1, keepdims=True), 1.0)   # (1, 1)
    e_len = jnp.maximum(jnp.sum(epi_keep, axis=1, keepdims=True), 1.0)
    t_pool = (jnp.dot(tcr_keep, t_upd, preferred_element_type=jnp.float32)
              * pl.reciprocal(t_len, approx=True))                        # (1, D)
    e_pool = (jnp.dot(epi_keep, e_upd, preferred_element_type=jnp.float32)
              * pl.reciprocal(e_len, approx=True))                        # (1, D)

    # classifier: first Linear split over the concatenated feature groups
    # (equivalent to concat([t_pool, e_pool, extras]) @ cw1, without an in-kernel
    #  lane-axis concat)
    extras = extras_ref[0]                                                # (1, E)
    h = (jnp.dot(t_pool, cw1[:D, :], preferred_element_type=jnp.float32)
         + jnp.dot(e_pool, cw1[D:2 * D, :], preferred_element_type=jnp.float32)
         + jnp.dot(extras, cw1[2 * D:, :], preferred_element_type=jnp.float32)
         + cb1[...])
    h = jnp.maximum(_layer_norm(h, cg1[...], cbe1[...]), 0.0)
    # ResidualBlock: LN -> ReLU -> Linear -> LN -> ReLU -> Linear, added to input
    r = jnp.maximum(_layer_norm(h, rga[...], rba[...]), 0.0)
    r = jnp.dot(r, rwa[...], preferred_element_type=jnp.float32) + rba2[...]
    r = jnp.maximum(_layer_norm(r, rgb[...], rbb[...]), 0.0)
    r = jnp.dot(r, rwb[...], preferred_element_type=jnp.float32) + rbb2[...]
    h = h + r
    logit = jnp.dot(h, wout[...], preferred_element_type=jnp.float32) + bout[...]
    # lane-dense (128-wide) output block; wrapper reads lane 0
    o_ref[0] = jnp.broadcast_to(logit, (1, o_ref.shape[2]))


# --------------------------- weight layout preparation -------------------------

_CLS_NAMES = ['w1', 'b1', 'g1', 'be1', 'rga', 'rba', 'rwa', 'rba2',
              'rgb', 'rbb', 'rwb', 'rbb2', 'wout', 'bout']


def _split_heads(ap, D, H):
    """(D, D) attention weights -> per-head layout (kernel never lane-slices)."""
    dh = D // H

    def col(w):    # q/k/v projection: (D, D) -> (H, D, dh)
        return jnp.transpose(w.reshape(D, H, dh), (1, 0, 2))

    def colb(b):   # bias: (1, D) -> (H, 1, dh)
        return jnp.transpose(b.reshape(1, H, dh), (1, 0, 2))

    return [col(ap['wq']), colb(ap['bq']), col(ap['wk']), colb(ap['bk']),
            col(ap['wv']), colb(ap['bv']), ap['wo'].reshape(H, dh, D), ap['bo']]


def _stack_layer_weights(layers, D, H):
    per_layer = []
    for lp in layers:
        per_layer.append(_split_heads(lp, D, H)
                         + [lp['g1'], lp['be1'], lp['w1'], lp['b1'],
                            lp['w2'], lp['b2'], lp['g2'], lp['be2']])
    return [jnp.stack(ws, axis=0) for ws in zip(*per_layer)]   # 16 stacked arrays


def _flatten_cross_weights(cp, D, H):
    return _split_heads(cp, D, H) + [cp['g'], cp['be']]


def periodic_embedding(x):
    d = x.shape[-1]
    div = jnp.exp(jnp.arange(d, dtype=x.dtype) * (-(np.log(10000.0) / d)))
    return jnp.concatenate([jnp.sin(x * div), jnp.cos(x * div)], axis=-1)


# ------------------------------ parameter init --------------------------------

def init_params(key, D, H, L, max_tcr, max_epi, physchem_dim,
                trbv_vocab, trbj_vocab, mhc_vocab, cls_hidden):
    keys = iter(jax.random.split(key, 256))

    def kaiming(shape, fan_in):
        return jax.random.normal(next(keys), shape, jnp.float32) * np.sqrt(2.0 / fan_in)

    def zeros(shape):
        return jnp.zeros(shape, jnp.float32)

    def ones(shape):
        return jnp.ones(shape, jnp.float32)

    def emb(vocab):
        return jax.random.normal(next(keys), (vocab, D), jnp.float32) * 0.02

    p = {}
    p['tcr_w'] = kaiming((1024, D), 1024); p['tcr_b'] = zeros((1, D))
    p['epi_w'] = kaiming((1024, D), 1024); p['epi_b'] = zeros((1, D))
    p['trbv'] = emb(trbv_vocab)
    p['trbj'] = emb(trbj_vocab)
    p['mhc'] = emb(mhc_vocab)
    p['tcr_pos'] = jax.random.normal(next(keys), (1, max_tcr, D), jnp.float32)
    p['epi_pos'] = jax.random.normal(next(keys), (1, max_epi, D), jnp.float32)

    def attn_params():
        return dict(
            wq=kaiming((D, D), D), bq=zeros((1, D)),
            wk=kaiming((D, D), D), bk=zeros((1, D)),
            wv=kaiming((D, D), D), bv=zeros((1, D)),
            wo=kaiming((D, D), D), bo=zeros((1, D)))

    layers = []
    for _ in range(L):
        lp = attn_params()
        lp.update(g1=ones((1, D)), be1=zeros((1, D)),
                  w1=kaiming((D, 4 * D), D), b1=zeros((1, 4 * D)),
                  w2=kaiming((4 * D, D), 4 * D), b2=zeros((1, D)),
                  g2=ones((1, D)), be2=zeros((1, D)))
        layers.append(lp)
    p['layers'] = layers

    for name in ('t2e', 'e2t'):
        cp = attn_params()
        cp.update(g=ones((1, D)), be=zeros((1, D)))
        p[name] = cp

    Din = D * 5 + physchem_dim * 4
    p['cls'] = dict(
        w1=kaiming((Din, cls_hidden), Din), b1=zeros((1, cls_hidden)),
        g1=ones((1, cls_hidden)), be1=zeros((1, cls_hidden)),
        rga=ones((1, cls_hidden)), rba=zeros((1, cls_hidden)),
        rwa=kaiming((cls_hidden, cls_hidden), cls_hidden), rba2=zeros((1, cls_hidden)),
        rgb=ones((1, cls_hidden)), rbb=zeros((1, cls_hidden)),
        rwb=kaiming((cls_hidden, cls_hidden), cls_hidden), rbb2=zeros((1, cls_hidden)),
        wout=kaiming((cls_hidden, 1), cls_hidden), bout=zeros((1, 1)))
    return p


# -------------------------------- forward pass ---------------------------------

@functools.partial(jax.jit, static_argnames=("H",))
def forward(params, tcr, epitope, tcr_physchem, epi_physchem, trbv, trbj, mhc, *, H):
    B, S_t, _ = tcr.shape
    S_e = epitope.shape[1]
    D = params['tcr_w'].shape[1]
    L = len(params['layers'])

    # tiny XLA-side prep (embedding gathers, sin/cos, pad masks, weight layout);
    # everything heavy is inside the single fused Pallas kernel below.
    tcr_pad = (jnp.sum(tcr, axis=-1) == 0).astype(jnp.float32).reshape(B, 1, S_t)
    epi_pad = (jnp.sum(epitope, axis=-1) == 0).astype(jnp.float32).reshape(B, 1, S_e)

    trbv_emb = params['trbv'][trbv[:, 0]]
    trbj_emb = params['trbj'][trbj[:, 0]]
    mhc_emb = params['mhc'][mhc[:, 0]]
    tcr_phys = periodic_embedding(tcr_physchem)
    epi_phys = periodic_embedding(epi_physchem)
    extras = jnp.concatenate([trbv_emb, trbj_emb, mhc_emb, tcr_phys, epi_phys],
                             axis=1).reshape(B, 1, -1)

    layer_stacked = _stack_layer_weights(params['layers'], D, H)
    t2e_flat = _flatten_cross_weights(params['t2e'], D, H)
    e2t_flat = _flatten_cross_weights(params['e2t'], D, H)
    cls_flat = [params['cls'][n] for n in _CLS_NAMES]

    weight_inputs = ([params['tcr_w'], params['tcr_b'],
                      params['epi_w'], params['epi_b'],
                      params['tcr_pos'][:, :S_t, :], params['epi_pos'][:, :S_e, :]]
                     + layer_stacked + t2e_flat + e2t_flat + cls_flat)
    batched_inputs = [tcr, epitope, tcr_pad, epi_pad, extras]

    batched_specs = [pl.BlockSpec((1,) + a.shape[1:], lambda b: (b, 0, 0))
                     for a in batched_inputs]
    weight_specs = [pl.BlockSpec(w.shape, lambda b, nd=w.ndim: (0,) * nd)
                    for w in weight_inputs]

    out = pl.pallas_call(
        functools.partial(_fused_forward_kernel, L=L, H=H),
        grid=(B,),
        in_specs=batched_specs + weight_specs,
        out_specs=pl.BlockSpec((1, 1, 128), lambda b: (b, 0, 0)),
        out_shape=jax.ShapeDtypeStruct((B, 1, 128), jnp.float32),
        compiler_params=pltpu.CompilerParams(
            dimension_semantics=("parallel",)),   # shard batch across TCs on v7x
    )(*batched_inputs, *weight_inputs)
    return out[:, 0, 0]


# ----------------------------------- main --------------------------------------

if __name__ == "__main__":
    D, H, L = 32, 4, 2           # embed_dim, num_heads, num_layers (small config)
    S_T = S_E = 8                # max_tcr_length / max_epitope_length
    B = 2
    PHYS = 10
    TRBV_V, TRBJ_V, MHC_V = 50, 20, 100
    CLS_HIDDEN = 64

    key = jax.random.PRNGKey(0)
    pkey, k1, k2, k3, k4, k5, k6, k7 = jax.random.split(key, 8)
    params = init_params(pkey, D, H, L, S_T, S_E, PHYS,
                         TRBV_V, TRBJ_V, MHC_V, CLS_HIDDEN)

    tcr = jax.random.normal(k1, (B, S_T, 1024), jnp.float32)
    epitope = jax.random.normal(k2, (B, S_E, 1024), jnp.float32)
    # zero-out some tokens so the key_padding_mask path is exercised
    tcr = tcr.at[0, -2:, :].set(0.0)
    epitope = epitope.at[1, -3:, :].set(0.0)

    tcr_physchem = jax.random.normal(k3, (B, PHYS), jnp.float32)
    epi_physchem = jax.random.normal(k4, (B, PHYS), jnp.float32)
    trbv = jax.random.randint(k5, (B, 1), 0, TRBV_V)
    trbj = jax.random.randint(k6, (B, 1), 0, TRBJ_V)
    mhc = jax.random.randint(k7, (B, 1), 0, MHC_V)

    out = forward(params, tcr, epitope, tcr_physchem, epi_physchem,
                  trbv, trbj, mhc, H=H)
    jax.block_until_ready(out)
    assert out.shape == (B,) and out.dtype == jnp.float32
    print("KERNEL_OK")
</pallas_src>

<mosaic_0001>
module attributes {stable_mosaic.version = 11 : i64} {
  func.func @_fused_forward_kernel(%arg0: i32, %arg1: memref<1x8x1024xf32, #tpu.memory_space<vmem>>, %arg2: memref<1x8x1024xf32, #tpu.memory_space<vmem>>, %arg3: memref<1x1x8xf32, #tpu.memory_space<vmem>>, %arg4: memref<1x1x8xf32, #tpu.memory_space<vmem>>, %arg5: memref<1x1x136xf32, #tpu.memory_space<vmem>>, %arg6: memref<1024x32xf32, #tpu.memory_space<vmem>>, %arg7: memref<1x32xf32, #tpu.memory_space<vmem>>, %arg8: memref<1024x32xf32, #tpu.memory_space<vmem>>, %arg9: memref<1x32xf32, #tpu.memory_space<vmem>>, %arg10: memref<1x8x32xf32, #tpu.memory_space<vmem>>, %arg11: memref<1x8x32xf32, #tpu.memory_space<vmem>>, %arg12: memref<2x4x32x8xf32, #tpu.memory_space<vmem>>, %arg13: memref<2x4x1x8xf32, #tpu.memory_space<vmem>>, %arg14: memref<2x4x32x8xf32, #tpu.memory_space<vmem>>, %arg15: memref<2x4x1x8xf32, #tpu.memory_space<vmem>>, %arg16: memref<2x4x32x8xf32, #tpu.memory_space<vmem>>, %arg17: memref<2x4x1x8xf32, #tpu.memory_space<vmem>>, %arg18: memref<2x4x8x32xf32, #tpu.memory_space<vmem>>, %arg19: memref<2x1x32xf32, #tpu.memory_space<vmem>>, %arg20: memref<2x1x32xf32, #tpu.memory_space<vmem>>, %arg21: memref<2x1x32xf32, #tpu.memory_space<vmem>>, %arg22: memref<2x32x128xf32, #tpu.memory_space<vmem>>, %arg23: memref<2x1x128xf32, #tpu.memory_space<vmem>>, %arg24: memref<2x128x32xf32, #tpu.memory_space<vmem>>, %arg25: memref<2x1x32xf32, #tpu.memory_space<vmem>>, %arg26: memref<2x1x32xf32, #tpu.memory_space<vmem>>, %arg27: memref<2x1x32xf32, #tpu.memory_space<vmem>>, %arg28: memref<4x32x8xf32, #tpu.memory_space<vmem>>, %arg29: memref<4x1x8xf32, #tpu.memory_space<vmem>>, %arg30: memref<4x32x8xf32, #tpu.memory_space<vmem>>, %arg31: memref<4x1x8xf32, #tpu.memory_space<vmem>>, %arg32: memref<4x32x8xf32, #tpu.memory_space<vmem>>, %arg33: memref<4x1x8xf32, #tpu.memory_space<vmem>>, %arg34: memref<4x8x32xf32, #tpu.memory_space<vmem>>, %arg35: memref<1x32xf32, #tpu.memory_space<vmem>>, %arg36: memref<1x32xf32, #tpu.memory_space<vmem>>, %arg37: memref<1x32xf32, #tpu.memory_space<vmem>>, %arg38: memref<4x32x8xf32, #tpu.memory_space<vmem>>, %arg39: memref<4x1x8xf32, #tpu.memory_space<vmem>>, %arg40: memref<4x32x8xf32, #tpu.memory_space<vmem>>, %arg41: memref<4x1x8xf32, #tpu.memory_space<vmem>>, %arg42: memref<4x32x8xf32, #tpu.memory_space<vmem>>, %arg43: memref<4x1x8xf32, #tpu.memory_space<vmem>>, %arg44: memref<4x8x32xf32, #tpu.memory_space<vmem>>, %arg45: memref<1x32xf32, #tpu.memory_space<vmem>>, %arg46: memref<1x32xf32, #tpu.memory_space<vmem>>, %arg47: memref<1x32xf32, #tpu.memory_space<vmem>>, %arg48: memref<200x64xf32, #tpu.memory_space<vmem>>, %arg49: memref<1x64xf32, #tpu.memory_space<vmem>>, %arg50: memref<1x64xf32, #tpu.memory_space<vmem>>, %arg51: memref<1x64xf32, #tpu.memory_space<vmem>>, %arg52: memref<1x64xf32, #tpu.memory_space<vmem>>, %arg53: memref<1x64xf32, #tpu.memory_space<vmem>>, %arg54: memref<64x64xf32, #tpu.memory_space<vmem>>, %arg55: memref<1x64xf32, #tpu.memory_space<vmem>>, %arg56: memref<1x64xf32, #tpu.memory_space<vmem>>, %arg57: memref<1x64xf32, #tpu.memory_space<vmem>>, %arg58: memref<64x64xf32, #tpu.memory_space<vmem>>, %arg59: memref<1x64xf32, #tpu.memory_space<vmem>>, %arg60: memref<64x1xf32, #tpu.memory_space<vmem>>, %arg61: memref<1x1xf32, #tpu.memory_space<vmem>>, %arg62: memref<1x1x128xf32, #tpu.memory_space<vmem>>) attributes {dimension_semantics = [#tpu.dimension_semantics<parallel>], iteration_bounds = array<i64: 2>, scalar_prefetch = 0 : i64, scratch_operands = 0 : i64, tpu.core_type = #tpu.core_type<tc>, window_params = [{transform_indices = @transform_0, window_bounds = array<i64: 1, 8, 1024>}, {transform_indices = @transform_1, window_bounds = array<i64: 1, 8, 1024>}, {transform_indices = @transform_2, window_bounds = array<i64: 1, 1, 8>}, {transform_indices = @transform_3, window_bounds = array<i64: 1, 1, 8>}, {transform_indices = @transform_4, window_bounds = array<i64: 1, 1, 136>}, {pipeline_mode = #tpu.pipeline_mode<synchronous>, transform_indices = @transform_5, window_bounds = array<i64: 1024, 32>}, {pipeline_mode = #tpu.pipeline_mode<synchronous>, transform_indices = @transform_6, window_bounds = array<i64: 1, 32>}, {pipeline_mode = #tpu.pipeline_mode<synchronous>, transform_indices = @transform_7, window_bounds = array<i64: 1024, 32>}, {pipeline_mode = #tpu.pipeline_mode<synchronous>, transform_indices = @transform_8, window_bounds = array<i64: 1, 32>}, {pipeline_mode = #tpu.pipeline_mode<synchronous>, transform_indices = @transform_9, window_bounds = array<i64: 1, 8, 32>}, {pipeline_mode = #tpu.pipeline_mode<synchronous>, transform_indices = @transform_10, window_bounds = array<i64: 1, 8, 32>}, {pipeline_mode = #tpu.pipeline_mode<synchronous>, transform_indices = @transform_11, window_bounds = array<i64: 2, 4, 32, 8>}, {pipeline_mode = #tpu.pipeline_mode<synchronous>, transform_indices = @transform_12, window_bounds = array<i64: 2, 4, 1, 8>}, {pipeline_mode = #tpu.pipeline_mode<synchronous>, transform_indices = @transform_13, window_bounds = array<i64: 2, 4, 32, 8>}, {pipeline_mode = #tpu.pipeline_mode<synchronous>, transform_indices = @transform_14, window_bounds = array<i64: 2, 4, 1, 8>}, {pipeline_mode = #tpu.pipeline_mode<synchronous>, transform_indices = @transform_15, window_bounds = array<i64: 2, 4, 32, 8>}, {pipeline_mode = #tpu.pipeline_mode<synchronous>, transform_indices = @transform_16, window_bounds = array<i64: 2, 4, 1, 8>}, {pipeline_mode = #tpu.pipeline_mode<synchronous>, transform_indices = @transform_17, window_bounds = array<i64: 2, 4, 8, 32>}, {pipeline_mode = #tpu.pipeline_mode<synchronous>, transform_indices = @transform_18, window_bounds = array<i64: 2, 1, 32>}, {pipeline_mode = #tpu.pipeline_mode<synchronous>, transform_indices = @transform_19, window_bounds = array<i64: 2, 1, 32>}, {pipeline_mode = #tpu.pipeline_mode<synchronous>, transform_indices = @transform_20, window_bounds = array<i64: 2, 1, 32>}, {pipeline_mode = #tpu.pipeline_mode<synchronous>, transform_indices = @transform_21, window_bounds = array<i64: 2, 32, 128>}, {pipeline_mode = #tpu.pipeline_mode<synchronous>, transform_indices = @transform_22, window_bounds = array<i64: 2, 1, 128>}, {pipeline_mode = #tpu.pipeline_mode<synchronous>, transform_indices = @transform_23, window_bounds = array<i64: 2, 128, 32>}, {pipeline_mode = #tpu.pipeline_mode<synchronous>, transform_indices = @transform_24, window_bounds = array<i64: 2, 1, 32>}, {pipeline_mode = #tpu.pipeline_mode<synchronous>, transform_indices = @transform_25, window_bounds = array<i64: 2, 1, 32>}, {pipeline_mode = #tpu.pipeline_mode<synchronous>, transform_indices = @transform_26, window_bounds = array<i64: 2, 1, 32>}, {pipeline_mode = #tpu.pipeline_mode<synchronous>, transform_indices = @transform_27, window_bounds = array<i64: 4, 32, 8>}, {pipeline_mode = #tpu.pipeline_mode<synchronous>, transform_indices = @transform_28, window_bounds = array<i64: 4, 1, 8>}, {pipeline_mode = #tpu.pipeline_mode<synchronous>, transform_indices = @transform_29, window_bounds = array<i64: 4, 32, 8>}, {pipeline_mode = #tpu.pipeline_mode<synchronous>, transform_indices = @transform_30, window_bounds = array<i64: 4, 1, 8>}, {pipeline_mode = #tpu.pipeline_mode<synchronous>, transform_indices = @transform_31, window_bounds = array<i64: 4, 32, 8>}, {pipeline_mode = #tpu.pipeline_mode<synchronous>, transform_indices = @transform_32, window_bounds = array<i64: 4, 1, 8>}, {pipeline_mode = #tpu.pipeline_mode<synchronous>, transform_indices = @transform_33, window_bounds = array<i64: 4, 8, 32>}, {pipeline_mode = #tpu.pipeline_mode<synchronous>, transform_indices = @transform_34, window_bounds = array<i64: 1, 32>}, {pipeline_mode = #tpu.pipeline_mode<synchronous>, transform_indices = @transform_35, window_bounds = array<i64: 1, 32>}, {pipeline_mode = #tpu.pipeline_mode<synchronous>, transform_indices = @transform_36, window_bounds = array<i64: 1, 32>}, {pipeline_mode = #tpu.pipeline_mode<synchronous>, transform_indices = @transform_37, window_bounds = array<i64: 4, 32, 8>}, {pipeline_mode = #tpu.pipeline_mode<synchronous>, transform_indices = @transform_38, window_bounds = array<i64: 4, 1, 8>}, {pipeline_mode = #tpu.pipeline_mode<synchronous>, transform_indices = @transform_39, window_bounds = array<i64: 4, 32, 8>}, {pipeline_mode = #tpu.pipeline_mode<synchronous>, transform_indices = @transform_40, window_bounds = array<i64: 4, 1, 8>}, {pipeline_mode = #tpu.pipeline_mode<synchronous>, transform_indices = @transform_41, window_bounds = array<i64: 4, 32, 8>}, {pipeline_mode = #tpu.pipeline_mode<synchronous>, transform_indices = @transform_42, window_bounds = array<i64: 4, 1, 8>}, {pipeline_mode = #tpu.pipeline_mode<synchronous>, transform_indices = @transform_43, window_bounds = array<i64: 4, 8, 32>}, {pipeline_mode = #tpu.pipeline_mode<synchronous>, transform_indices = @transform_44, window_bounds = array<i64: 1, 32>}, {pipeline_mode = #tpu.pipeline_mode<synchronous>, transform_indices = @transform_45, window_bounds = array<i64: 1, 32>}, {pipeline_mode = #tpu.pipeline_mode<synchronous>, transform_indices = @transform_46, window_bounds = array<i64: 1, 32>}, {pipeline_mode = #tpu.pipeline_mode<synchronous>, transform_indices = @transform_47, window_bounds = array<i64: 200, 64>}, {pipeline_mode = #tpu.pipeline_mode<synchronous>, transform_indices = @transform_48, window_bounds = array<i64: 1, 64>}, {pipeline_mode = #tpu.pipeline_mode<synchronous>, transform_indices = @transform_49, window_bounds = array<i64: 1, 64>}, {pipeline_mode = #tpu.pipeline_mode<synchronous>, transform_indices = @transform_50, window_bounds = array<i64: 1, 64>}, {pipeline_mode = #tpu.pipeline_mode<synchronous>, transform_indices = @transform_51, window_bounds = array<i64: 1, 64>}, {pipeline_mode = #tpu.pipeline_mode<synchronous>, transform_indices = @transform_52, window_bounds = array<i64: 1, 64>}, {pipeline_mode = #tpu.pipeline_mode<synchronous>, transform_indices = @transform_53, window_bounds = array<i64: 64, 64>}, {pipeline_mode = #tpu.pipeline_mode<synchronous>, transform_indices = @transform_54, window_bounds = array<i64: 1, 64>}, {pipeline_mode = #tpu.pipeline_mode<synchronous>, transform_indices = @transform_55, window_bounds = array<i64: 1, 64>}, {pipeline_mode = #tpu.pipeline_mode<synchronous>, transform_indices = @transform_56, window_bounds = array<i64: 1, 64>}, {pipeline_mode = #tpu.pipeline_mode<synchronous>, transform_indices = @transform_57, window_bounds = array<i64: 64, 64>}, {pipeline_mode = #tpu.pipeline_mode<synchronous>, transform_indices = @transform_58, window_bounds = array<i64: 1, 64>}, {pipeline_mode = #tpu.pipeline_mode<synchronous>, transform_indices = @transform_59, window_bounds = array<i64: 64, 1>}, {pipeline_mode = #tpu.pipeline_mode<synchronous>, transform_indices = @transform_60, window_bounds = array<i64: 1, 1>}, {transform_indices = @transform_61, window_bounds = array<i64: 1, 1, 128>}]} {
    %c0 = arith.constant 0 : index
    %c0_0 = arith.constant 0 : index
    %c0_1 = arith.constant 0 : index
    %0 = vector.load %arg1[%c0, %c0_0, %c0_1] : memref<1x8x1024xf32, #tpu.memory_space<vmem>>, vector<1x8x1024xf32>
    %1 = vector.shape_cast %0 : vector<1x8x1024xf32> to vector<8x1024xf32>
    %c0_2 = arith.constant 0 : index
    %c0_3 = arith.constant 0 : index
    %c0_4 = arith.constant 0 : index
    %2 = vector.load %arg2[%c0_2, %c0_3, %c0_4] : memref<1x8x1024xf32, #tpu.memory_space<vmem>>, vector<1x8x1024xf32>
    %3 = vector.shape_cast %2 : vector<1x8x1024xf32> to vector<8x1024xf32>
    %c0_5 = arith.constant 0 : index
    %c0_6 = arith.constant 0 : index
    %c0_7 = arith.constant 0 : index
    %4 = vector.load %arg3[%c0_5, %c0_6, %c0_7] : memref<1x1x8xf32, #tpu.memory_space<vmem>>, vector<1x1x8xf32>
    %5 = vector.shape_cast %4 : vector<1x1x8xf32> to vector<1x8xf32>
    %c0_8 = arith.constant 0 : index
    %c0_9 = arith.constant 0 : index
    %c0_10 = arith.constant 0 : index
    %6 = vector.load %arg4[%c0_8, %c0_9, %c0_10] : memref<1x1x8xf32, #tpu.memory_space<vmem>>, vector<1x1x8xf32>
    %7 = vector.shape_cast %6 : vector<1x1x8xf32> to vector<1x8xf32>
    %cst = arith.constant -1.000000e+09 : f32
    %8 = vector.broadcast %cst : f32 to vector<1x8xf32>
    %9 = arith.mulf %5, %8 : vector<1x8xf32>
    %10 = vector.shape_cast %9 : vector<1x8xf32> to vector<1x1x8xf32>
    %cst_11 = arith.constant -1.000000e+09 : f32
    %11 = vector.broadcast %cst_11 : f32 to vector<1x8xf32>
    %12 = arith.mulf %7, %11 : vector<1x8xf32>
    %13 = vector.shape_cast %12 : vector<1x8xf32> to vector<1x1x8xf32>
    %cst_12 = arith.constant 1.000000e+00 : f32
    %14 = vector.broadcast %cst_12 : f32 to vector<1x8xf32>
    %15 = arith.subf %14, %5 : vector<1x8xf32>
    %cst_13 = arith.constant 1.000000e+00 : f32
    %16 = vector.broadcast %cst_13 : f32 to vector<1x8xf32>
    %17 = arith.subf %16, %7 : vector<1x8xf32>
    %c0_14 = arith.constant 0 : index
    %c0_15 = arith.constant 0 : index
    %18 = vector.load %arg6[%c0_14, %c0_15] : memref<1024x32xf32, #tpu.memory_space<vmem>>, vector<1024x32xf32>
    %cst_16 = arith.constant dense<0.000000e+00> : vector<8x32xf32>
    %19 = tpu.matmul %1, %18, %cst_16 {dimension_numbers = #tpu.dot_dimension_numbers<[1], [0], [0], [1], [0, 0, 1, 1], [], []>} : vector<8x1024xf32>, vector<1024x32xf32>, vector<8x32xf32> -> vector<8x32xf32>
    %c0_17 = arith.constant 0 : index
    %c0_18 = arith.constant 0 : index
    %20 = vector.load %arg7[%c0_17, %c0_18] : memref<1x32xf32, #tpu.memory_space<vmem>>, vector<1x32xf32>
    %21 = vector.broadcast %20 : vector<1x32xf32> to vector<8x32xf32>
    %22 = arith.addf %19, %21 : vector<8x32xf32>
    %c0_19 = arith.constant 0 : index
    %c0_20 = arith.constant 0 : index
    %c0_21 = arith.constant 0 : index
    %23 = vector.load %arg10[%c0_19, %c0_20, %c0_21] : memref<1x8x32xf32, #tpu.memory_space<vmem>>, vector<1x8x32xf32>
    %24 = vector.shape_cast %23 : vector<1x8x32xf32> to vector<8x32xf32>
    %25 = arith.addf %22, %24 : vector<8x32xf32>
    %c0_22 = arith.constant 0 : index
    %c0_23 = arith.constant 0 : index
    %26 = vector.load %arg8[%c0_22, %c0_23] : memref<1024x32xf32, #tpu.memory_space<vmem>>, vector<1024x32xf32>
    %cst_24 = arith.constant dense<0.000000e+00> : vector<8x32xf32>
    %27 = tpu.matmul %3, %26, %cst_24 {dimension_numbers = #tpu.dot_dimension_numbers<[1], [0], [0], [1], [0, 0, 1, 1], [], []>} : vector<8x1024xf32>, vector<1024x32xf32>, vector<8x32xf32> -> vector<8x32xf32>
    %c0_25 = arith.constant 0 : index
    %c0_26 = arith.constant 0 : index
    %28 = vector.load %arg9[%c0_25, %c0_26] : memref<1x32xf32, #tpu.memory_space<vmem>>, vector<1x32xf32>
    %29 = vector.broadcast %28 : vector<1x32xf32> to vector<8x32xf32>
    %30 = arith.addf %27, %29 : vector<8x32xf32>
    %c0_27 = arith.constant 0 : index
    %c0_28 = arith.constant 0 : index
    %c0_29 = arith.constant 0 : index
    %31 = vector.load %arg11[%c0_27, %c0_28, %c0_29] : memref<1x8x32xf32, #tpu.memory_space<vmem>>, vector<1x8x32xf32>
    %32 = vector.shape_cast %31 : vector<1x8x32xf32> to vector<8x32xf32>
    %33 = arith.addf %30, %32 : vector<8x32xf32>
    %c0_30 = arith.constant 0 : index
    %c0_31 = arith.constant 0 : index
    %c0_32 = arith.constant 0 : index
    %c0_33 = arith.constant 0 : index
    %34 = vector.load %arg12[%c0_30, %c0_31, %c0_32, %c0_33] : memref<2x4x32x8xf32, #tpu.memory_space<vmem>>, vector<1x4x32x8xf32>
    %35 = vector.shape_cast %34 : vector<1x4x32x8xf32> to vector<4x32x8xf32>
    %c0_34 = arith.constant 0 : index
    %c0_35 = arith.constant 0 : index
    %c0_36 = arith.constant 0 : index
    %c0_37 = arith.constant 0 : index
    %36 = vector.load %arg13[%c0_34, %c0_35, %c0_36, %c0_37] : memref<2x4x1x8xf32, #tpu.memory_space<vmem>>, vector<1x4x1x8xf32>
    %37 = vector.shape_cast %36 : vector<1x4x1x8xf32> to vector<4x1x8xf32>
    %c0_38 = arith.constant 0 : index
    %c0_39 = arith.constant 0 : index
    %c0_40 = arith.constant 0 : index
    %c0_41 = arith.constant 0 : index
    %38 = vector.load %arg14[%c0_38, %c0_39, %c0_40, %c0_41] : memref<2x4x32x8xf32, #tpu.memory_space<vmem>>, vector<1x4x32x8xf32>
    %39 = vector.shape_cast %38 : vector<1x4x32x8xf32> to vector<4x32x8xf32>
    %c0_42 = arith.constant 0 : index
    %c0_43 = arith.constant 0 : index
    %c0_44 = arith.constant 0 : index
    %c0_45 = arith.constant 0 : index
    %40 = vector.load %arg15[%c0_42, %c0_43, %c0_44, %c0_45] : memref<2x4x1x8xf32, #tpu.memory_space<vmem>>, vector<1x4x1x8xf32>
    %41 = vector.shape_cast %40 : vector<1x4x1x8xf32> to vector<4x1x8xf32>
    %c0_46 = arith.constant 0 : index
    %c0_47 = arith.constant 0 : index
    %c0_48 = arith.constant 0 : index
    %c0_49 = arith.constant 0 : index
    %42 = vector.load %arg16[%c0_46, %c0_47, %c0_48, %c0_49] : memref<2x4x32x8xf32, #tpu.memory_space<vmem>>, vector<1x4x32x8xf32>
    %43 = vector.shape_cast %42 : vector<1x4x32x8xf32> to vector<4x32x8xf32>
    %c0_50 = arith.constant 0 : index
    %c0_51 = arith.constant 0 : index
    %c0_52 = arith.constant 0 : index
    %c0_53 = arith.constant 0 : index
    %44 = vector.load %arg17[%c0_50, %c0_51, %c0_52, %c0_53] : memref<2x4x1x8xf32, #tpu.memory_space<vmem>>, vector<1x4x1x8xf32>
    %45 = vector.shape_cast %44 : vector<1x4x1x8xf32> to vector<4x1x8xf32>
    %c0_54 = arith.constant 0 : index
    %c0_55 = arith.constant 0 : index
    %c0_56 = arith.constant 0 : index
    %c0_57 = arith.constant 0 : index
    %46 = vector.load %arg18[%c0_54, %c0_55, %c0_56, %c0_57] : memref<2x4x8x32xf32, #tpu.memory_space<vmem>>, vector<1x4x8x32xf32>
    %47 = vector.shape_cast %46 : vector<1x4x8x32xf32> to vector<4x8x32xf32>
    %c0_58 = arith.constant 0 : index
    %c0_59 = arith.constant 0 : index
    %c0_60 = arith.constant 0 : index
    %48 = vector.load %arg19[%c0_58, %c0_59, %c0_60] : memref<2x1x32xf32, #tpu.memory_space<vmem>>, vector<1x1x32xf32>
    %49 = vector.shape_cast %48 : vector<1x1x32xf32> to vector<1x32xf32>
    %50 = vector.shape_cast %25 : vector<8x32xf32> to vector<1x8x32xf32>
    %51 = vector.shape_cast %50 : vector<1x8x32xf32> to vector<1x8x32xf32>
    %52 = vector.broadcast %51 : vector<1x8x32xf32> to vector<4x8x32xf32>
    %53 = vector.shape_cast %25 : vector<8x32xf32> to vector<1x8x32xf32>
    %54 = vector.shape_cast %53 : vector<1x8x32xf32> to vector<1x8x32xf32>
    %55 = vector.broadcast %54 : vector<1x8x32xf32> to vector<4x8x32xf32>
    %cst_61 = arith.constant dense<0.000000e+00> : vector<4x8x8xf32>
    %56 = tpu.matmul %52, %35, %cst_61 {dimension_numbers = #tpu.dot_dimension_numbers<[2], [1], [1], [2], [0, 0, 0, 1, 1, 2], [0], [0]>} : vector<4x8x32xf32>, vector<4x32x8xf32>, vector<4x8x8xf32> -> vector<4x8x8xf32>
    %57 = vector.broadcast %37 : vector<4x1x8xf32> to vector<4x8x8xf32>
    %58 = arith.addf %56, %57 : vector<4x8x8xf32>
    %cst_62 = arith.constant dense<0.000000e+00> : vector<4x8x8xf32>
    %59 = tpu.matmul %55, %39, %cst_62 {dimension_numbers = #tpu.dot_dimension_numbers<[2], [1], [1], [2], [0, 0, 0, 1, 1, 2], [0], [0]>} : vector<4x8x32xf32>, vector<4x32x8xf32>, vector<4x8x8xf32> -> vector<4x8x8xf32>
    %60 = vector.broadcast %41 : vector<4x1x8xf32> to vector<4x8x8xf32>
    %61 = arith.addf %59, %60 : vector<4x8x8xf32>
    %cst_63 = arith.constant dense<0.000000e+00> : vector<4x8x8xf32>
    %62 = tpu.matmul %55, %43, %cst_63 {dimension_numbers = #tpu.dot_dimension_numbers<[2], [1], [1], [2], [0, 0, 0, 1, 1, 2], [0], [0]>} : vector<4x8x32xf32>, vector<4x32x8xf32>, vector<4x8x8xf32> -> vector<4x8x8xf32>
    %63 = vector.broadcast %45 : vector<4x1x8xf32> to vector<4x8x8xf32>
    %64 = arith.addf %62, %63 : vector<4x8x8xf32>
    %cst_64 = arith.constant dense<0.000000e+00> : vector<4x8x8xf32>
    %65 = tpu.matmul %58, %61, %cst_64 {dimension_numbers = #tpu.dot_dimension_numbers<[2], [2], [1], [1], [0, 0, 0, 1, 1, 1], [0], [0]>} : vector<4x8x8xf32>, vector<4x8x8xf32>, vector<4x8x8xf32> -> vector<4x8x8xf32>
    %cst_65 = arith.constant 0.353553385 : f32
    %66 = vector.broadcast %cst_65 : f32 to vector<4x8x8xf32>
    %67 = arith.mulf %65, %66 : vector<4x8x8xf32>
    %68 = vector.broadcast %10 : vector<1x1x8xf32> to vector<4x8x8xf32>
    %69 = arith.addf %67, %68 : vector<4x8x8xf32>
    %cst_66 = arith.constant dense<0xFF800000> : vector<4x8xf32>
    %70 = vector.multi_reduction <maximumf>, %69, %cst_66 [2] : vector<4x8x8xf32> to vector<4x8xf32>
    %71 = vector.shape_cast %70 : vector<4x8xf32> to vector<4x8x1xf32>
    %72 = vector.broadcast %71 : vector<4x8x1xf32> to vector<4x8x8xf32>
    %73 = arith.subf %69, %72 : vector<4x8x8xf32>
    %74 = math.exp %73 : vector<4x8x8xf32>
    %cst_67 = arith.constant dense<0.000000e+00> : vector<4x8xf32>
    %75 = vector.multi_reduction <add>, %74, %cst_67 [2] : vector<4x8x8xf32> to vector<4x8xf32>
    %76 = vector.shape_cast %75 : vector<4x8xf32> to vector<4x8x1xf32>
    %77 = tpu.reciprocal %76 {approx = true} : vector<4x8x1xf32> -> vector<4x8x1xf32>
    %78 = vector.broadcast %77 : vector<4x8x1xf32> to vector<4x8x8xf32>
    %79 = arith.mulf %74, %78 : vector<4x8x8xf32>
    %cst_68 = arith.constant dense<0.000000e+00> : vector<4x8x8xf32>
    %80 = tpu.matmul %79, %64, %cst_68 {dimension_numbers = #tpu.dot_dimension_numbers<[2], [1], [1], [2], [0, 0, 0, 1, 1, 2], [0], [0]>} : vector<4x8x8xf32>, vector<4x8x8xf32>, vector<4x8x8xf32> -> vector<4x8x8xf32>
    %cst_69 = arith.constant dense<0.000000e+00> : vector<4x8x32xf32>
    %81 = tpu.matmul %80, %47, %cst_69 {dimension_numbers = #tpu.dot_dimension_numbers<[2], [1], [1], [2], [0, 0, 0, 1, 1, 2], [0], [0]>} : vector<4x8x8xf32>, vector<4x8x32xf32>, vector<4x8x32xf32> -> vector<4x8x32xf32>
    %cst_70 = arith.constant dense<0.000000e+00> : vector<8x32xf32>
    %82 = vector.multi_reduction <add>, %81, %cst_70 [0] : vector<4x8x32xf32> to vector<8x32xf32>
    %83 = vector.broadcast %49 : vector<1x32xf32> to vector<8x32xf32>
    %84 = arith.addf %82, %83 : vector<8x32xf32>
    %85 = arith.addf %25, %84 : vector<8x32xf32>
    %c0_71 = arith.constant 0 : index
    %c0_72 = arith.constant 0 : index
    %c0_73 = arith.constant 0 : index
    %86 = vector.load %arg20[%c0_71, %c0_72, %c0_73] : memref<2x1x32xf32, #tpu.memory_space<vmem>>, vector<1x1x32xf32>
    %87 = vector.shape_cast %86 : vector<1x1x32xf32> to vector<1x32xf32>
    %c0_74 = arith.constant 0 : index
    %c0_75 = arith.constant 0 : index
    %c0_76 = arith.constant 0 : index
    %88 = vector.load %arg21[%c0_74, %c0_75, %c0_76] : memref<2x1x32xf32, #tpu.memory_space<vmem>>, vector<1x1x32xf32>
    %89 = vector.shape_cast %88 : vector<1x1x32xf32> to vector<1x32xf32>
    %cst_77 = arith.constant dense<0.000000e+00> : vector<8xf32>
    %90 = vector.multi_reduction <add>, %85, %cst_77 [1] : vector<8x32xf32> to vector<8xf32>
    %91 = vector.shape_cast %90 : vector<8xf32> to vector<8x1xf32>
    %cst_78 = arith.constant 3.200000e+01 : f32
    %92 = vector.broadcast %cst_78 : f32 to vector<8x1xf32>
    %93 = arith.divf %91, %92 : vector<8x1xf32>
    %94 = vector.broadcast %93 : vector<8x1xf32> to vector<8x32xf32>
    %95 = arith.subf %85, %94 : vector<8x32xf32>
    %96 = arith.mulf %95, %95 : vector<8x32xf32>
    %cst_79 = arith.constant dense<0.000000e+00> : vector<8xf32>
    %97 = vector.multi_reduction <add>, %96, %cst_79 [1] : vector<8x32xf32> to vector<8xf32>
    %98 = vector.shape_cast %97 : vector<8xf32> to vector<8x1xf32>
    %cst_80 = arith.constant 3.200000e+01 : f32
    %99 = vector.broadcast %cst_80 : f32 to vector<8x1xf32>
    %100 = arith.divf %98, %99 : vector<8x1xf32>
    %101 = vector.broadcast %93 : vector<8x1xf32> to vector<8x32xf32>
    %102 = arith.subf %85, %101 : vector<8x32xf32>
    %cst_81 = arith.constant 9.99999974E-6 : f32
    %103 = vector.broadcast %cst_81 : f32 to vector<8x1xf32>
    %104 = arith.addf %100, %103 : vector<8x1xf32>
    %105 = math.rsqrt %104 : vector<8x1xf32>
    %106 = vector.broadcast %105 : vector<8x1xf32> to vector<8x32xf32>
    %107 = arith.mulf %102, %106 : vector<8x32xf32>
    %108 = vector.broadcast %87 : vector<1x32xf32> to vector<8x32xf32>
    %109 = arith.mulf %107, %108 : vector<8x32xf32>
    %110 = vector.broadcast %89 : vector<1x32xf32> to vector<8x32xf32>
    %111 = arith.addf %109, %110 : vector<8x32xf32>
    %c0_82 = arith.constant 0 : index
    %c0_83 = arith.constant 0 : index
    %c0_84 = arith.constant 0 : index
    %112 = vector.load %arg22[%c0_82, %c0_83, %c0_84] : memref<2x32x128xf32, #tpu.memory_space<vmem>>, vector<1x32x128xf32>
    %113 = vector.shape_cast %112 : vector<1x32x128xf32> to vector<32x128xf32>
    %cst_85 = arith.constant dense<0.000000e+00> : vector<8x128xf32>
    %114 = tpu.matmul %111, %113, %cst_85 {dimension_numbers = #tpu.dot_dimension_numbers<[1], [0], [0], [1], [0, 0, 1, 1], [], []>} : vector<8x32xf32>, vector<32x128xf32>, vector<8x128xf32> -> vector<8x128xf32>
    %c0_86 = arith.constant 0 : index
    %c0_87 = arith.constant 0 : index
    %c0_88 = arith.constant 0 : index
    %115 = vector.load %arg23[%c0_86, %c0_87, %c0_88] : memref<2x1x128xf32, #tpu.memory_space<vmem>>, vector<1x1x128xf32>
    %116 = vector.shape_cast %115 : vector<1x1x128xf32> to vector<1x128xf32>
    %117 = vector.broadcast %116 : vector<1x128xf32> to vector<8x128xf32>
    %118 = arith.addf %114, %117 : vector<8x128xf32>
    %cst_89 = arith.constant 0.000000e+00 : f32
    %119 = vector.broadcast %cst_89 : f32 to vector<8x128xf32>
    %120 = arith.maximumf %118, %119 : vector<8x128xf32>
    %c0_90 = arith.constant 0 : index
    %c0_91 = arith.constant 0 : index
    %c0_92 = arith.constant 0 : index
    %121 = vector.load %arg24[%c0_90, %c0_91, %c0_92] : memref<2x128x32xf32, #tpu.memory_space<vmem>>, vector<1x128x32xf32>
    %122 = vector.shape_cast %121 : vector<1x128x32xf32> to vector<128x32xf32>
    %cst_93 = arith.constant dense<0.000000e+00> : vector<8x32xf32>
    %123 = tpu.matmul %120, %122, %cst_93 {dimension_numbers = #tpu.dot_dimension_numbers<[1], [0], [0], [1], [0, 0, 1, 1], [], []>} : vector<8x128xf32>, vector<128x32xf32>, vector<8x32xf32> -> vector<8x32xf32>
    %c0_94 = arith.constant 0 : index
    %c0_95 = arith.constant 0 : index
    %c0_96 = arith.constant 0 : index
    %124 = vector.load %arg25[%c0_94, %c0_95, %c0_96] : memref<2x1x32xf32, #tpu.memory_space<vmem>>, vector<1x1x32xf32>
    %125 = vector.shape_cast %124 : vector<1x1x32xf32> to vector<1x32xf32>
    %126 = vector.broadcast %125 : vector<1x32xf32> to vector<8x32xf32>
    %127 = arith.addf %123, %126 : vector<8x32xf32>
    %128 = arith.addf %111, %127 : vector<8x32xf32>
    %c0_97 = arith.constant 0 : index
    %c0_98 = arith.constant 0 : index
    %c0_99 = arith.constant 0 : index
    %129 = vector.load %arg26[%c0_97, %c0_98, %c0_99] : memref<2x1x32xf32, #tpu.memory_space<vmem>>, vector<1x1x32xf32>
    %130 = vector.shape_cast %129 : vector<1x1x32xf32> to vector<1x32xf32>
    %c0_100 = arith.constant 0 : index
    %c0_101 = arith.constant 0 : index
    %c0_102 = arith.constant 0 : index
    %131 = vector.load %arg27[%c0_100, %c0_101, %c0_102] : memref<2x1x32xf32, #tpu.memory_space<vmem>>, vector<1x1x32xf32>
    %132 = vector.shape_cast %131 : vector<1x1x32xf32> to vector<1x32xf32>
    %cst_103 = arith.constant dense<0.000000e+00> : vector<8xf32>
    %133 = vector.multi_reduction <add>, %128, %cst_103 [1] : vector<8x32xf32> to vector<8xf32>
    %134 = vector.shape_cast %133 : vector<8xf32> to vector<8x1xf32>
    %cst_104 = arith.constant 3.200000e+01 : f32
    %135 = vector.broadcast %cst_104 : f32 to vector<8x1xf32>
    %136 = arith.divf %134, %135 : vector<8x1xf32>
    %137 = vector.broadcast %136 : vector<8x1xf32> to vector<8x32xf32>
    %138 = arith.subf %128, %137 : vector<8x32xf32>
    %139 = arith.mulf %138, %138 : vector<8x32xf32>
    %cst_105 = arith.constant dense<0.000000e+00> : vector<8xf32>
    %140 = vector.multi_reduction <add>, %139, %cst_105 [1] : vector<8x32xf32> to vector<8xf32>
    %141 = vector.shape_cast %140 : vector<8xf32> to vector<8x1xf32>
    %cst_106 = arith.constant 3.200000e+01 : f32
    %142 = vector.broadcast %cst_106 : f32 to vector<8x1xf32>
    %143 = arith.divf %141, %142 : vector<8x1xf32>
    %144 = vector.broadcast %136 : vector<8x1xf32> to vector<8x32xf32>
    %145 = arith.subf %128, %144 : vector<8x32xf32>
    %cst_107 = arith.constant 9.99999974E-6 : f32
    %146 = vector.broadcast %cst_107 : f32 to vector<8x1xf32>
    %147 = arith.addf %143, %146 : vector<8x1xf32>
    %148 = math.rsqrt %147 : vector<8x1xf32>
    %149 = vector.broadcast %148 : vector<8x1xf32> to vector<8x32xf32>
    %150 = arith.mulf %145, %149 : vector<8x32xf32>
    %151 = vector.broadcast %130 : vector<1x32xf32> to vector<8x32xf32>
    %152 = arith.mulf %150, %151 : vector<8x32xf32>
    %153 = vector.broadcast %132 : vector<1x32xf32> to vector<8x32xf32>
    %154 = arith.addf %152, %153 : vector<8x32xf32>
    %c1 = arith.constant 1 : index
    %c0_108 = arith.constant 0 : index
    %c0_109 = arith.constant 0 : index
    %c0_110 = arith.constant 0 : index
    %155 = vector.load %arg12[%c1, %c0_108, %c0_109, %c0_110] : memref<2x4x32x8xf32, #tpu.memory_space<vmem>>, vector<1x4x32x8xf32>
    %156 = vector.shape_cast %155 : vector<1x4x32x8xf32> to vector<4x32x8xf32>
    %c1_111 = arith.constant 1 : index
    %c0_112 = arith.constant 0 : index
    %c0_113 = arith.constant 0 : index
    %c0_114 = arith.constant 0 : index
    %157 = vector.load %arg13[%c1_111, %c0_112, %c0_113, %c0_114] : memref<2x4x1x8xf32, #tpu.memory_space<vmem>>, vector<1x4x1x8xf32>
    %158 = vector.shape_cast %157 : vector<1x4x1x8xf32> to vector<4x1x8xf32>
    %c1_115 = arith.constant 1 : index
    %c0_116 = arith.constant 0 : index
    %c0_117 = arith.constant 0 : index
    %c0_118 = arith.constant 0 : index
    %159 = vector.load %arg14[%c1_115, %c0_116, %c0_117, %c0_118] : memref<2x4x32x8xf32, #tpu.memory_space<vmem>>, vector<1x4x32x8xf32>
    %160 = vector.shape_cast %159 : vector<1x4x32x8xf32> to vector<4x32x8xf32>
    %c1_119 = arith.constant 1 : index
    %c0_120 = arith.constant 0 : index
    %c0_121 = arith.constant 0 : index
    %c0_122 = arith.constant 0 : index
    %161 = vector.load %arg15[%c1_119, %c0_120, %c0_121, %c0_122] : memref<2x4x1x8xf32, #tpu.memory_space<vmem>>, vector<1x4x1x8xf32>
    %162 = vector.shape_cast %161 : vector<1x4x1x8xf32> to vector<4x1x8xf32>
    %c1_123 = arith.constant 1 : index
    %c0_124 = arith.constant 0 : index
    %c0_125 = arith.constant 0 : index
    %c0_126 = arith.constant 0 : index
    %163 = vector.load %arg16[%c1_123, %c0_124, %c0_125, %c0_126] : memref<2x4x32x8xf32, #tpu.memory_space<vmem>>, vector<1x4x32x8xf32>
    %164 = vector.shape_cast %163 : vector<1x4x32x8xf32> to vector<4x32x8xf32>
    %c1_127 = arith.constant 1 : index
    %c0_128 = arith.constant 0 : index
    %c0_129 = arith.constant 0 : index
    %c0_130 = arith.constant 0 : index
    %165 = vector.load %arg17[%c1_127, %c0_128, %c0_129, %c0_130] : memref<2x4x1x8xf32, #tpu.memory_space<vmem>>, vector<1x4x1x8xf32>
    %166 = vector.shape_cast %165 : vector<1x4x1x8xf32> to vector<4x1x8xf32>
    %c1_131 = arith.constant 1 : index
    %c0_132 = arith.constant 0 : index
    %c0_133 = arith.constant 0 : index
    %c0_134 = arith.constant 0 : index
    %167 = vector.load %arg18[%c1_131, %c0_132, %c0_133, %c0_134] : memref<2x4x8x32xf32, #tpu.memory_space<vmem>>, vector<1x4x8x32xf32>
    %168 = vector.shape_cast %167 : vector<1x4x8x32xf32> to vector<4x8x32xf32>
    %c1_135 = arith.constant 1 : index
    %c0_136 = arith.constant 0 : index
    %c0_137 = arith.constant 0 : index
    %169 = vector.load %arg19[%c1_135, %c0_136, %c0_137] : memref<2x1x32xf32, #tpu.memory_space<vmem>>, vector<1x1x32xf32>
    %170 = vector.shape_cast %169 : vector<1x1x32xf32> to vector<1x32xf32>
    %171 = vector.shape_cast %154 : vector<8x32xf32> to vector<1x8x32xf32>
    %172 = vector.shape_cast %171 : vector<1x8x32xf32> to vector<1x8x32xf32>
    %173 = vector.broadcast %172 : vector<1x8x32xf32> to vector<4x8x32xf32>
    %174 = vector.shape_cast %154 : vector<8x32xf32> to vector<1x8x32xf32>
    %175 = vector.shape_cast %174 : vector<1x8x32xf32> to vector<1x8x32xf32>
    %176 = vector.broadcast %175 : vector<1x8x32xf32> to vector<4x8x32xf32>
    %cst_138 = arith.constant dense<0.000000e+00> : vector<4x8x8xf32>
    %177 = tpu.matmul %173, %156, %cst_138 {dimension_numbers = #tpu.dot_dimension_numbers<[2], [1], [1], [2], [0, 0, 0, 1, 1, 2], [0], [0]>} : vector<4x8x32xf32>, vector<4x32x8xf32>, vector<4x8x8xf32> -> vector<4x8x8xf32>
    %178 = vector.broadcast %158 : vector<4x1x8xf32> to vector<4x8x8xf32>
    %179 = arith.addf %177, %178 : vector<4x8x8xf32>
    %cst_139 = arith.constant dense<0.000000e+00> : vector<4x8x8xf32>
    %180 = tpu.matmul %176, %160, %cst_139 {dimension_numbers = #tpu.dot_dimension_numbers<[2], [1], [1], [2], [0, 0, 0, 1, 1, 2], [0], [0]>} : vector<4x8x32xf32>, vector<4x32x8xf32>, vector<4x8x8xf32> -> vector<4x8x8xf32>
    %181 = vector.broadcast %162 : vector<4x1x8xf32> to vector<4x8x8xf32>
    %182 = arith.addf %180, %181 : vector<4x8x8xf32>
    %cst_140 = arith.constant dense<0.000000e+00> : vector<4x8x8xf32>
    %183 = tpu.matmul %176, %164, %cst_140 {dimension_numbers = #tpu.dot_dimension_numbers<[2], [1], [1], [2], [0, 0, 0, 1, 1, 2], [0], [0]>} : vector<4x8x32xf32>, vector<4x32x8xf32>, vector<4x8x8xf32> -> vector<4x8x8xf32>
    %184 = vector.broadcast %166 : vector<4x1x8xf32> to vector<4x8x8xf32>
    %185 = arith.addf %183, %184 : vector<4x8x8xf32>
    %cst_141 = arith.constant dense<0.000000e+00> : vector<4x8x8xf32>
    %186 = tpu.matmul %179, %182, %cst_141 {dimension_numbers = #tpu.dot_dimension_numbers<[2], [2], [1], [1], [0, 0, 0, 1, 1, 1], [0], [0]>} : vector<4x8x8xf32>, vector<4x8x8xf32>, vector<4x8x8xf32> -> vector<4x8x8xf32>
    %cst_142 = arith.constant 0.353553385 : f32
    %187 = vector.broadcast %cst_142 : f32 to vector<4x8x8xf32>
    %188 = arith.mulf %186, %187 : vector<4x8x8xf32>
    %189 = vector.broadcast %10 : vector<1x1x8xf32> to vector<4x8x8xf32>
    %190 = arith.addf %188, %189 : vector<4x8x8xf32>
    %cst_143 = arith.constant dense<0xFF800000> : vector<4x8xf32>
    %191 = vector.multi_reduction <maximumf>, %190, %cst_143 [2] : vector<4x8x8xf32> to vector<4x8xf32>
    %192 = vector.shape_cast %191 : vector<4x8xf32> to vector<4x8x1xf32>
    %193 = vector.broadcast %192 : vector<4x8x1xf32> to vector<4x8x8xf32>
    %194 = arith.subf %190, %193 : vector<4x8x8xf32>
    %195 = math.exp %194 : vector<4x8x8xf32>
    %cst_144 = arith.constant dense<0.000000e+00> : vector<4x8xf32>
    %196 = vector.multi_reduction <add>, %195, %cst_144 [2] : vector<4x8x8xf32> to vector<4x8xf32>
    %197 = vector.shape_cast %196 : vector<4x8xf32> to vector<4x8x1xf32>
    %198 = tpu.reciprocal %197 {approx = true} : vector<4x8x1xf32> -> vector<4x8x1xf32>
    %199 = vector.broadcast %198 : vector<4x8x1xf32> to vector<4x8x8xf32>
    %200 = arith.mulf %195, %199 : vector<4x8x8xf32>
    %cst_145 = arith.constant dense<0.000000e+00> : vector<4x8x8xf32>
    %201 = tpu.matmul %200, %185, %cst_145 {dimension_numbers = #tpu.dot_dimension_numbers<[2], [1], [1], [2], [0, 0, 0, 1, 1, 2], [0], [0]>} : vector<4x8x8xf32>, vector<4x8x8xf32>, vector<4x8x8xf32> -> vector<4x8x8xf32>
    %cst_146 = arith.constant dense<0.000000e+00> : vector<4x8x32xf32>
    %202 = tpu.matmul %201, %168, %cst_146 {dimension_numbers = #tpu.dot_dimension_numbers<[2], [1], [1], [2], [0, 0, 0, 1, 1, 2], [0], [0]>} : vector<4x8x8xf32>, vector<4x8x32xf32>, vector<4x8x32xf32> -> vector<4x8x32xf32>
    %cst_147 = arith.constant dense<0.000000e+00> : vector<8x32xf32>
    %203 = vector.multi_reduction <add>, %202, %cst_147 [0] : vector<4x8x32xf32> to vector<8x32xf32>
    %204 = vector.broadcast %170 : vector<1x32xf32> to vector<8x32xf32>
    %205 = arith.addf %203, %204 : vector<8x32xf32>
    %206 = arith.addf %154, %205 : vector<8x32xf32>
    %c1_148 = arith.constant 1 : index
    %c0_149 = arith.constant 0 : index
    %c0_150 = arith.constant 0 : index
    %207 = vector.load %arg20[%c1_148, %c0_149, %c0_150] : memref<2x1x32xf32, #tpu.memory_space<vmem>>, vector<1x1x32xf32>
    %208 = vector.shape_cast %207 : vector<1x1x32xf32> to vector<1x32xf32>
    %c1_151 = arith.constant 1 : index
    %c0_152 = arith.constant 0 : index
    %c0_153 = arith.constant 0 : index
    %209 = vector.load %arg21[%c1_151, %c0_152, %c0_153] : memref<2x1x32xf32, #tpu.memory_space<vmem>>, vector<1x1x32xf32>
    %210 = vector.shape_cast %209 : vector<1x1x32xf32> to vector<1x32xf32>
    %cst_154 = arith.constant dense<0.000000e+00> : vector<8xf32>
    %211 = vector.multi_reduction <add>, %206, %cst_154 [1] : vector<8x32xf32> to vector<8xf32>
    %212 = vector.shape_cast %211 : vector<8xf32> to vector<8x1xf32>
    %cst_155 = arith.constant 3.200000e+01 : f32
    %213 = vector.broadcast %cst_155 : f32 to vector<8x1xf32>
    %214 = arith.divf %212, %213 : vector<8x1xf32>
    %215 = vector.broadcast %214 : vector<8x1xf32> to vector<8x32xf32>
    %216 = arith.subf %206, %215 : vector<8x32xf32>
    %217 = arith.mulf %216, %216 : vector<8x32xf32>
    %cst_156 = arith.constant dense<0.000000e+00> : vector<8xf32>
    %218 = vector.multi_reduction <add>, %217, %cst_156 [1] : vector<8x32xf32> to vector<8xf32>
    %219 = vector.shape_cast %218 : vector<8xf32> to vector<8x1xf32>
    %cst_157 = arith.constant 3.200000e+01 : f32
    %220 = vector.broadcast %cst_157 : f32 to vector<8x1xf32>
    %221 = arith.divf %219, %220 : vector<8x1xf32>
    %222 = vector.broadcast %214 : vector<8x1xf32> to vector<8x32xf32>
    %223 = arith.subf %206, %222 : vector<8x32xf32>
    %cst_158 = arith.constant 9.99999974E-6 : f32
    %224 = vector.broadcast %cst_158 : f32 to vector<8x1xf32>
    %225 = arith.addf %221, %224 : vector<8x1xf32>
    %226 = math.rsqrt %225 : vector<8x1xf32>
    %227 = vector.broadcast %226 : vector<8x1xf32> to vector<8x32xf32>
    %228 = arith.mulf %223, %227 : vector<8x32xf32>
    %229 = vector.broadcast %208 : vector<1x32xf32> to vector<8x32xf32>
    %230 = arith.mulf %228, %229 : vector<8x32xf32>
    %231 = vector.broadcast %210 : vector<1x32xf32> to vector<8x32xf32>
    %232 = arith.addf %230, %231 : vector<8x32xf32>
    %c1_159 = arith.constant 1 : index
    %c0_160 = arith.constant 0 : index
    %c0_161 = arith.constant 0 : index
    %233 = vector.load %arg22[%c1_159, %c0_160, %c0_161] : memref<2x32x128xf32, #tpu.memory_space<vmem>>, vector<1x32x128xf32>
    %234 = vector.shape_cast %233 : vector<1x32x128xf32> to vector<32x128xf32>
    %cst_162 = arith.constant dense<0.000000e+00> : vector<8x128xf32>
    %235 = tpu.matmul %232, %234, %cst_162 {dimension_numbers = #tpu.dot_dimension_numbers<[1], [0], [0], [1], [0, 0, 1, 1], [], []>} : vector<8x32xf32>, vector<32x128xf32>, vector<8x128xf32> -> vector<8x128xf32>
    %c1_163 = arith.constant 1 : index
    %c0_164 = arith.constant 0 : index
    %c0_165 = arith.constant 0 : index
    %236 = vector.load %arg23[%c1_163, %c0_164, %c0_165] : memref<2x1x128xf32, #tpu.memory_space<vmem>>, vector<1x1x128xf32>
    %237 = vector.shape_cast %236 : vector<1x1x128xf32> to vector<1x128xf32>
    %238 = vector.broadcast %237 : vector<1x128xf32> to vector<8x128xf32>
    %239 = arith.addf %235, %238 : vector<8x128xf32>
    %cst_166 = arith.constant 0.000000e+00 : f32
    %240 = vector.broadcast %cst_166 : f32 to vector<8x128xf32>
    %241 = arith.maximumf %239, %240 : vector<8x128xf32>
    %c1_167 = arith.constant 1 : index
    %c0_168 = arith.constant 0 : index
    %c0_169 = arith.constant 0 : index
    %242 = vector.load %arg24[%c1_167, %c0_168, %c0_169] : memref<2x128x32xf32, #tpu.memory_space<vmem>>, vector<1x128x32xf32>
    %243 = vector.shape_cast %242 : vector<1x128x32xf32> to vector<128x32xf32>
    %cst_170 = arith.constant dense<0.000000e+00> : vector<8x32xf32>
    %244 = tpu.matmul %241, %243, %cst_170 {dimension_numbers = #tpu.dot_dimension_numbers<[1], [0], [0], [1], [0, 0, 1, 1], [], []>} : vector<8x128xf32>, vector<128x32xf32>, vector<8x32xf32> -> vector<8x32xf32>
    %c1_171 = arith.constant 1 : index
    %c0_172 = arith.constant 0 : index
    %c0_173 = arith.constant 0 : index
    %245 = vector.load %arg25[%c1_171, %c0_172, %c0_173] : memref<2x1x32xf32, #tpu.memory_space<vmem>>, vector<1x1x32xf32>
    %246 = vector.shape_cast %245 : vector<1x1x32xf32> to vector<1x32xf32>
    %247 = vector.broadcast %246 : vector<1x32xf32> to vector<8x32xf32>
    %248 = arith.addf %244, %247 : vector<8x32xf32>
    %249 = arith.addf %232, %248 : vector<8x32xf32>
    %c1_174 = arith.constant 1 : index
    %c0_175 = arith.constant 0 : index
    %c0_176 = arith.constant 0 : index
    %250 = vector.load %arg26[%c1_174, %c0_175, %c0_176] : memref<2x1x32xf32, #tpu.memory_space<vmem>>, vector<1x1x32xf32>
    %251 = vector.shape_cast %250 : vector<1x1x32xf32> to vector<1x32xf32>
    %c1_177 = arith.constant 1 : index
    %c0_178 = arith.constant 0 : index
    %c0_179 = arith.constant 0 : index
    %252 = vector.load %arg27[%c1_177, %c0_178, %c0_179] : memref<2x1x32xf32, #tpu.memory_space<vmem>>, vector<1x1x32xf32>
    %253 = vector.shape_cast %252 : vector<1x1x32xf32> to vector<1x32xf32>
    %cst_180 = arith.constant dense<0.000000e+00> : vector<8xf32>
    %254 = vector.multi_reduction <add>, %249, %cst_180 [1] : vector<8x32xf32> to vector<8xf32>
    %255 = vector.shape_cast %254 : vector<8xf32> to vector<8x1xf32>
    %cst_181 = arith.constant 3.200000e+01 : f32
    %256 = vector.broadcast %cst_181 : f32 to vector<8x1xf32>
    %257 = arith.divf %255, %256 : vector<8x1xf32>
    %258 = vector.broadcast %257 : vector<8x1xf32> to vector<8x32xf32>
    %259 = arith.subf %249, %258 : vector<8x32xf32>
    %260 = arith.mulf %259, %259 : vector<8x32xf32>
    %cst_182 = arith.constant dense<0.000000e+00> : vector<8xf32>
    %261 = vector.multi_reduction <add>, %260, %cst_182 [1] : vector<8x32xf32> to vector<8xf32>
    %262 = vector.shape_cast %261 : vector<8xf32> to vector<8x1xf32>
    %cst_183 = arith.constant 3.200000e+01 : f32
    %263 = vector.broadcast %cst_183 : f32 to vector<8x1xf32>
    %264 = arith.divf %262, %263 : vector<8x1xf32>
    %265 = vector.broadcast %257 : vector<8x1xf32> to vector<8x32xf32>
    %266 = arith.subf %249, %265 : vector<8x32xf32>
    %cst_184 = arith.constant 9.99999974E-6 : f32
    %267 = vector.broadcast %cst_184 : f32 to vector<8x1xf32>
    %268 = arith.addf %264, %267 : vector<8x1xf32>
    %269 = math.rsqrt %268 : vector<8x1xf32>
    %270 = vector.broadcast %269 : vector<8x1xf32> to vector<8x32xf32>
    %271 = arith.mulf %266, %270 : vector<8x32xf32>
    %272 = vector.broadcast %251 : vector<1x32xf32> to vector<8x32xf32>
    %273 = arith.mulf %271, %272 : vector<8x32xf32>
    %274 = vector.broadcast %253 : vector<1x32xf32> to vector<8x32xf32>
    %275 = arith.addf %273, %274 : vector<8x32xf32>
    %c0_185 = arith.constant 0 : index
    %c0_186 = arith.constant 0 : index
    %c0_187 = arith.constant 0 : index
    %276 = vector.load %arg28[%c0_185, %c0_186, %c0_187] : memref<4x32x8xf32, #tpu.memory_space<vmem>>, vector<4x32x8xf32>
    %c0_188 = arith.constant 0 : index
    %c0_189 = arith.constant 0 : index
    %c0_190 = arith.constant 0 : index
    %277 = vector.load %arg29[%c0_188, %c0_189, %c0_190] : memref<4x1x8xf32, #tpu.memory_space<vmem>>, vector<4x1x8xf32>
    %c0_191 = arith.constant 0 : index
    %c0_192 = arith.constant 0 : index
    %c0_193 = arith.constant 0 : index
    %278 = vector.load %arg30[%c0_191, %c0_192, %c0_193] : memref<4x32x8xf32, #tpu.memory_space<vmem>>, vector<4x32x8xf32>
    %c0_194 = arith.constant 0 : index
    %c0_195 = arith.constant 0 : index
    %c0_196 = arith.constant 0 : index
    %279 = vector.load %arg31[%c0_194, %c0_195, %c0_196] : memref<4x1x8xf32, #tpu.memory_space<vmem>>, vector<4x1x8xf32>
    %c0_197 = arith.constant 0 : index
    %c0_198 = arith.constant 0 : index
    %c0_199 = arith.constant 0 : index
    %280 = vector.load %arg32[%c0_197, %c0_198, %c0_199] : memref<4x32x8xf32, #tpu.memory_space<vmem>>, vector<4x32x8xf32>
    %c0_200 = arith.constant 0 : index
    %c0_201 = arith.constant 0 : index
    %c0_202 = arith.constant 0 : index
    %281 = vector.load %arg33[%c0_200, %c0_201, %c0_202] : memref<4x1x8xf32, #tpu.memory_space<vmem>>, vector<4x1x8xf32>
    %c0_203 = arith.constant 0 : index
    %c0_204 = arith.constant 0 : index
    %c0_205 = arith.constant 0 : index
    %282 = vector.load %arg34[%c0_203, %c0_204, %c0_205] : memref<4x8x32xf32, #tpu.memory_space<vmem>>, vector<4x8x32xf32>
    %c0_206 = arith.constant 0 : index
    %c0_207 = arith.constant 0 : index
    %283 = vector.load %arg35[%c0_206, %c0_207] : memref<1x32xf32, #tpu.memory_space<vmem>>, vector<1x32xf32>
    %284 = vector.shape_cast %275 : vector<8x32xf32> to vector<1x8x32xf32>
    %285 = vector.shape_cast %284 : vector<1x8x32xf32> to vector<1x8x32xf32>
    %286 = vector.broadcast %285 : vector<1x8x32xf32> to vector<4x8x32xf32>
    %287 = vector.shape_cast %33 : vector<8x32xf32> to vector<1x8x32xf32>
    %288 = vector.shape_cast %287 : vector<1x8x32xf32> to vector<1x8x32xf32>
    %289 = vector.broadcast %288 : vector<1x8x32xf32> to vector<4x8x32xf32>
    %cst_208 = arith.constant dense<0.000000e+00> : vector<4x8x8xf32>
    %290 = tpu.matmul %286, %276, %cst_208 {dimension_numbers = #tpu.dot_dimension_numbers<[2], [1], [1], [2], [0, 0, 0, 1, 1, 2], [0], [0]>} : vector<4x8x32xf32>, vector<4x32x8xf32>, vector<4x8x8xf32> -> vector<4x8x8xf32>
    %291 = vector.broadcast %277 : vector<4x1x8xf32> to vector<4x8x8xf32>
    %292 = arith.addf %290, %291 : vector<4x8x8xf32>
    %cst_209 = arith.constant dense<0.000000e+00> : vector<4x8x8xf32>
    %293 = tpu.matmul %289, %278, %cst_209 {dimension_numbers = #tpu.dot_dimension_numbers<[2], [1], [1], [2], [0, 0, 0, 1, 1, 2], [0], [0]>} : vector<4x8x32xf32>, vector<4x32x8xf32>, vector<4x8x8xf32> -> vector<4x8x8xf32>
    %294 = vector.broadcast %279 : vector<4x1x8xf32> to vector<4x8x8xf32>
    %295 = arith.addf %293, %294 : vector<4x8x8xf32>
    %cst_210 = arith.constant dense<0.000000e+00> : vector<4x8x8xf32>
    %296 = tpu.matmul %289, %280, %cst_210 {dimension_numbers = #tpu.dot_dimension_numbers<[2], [1], [1], [2], [0, 0, 0, 1, 1, 2], [0], [0]>} : vector<4x8x32xf32>, vector<4x32x8xf32>, vector<4x8x8xf32> -> vector<4x8x8xf32>
    %297 = vector.broadcast %281 : vector<4x1x8xf32> to vector<4x8x8xf32>
    %298 = arith.addf %296, %297 : vector<4x8x8xf32>
    %cst_211 = arith.constant dense<0.000000e+00> : vector<4x8x8xf32>
    %299 = tpu.matmul %292, %295, %cst_211 {dimension_numbers = #tpu.dot_dimension_numbers<[2], [2], [1], [1], [0, 0, 0, 1, 1, 1], [0], [0]>} : vector<4x8x8xf32>, vector<4x8x8xf32>, vector<4x8x8xf32> -> vector<4x8x8xf32>
    %cst_212 = arith.constant 0.353553385 : f32
    %300 = vector.broadcast %cst_212 : f32 to vector<4x8x8xf32>
    %301 = arith.mulf %299, %300 : vector<4x8x8xf32>
    %302 = vector.broadcast %13 : vector<1x1x8xf32> to vector<4x8x8xf32>
    %303 = arith.addf %301, %302 : vector<4x8x8xf32>
    %cst_213 = arith.constant dense<0xFF800000> : vector<4x8xf32>
    %304 = vector.multi_reduction <maximumf>, %303, %cst_213 [2] : vector<4x8x8xf32> to vector<4x8xf32>
    %305 = vector.shape_cast %304 : vector<4x8xf32> to vector<4x8x1xf32>
    %306 = vector.broadcast %305 : vector<4x8x1xf32> to vector<4x8x8xf32>
    %307 = arith.subf %303, %306 : vector<4x8x8xf32>
    %308 = math.exp %307 : vector<4x8x8xf32>
    %cst_214 = arith.constant dense<0.000000e+00> : vector<4x8xf32>
    %309 = vector.multi_reduction <add>, %308, %cst_214 [2] : vector<4x8x8xf32> to vector<4x8xf32>
    %310 = vector.shape_cast %309 : vector<4x8xf32> to vector<4x8x1xf32>
    %311 = tpu.reciprocal %310 {approx = true} : vector<4x8x1xf32> -> vector<4x8x1xf32>
    %312 = vector.broadcast %311 : vector<4x8x1xf32> to vector<4x8x8xf32>
    %313 = arith.mulf %308, %312 : vector<4x8x8xf32>
    %cst_215 = arith.constant dense<0.000000e+00> : vector<4x8x8xf32>
    %314 = tpu.matmul %313, %298, %cst_215 {dimension_numbers = #tpu.dot_dimension_numbers<[2], [1], [1], [2], [0, 0, 0, 1, 1, 2], [0], [0]>} : vector<4x8x8xf32>, vector<4x8x8xf32>, vector<4x8x8xf32> -> vector<4x8x8xf32>
    %cst_216 = arith.constant dense<0.000000e+00> : vector<4x8x32xf32>
    %315 = tpu.matmul %314, %282, %cst_216 {dimension_numbers = #tpu.dot_dimension_numbers<[2], [1], [1], [2], [0, 0, 0, 1, 1, 2], [0], [0]>} : vector<4x8x8xf32>, vector<4x8x32xf32>, vector<4x8x32xf32> -> vector<4x8x32xf32>
    %cst_217 = arith.constant dense<0.000000e+00> : vector<8x32xf32>
    %316 = vector.multi_reduction <add>, %315, %cst_217 [0] : vector<4x8x32xf32> to vector<8x32xf32>
    %317 = vector.broadcast %283 : vector<1x32xf32> to vector<8x32xf32>
    %318 = arith.addf %316, %317 : vector<8x32xf32>
    %319 = arith.addf %275, %318 : vector<8x32xf32>
    %c0_218 = arith.constant 0 : index
    %c0_219 = arith.constant 0 : index
    %320 = vector.load %arg36[%c0_218, %c0_219] : memref<1x32xf32, #tpu.memory_space<vmem>>, vector<1x32xf32>
    %c0_220 = arith.constant 0 : index
    %c0_221 = arith.constant 0 : index
    %321 = vector.load %arg37[%c0_220, %c0_221] : memref<1x32xf32, #tpu.memory_space<vmem>>, vector<1x32xf32>
    %cst_222 = arith.constant dense<0.000000e+00> : vector<8xf32>
    %322 = vector.multi_reduction <add>, %319, %cst_222 [1] : vector<8x32xf32> to vector<8xf32>
    %323 = vector.shape_cast %322 : vector<8xf32> to vector<8x1xf32>
    %cst_223 = arith.constant 3.200000e+01 : f32
    %324 = vector.broadcast %cst_223 : f32 to vector<8x1xf32>
    %325 = arith.divf %323, %324 : vector<8x1xf32>
    %326 = vector.broadcast %325 : vector<8x1xf32> to vector<8x32xf32>
    %327 = arith.subf %319, %326 : vector<8x32xf32>
    %328 = arith.mulf %327, %327 : vector<8x32xf32>
    %cst_224 = arith.constant dense<0.000000e+00> : vector<8xf32>
    %329 = vector.multi_reduction <add>, %328, %cst_224 [1] : vector<8x32xf32> to vector<8xf32>
    %330 = vector.shape_cast %329 : vector<8xf32> to vector<8x1xf32>
    %cst_225 = arith.constant 3.200000e+01 : f32
    %331 = vector.broadcast %cst_225 : f32 to vector<8x1xf32>
    %332 = arith.divf %330, %331 : vector<8x1xf32>
    %333 = vector.broadcast %325 : vector<8x1xf32> to vector<8x32xf32>
    %334 = arith.subf %319, %333 : vector<8x32xf32>
    %cst_226 = arith.constant 9.99999974E-6 : f32
    %335 = vector.broadcast %cst_226 : f32 to vector<8x1xf32>
    %336 = arith.addf %332, %335 : vector<8x1xf32>
    %337 = math.rsqrt %336 : vector<8x1xf32>
    %338 = vector.broadcast %337 : vector<8x1xf32> to vector<8x32xf32>
    %339 = arith.mulf %334, %338 : vector<8x32xf32>
    %340 = vector.broadcast %320 : vector<1x32xf32> to vector<8x32xf32>
    %341 = arith.mulf %339, %340 : vector<8x32xf32>
    %342 = vector.broadcast %321 : vector<1x32xf32> to vector<8x32xf32>
    %343 = arith.addf %341, %342 : vector<8x32xf32>
    %c0_227 = arith.constant 0 : index
    %c0_228 = arith.constant 0 : index
    %c0_229 = arith.constant 0 : index
    %344 = vector.load %arg38[%c0_227, %c0_228, %c0_229] : memref<4x32x8xf32, #tpu.memory_space<vmem>>, vector<4x32x8xf32>
    %c0_230 = arith.constant 0 : index
    %c0_231 = arith.constant 0 : index
    %c0_232 = arith.constant 0 : index
    %345 = vector.load %arg39[%c0_230, %c0_231, %c0_232] : memref<4x1x8xf32, #tpu.memory_space<vmem>>, vector<4x1x8xf32>
    %c0_233 = arith.constant 0 : index
    %c0_234 = arith.constant 0 : index
    %c0_235 = arith.constant 0 : index
    %346 = vector.load %arg40[%c0_233, %c0_234, %c0_235] : memref<4x32x8xf32, #tpu.memory_space<vmem>>, vector<4x32x8xf32>
    %c0_236 = arith.constant 0 : index
    %c0_237 = arith.constant 0 : index
    %c0_238 = arith.constant 0 : index
    %347 = vector.load %arg41[%c0_236, %c0_237, %c0_238] : memref<4x1x8xf32, #tpu.memory_space<vmem>>, vector<4x1x8xf32>
    %c0_239 = arith.constant 0 : index
    %c0_240 = arith.constant 0 : index
    %c0_241 = arith.constant 0 : index
    %348 = vector.load %arg42[%c0_239, %c0_240, %c0_241] : memref<4x32x8xf32, #tpu.memory_space<vmem>>, vector<4x32x8xf32>
    %c0_242 = arith.constant 0 : index
    %c0_243 = arith.constant 0 : index
    %c0_244 = arith.constant 0 : index
    %349 = vector.load %arg43[%c0_242, %c0_243, %c0_244] : memref<4x1x8xf32, #tpu.memory_space<vmem>>, vector<4x1x8xf32>
    %c0_245 = arith.constant 0 : index
    %c0_246 = arith.constant 0 : index
    %c0_247 = arith.constant 0 : index
    %350 = vector.load %arg44[%c0_245, %c0_246, %c0_247] : memref<4x8x32xf32, #tpu.memory_space<vmem>>, vector<4x8x32xf32>
    %c0_248 = arith.constant 0 : index
    %c0_249 = arith.constant 0 : index
    %351 = vector.load %arg45[%c0_248, %c0_249] : memref<1x32xf32, #tpu.memory_space<vmem>>, vector<1x32xf32>
    %352 = vector.shape_cast %33 : vector<8x32xf32> to vector<1x8x32xf32>
    %353 = vector.shape_cast %352 : vector<1x8x32xf32> to vector<1x8x32xf32>
    %354 = vector.broadcast %353 : vector<1x8x32xf32> to vector<4x8x32xf32>
    %355 = vector.shape_cast %275 : vector<8x32xf32> to vector<1x8x32xf32>
    %356 = vector.shape_cast %355 : vector<1x8x32xf32> to vector<1x8x32xf32>
    %357 = vector.broadcast %356 : vector<1x8x32xf32> to vector<4x8x32xf32>
    %cst_250 = arith.constant dense<0.000000e+00> : vector<4x8x8xf32>
    %358 = tpu.matmul %354, %344, %cst_250 {dimension_numbers = #tpu.dot_dimension_numbers<[2], [1], [1], [2], [0, 0, 0, 1, 1, 2], [0], [0]>} : vector<4x8x32xf32>, vector<4x32x8xf32>, vector<4x8x8xf32> -> vector<4x8x8xf32>
    %359 = vector.broadcast %345 : vector<4x1x8xf32> to vector<4x8x8xf32>
    %360 = arith.addf %358, %359 : vector<4x8x8xf32>
    %cst_251 = arith.constant dense<0.000000e+00> : vector<4x8x8xf32>
    %361 = tpu.matmul %357, %346, %cst_251 {dimension_numbers = #tpu.dot_dimension_numbers<[2], [1], [1], [2], [0, 0, 0, 1, 1, 2], [0], [0]>} : vector<4x8x32xf32>, vector<4x32x8xf32>, vector<4x8x8xf32> -> vector<4x8x8xf32>
    %362 = vector.broadcast %347 : vector<4x1x8xf32> to vector<4x8x8xf32>
    %363 = arith.addf %361, %362 : vector<4x8x8xf32>
    %cst_252 = arith.constant dense<0.000000e+00> : vector<4x8x8xf32>
    %364 = tpu.matmul %357, %348, %cst_252 {dimension_numbers = #tpu.dot_dimension_numbers<[2], [1], [1], [2], [0, 0, 0, 1, 1, 2], [0], [0]>} : vector<4x8x32xf32>, vector<4x32x8xf32>, vector<4x8x8xf32> -> vector<4x8x8xf32>
    %365 = vector.broadcast %349 : vector<4x1x8xf32> to vector<4x8x8xf32>
    %366 = arith.addf %364, %365 : vector<4x8x8xf32>
    %cst_253 = arith.constant dense<0.000000e+00> : vector<4x8x8xf32>
    %367 = tpu.matmul %360, %363, %cst_253 {dimension_numbers = #tpu.dot_dimension_numbers<[2], [2], [1], [1], [0, 0, 0, 1, 1, 1], [0], [0]>} : vector<4x8x8xf32>, vector<4x8x8xf32>, vector<4x8x8xf32> -> vector<4x8x8xf32>
    %cst_254 = arith.constant 0.353553385 : f32
    %368 = vector.broadcast %cst_254 : f32 to vector<4x8x8xf32>
    %369 = arith.mulf %367, %368 : vector<4x8x8xf32>
    %370 = vector.broadcast %10 : vector<1x1x8xf32> to vector<4x8x8xf32>
    %371 = arith.addf %369, %370 : vector<4x8x8xf32>
    %cst_255 = arith.constant dense<0xFF800000> : vector<4x8xf32>
    %372 = vector.multi_reduction <maximumf>, %371, %cst_255 [2] : vector<4x8x8xf32> to vector<4x8xf32>
    %373 = vector.shape_cast %372 : vector<4x8xf32> to vector<4x8x1xf32>
    %374 = vector.broadcast %373 : vector<4x8x1xf32> to vector<4x8x8xf32>
    %375 = arith.subf %371, %374 : vector<4x8x8xf32>
    %376 = math.exp %375 : vector<4x8x8xf32>
    %cst_256 = arith.constant dense<0.000000e+00> : vector<4x8xf32>
    %377 = vector.multi_reduction <add>, %376, %cst_256 [2] : vector<4x8x8xf32> to vector<4x8xf32>
    %378 = vector.shape_cast %377 : vector<4x8xf32> to vector<4x8x1xf32>
    %379 = tpu.reciprocal %378 {approx = true} : vector<4x8x1xf32> -> vector<4x8x1xf32>
    %380 = vector.broadcast %379 : vector<4x8x1xf32> to vector<4x8x8xf32>
    %381 = arith.mulf %376, %380 : vector<4x8x8xf32>
    %cst_257 = arith.constant dense<0.000000e+00> : vector<4x8x8xf32>
    %382 = tpu.matmul %381, %366, %cst_257 {dimension_numbers = #tpu.dot_dimension_numbers<[2], [1], [1], [2], [0, 0, 0, 1, 1, 2], [0], [0]>} : vector<4x8x8xf32>, vector<4x8x8xf32>, vector<4x8x8xf32> -> vector<4x8x8xf32>
    %cst_258 = arith.constant dense<0.000000e+00> : vector<4x8x32xf32>
    %383 = tpu.matmul %382, %350, %cst_258 {dimension_numbers = #tpu.dot_dimension_numbers<[2], [1], [1], [2], [0, 0, 0, 1, 1, 2], [0], [0]>} : vector<4x8x8xf32>, vector<4x8x32xf32>, vector<4x8x32xf32> -> vector<4x8x32xf32>
    %cst_259 = arith.constant dense<0.000000e+00> : vector<8x32xf32>
    %384 = vector.multi_reduction <add>, %383, %cst_259 [0] : vector<4x8x32xf32> to vector<8x32xf32>
    %385 = vector.broadcast %351 : vector<1x32xf32> to vector<8x32xf32>
    %386 = arith.addf %384, %385 : vector<8x32xf32>
    %387 = arith.addf %33, %386 : vector<8x32xf32>
    %c0_260 = arith.constant 0 : index
    %c0_261 = arith.constant 0 : index
    %388 = vector.load %arg46[%c0_260, %c0_261] : memref<1x32xf32, #tpu.memory_space<vmem>>, vector<1x32xf32>
    %c0_262 = arith.constant 0 : index
    %c0_263 = arith.constant 0 : index
    %389 = vector.load %arg47[%c0_262, %c0_263] : memref<1x32xf32, #tpu.memory_space<vmem>>, vector<1x32xf32>
    %cst_264 = arith.constant dense<0.000000e+00> : vector<8xf32>
    %390 = vector.multi_reduction <add>, %387, %cst_264 [1] : vector<8x32xf32> to vector<8xf32>
    %391 = vector.shape_cast %390 : vector<8xf32> to vector<8x1xf32>
    %cst_265 = arith.constant 3.200000e+01 : f32
    %392 = vector.broadcast %cst_265 : f32 to vector<8x1xf32>
    %393 = arith.divf %391, %392 : vector<8x1xf32>
    %394 = vector.broadcast %393 : vector<8x1xf32> to vector<8x32xf32>
    %395 = arith.subf %387, %394 : vector<8x32xf32>
    %396 = arith.mulf %395, %395 : vector<8x32xf32>
    %cst_266 = arith.constant dense<0.000000e+00> : vector<8xf32>
    %397 = vector.multi_reduction <add>, %396, %cst_266 [1] : vector<8x32xf32> to vector<8xf32>
    %398 = vector.shape_cast %397 : vector<8xf32> to vector<8x1xf32>
    %cst_267 = arith.constant 3.200000e+01 : f32
    %399 = vector.broadcast %cst_267 : f32 to vector<8x1xf32>
    %400 = arith.divf %398, %399 : vector<8x1xf32>
    %401 = vector.broadcast %393 : vector<8x1xf32> to vector<8x32xf32>
    %402 = arith.subf %387, %401 : vector<8x32xf32>
    %cst_268 = arith.constant 9.99999974E-6 : f32
    %403 = vector.broadcast %cst_268 : f32 to vector<8x1xf32>
    %404 = arith.addf %400, %403 : vector<8x1xf32>
    %405 = math.rsqrt %404 : vector<8x1xf32>
    %406 = vector.broadcast %405 : vector<8x1xf32> to vector<8x32xf32>
    %407 = arith.mulf %402, %406 : vector<8x32xf32>
    %408 = vector.broadcast %388 : vector<1x32xf32> to vector<8x32xf32>
    %409 = arith.mulf %407, %408 : vector<8x32xf32>
    %410 = vector.broadcast %389 : vector<1x32xf32> to vector<8x32xf32>
    %411 = arith.addf %409, %410 : vector<8x32xf32>
    %cst_269 = arith.constant dense<0.000000e+00> : vector<1xf32>
    %412 = vector.multi_reduction <add>, %15, %cst_269 [1] : vector<1x8xf32> to vector<1xf32>
    %413 = vector.shape_cast %412 : vector<1xf32> to vector<1x1xf32>
    %cst_270 = arith.constant 1.000000e+00 : f32
    %414 = vector.broadcast %cst_270 : f32 to vector<1x1xf32>
    %415 = arith.maximumf %413, %414 : vector<1x1xf32>
    %cst_271 = arith.constant dense<0.000000e+00> : vector<1xf32>
    %416 = vector.multi_reduction <add>, %17, %cst_271 [1] : vector<1x8xf32> to vector<1xf32>
    %417 = vector.shape_cast %416 : vector<1xf32> to vector<1x1xf32>
    %cst_272 = arith.constant 1.000000e+00 : f32
    %418 = vector.broadcast %cst_272 : f32 to vector<1x1xf32>
    %419 = arith.maximumf %417, %418 : vector<1x1xf32>
    %cst_273 = arith.constant dense<0.000000e+00> : vector<1x32xf32>
    %420 = tpu.matmul %15, %343, %cst_273 {dimension_numbers = #tpu.dot_dimension_numbers<[1], [0], [0], [1], [0, 0, 1, 1], [], []>} : vector<1x8xf32>, vector<8x32xf32>, vector<1x32xf32> -> vector<1x32xf32>
    %421 = tpu.reciprocal %415 {approx = true} : vector<1x1xf32> -> vector<1x1xf32>
    %422 = vector.broadcast %421 : vector<1x1xf32> to vector<1x32xf32>
    %423 = arith.mulf %420, %422 : vector<1x32xf32>
    %cst_274 = arith.constant dense<0.000000e+00> : vector<1x32xf32>
    %424 = tpu.matmul %17, %411, %cst_274 {dimension_numbers = #tpu.dot_dimension_numbers<[1], [0], [0], [1], [0, 0, 1, 1], [], []>} : vector<1x8xf32>, vector<8x32xf32>, vector<1x32xf32> -> vector<1x32xf32>
    %425 = tpu.reciprocal %419 {approx = true} : vector<1x1xf32> -> vector<1x1xf32>
    %426 = vector.broadcast %425 : vector<1x1xf32> to vector<1x32xf32>
    %427 = arith.mulf %424, %426 : vector<1x32xf32>
    %c0_275 = arith.constant 0 : index
    %c0_276 = arith.constant 0 : index
    %c0_277 = arith.constant 0 : index
    %428 = vector.load %arg5[%c0_275, %c0_276, %c0_277] : memref<1x1x136xf32, #tpu.memory_space<vmem>>, vector<1x1x136xf32>
    %429 = vector.shape_cast %428 : vector<1x1x136xf32> to vector<1x136xf32>
    %c0_278 = arith.constant 0 : index
    %c0_279 = arith.constant 0 : index
    %430 = vector.load %arg48[%c0_278, %c0_279] : memref<200x64xf32, #tpu.memory_space<vmem>>, vector<32x64xf32>
    %cst_280 = arith.constant dense<0.000000e+00> : vector<1x64xf32>
    %431 = tpu.matmul %423, %430, %cst_280 {dimension_numbers = #tpu.dot_dimension_numbers<[1], [0], [0], [1], [0, 0, 1, 1], [], []>} : vector<1x32xf32>, vector<32x64xf32>, vector<1x64xf32> -> vector<1x64xf32>
    %c32 = arith.constant 32 : index
    %c0_281 = arith.constant 0 : index
    %432 = vector.load %arg48[%c32, %c0_281] : memref<200x64xf32, #tpu.memory_space<vmem>>, vector<32x64xf32>
    %cst_282 = arith.constant dense<0.000000e+00> : vector<1x64xf32>
    %433 = tpu.matmul %427, %432, %cst_282 {dimension_numbers = #tpu.dot_dimension_numbers<[1], [0], [0], [1], [0, 0, 1, 1], [], []>} : vector<1x32xf32>, vector<32x64xf32>, vector<1x64xf32> -> vector<1x64xf32>
    %434 = arith.addf %431, %433 : vector<1x64xf32>
    %c64 = arith.constant 64 : index
    %c0_283 = arith.constant 0 : index
    %435 = vector.load %arg48[%c64, %c0_283] : memref<200x64xf32, #tpu.memory_space<vmem>>, vector<136x64xf32>
    %cst_284 = arith.constant dense<0.000000e+00> : vector<1x64xf32>
    %436 = tpu.matmul %429, %435, %cst_284 {dimension_numbers = #tpu.dot_dimension_numbers<[1], [0], [0], [1], [0, 0, 1, 1], [], []>} : vector<1x136xf32>, vector<136x64xf32>, vector<1x64xf32> -> vector<1x64xf32>
    %437 = arith.addf %434, %436 : vector<1x64xf32>
    %c0_285 = arith.constant 0 : index
    %c0_286 = arith.constant 0 : index
    %438 = vector.load %arg49[%c0_285, %c0_286] : memref<1x64xf32, #tpu.memory_space<vmem>>, vector<1x64xf32>
    %439 = arith.addf %437, %438 : vector<1x64xf32>
    %c0_287 = arith.constant 0 : index
    %c0_288 = arith.constant 0 : index
    %440 = vector.load %arg50[%c0_287, %c0_288] : memref<1x64xf32, #tpu.memory_space<vmem>>, vector<1x64xf32>
    %c0_289 = arith.constant 0 : index
    %c0_290 = arith.constant 0 : index
    %441 = vector.load %arg51[%c0_289, %c0_290] : memref<1x64xf32, #tpu.memory_space<vmem>>, vector<1x64xf32>
    %cst_291 = arith.constant dense<0.000000e+00> : vector<1xf32>
    %442 = vector.multi_reduction <add>, %439, %cst_291 [1] : vector<1x64xf32> to vector<1xf32>
    %443 = vector.shape_cast %442 : vector<1xf32> to vector<1x1xf32>
    %cst_292 = arith.constant 6.400000e+01 : f32
    %444 = vector.broadcast %cst_292 : f32 to vector<1x1xf32>
    %445 = arith.divf %443, %444 : vector<1x1xf32>
    %446 = vector.broadcast %445 : vector<1x1xf32> to vector<1x64xf32>
    %447 = arith.subf %439, %446 : vector<1x64xf32>
    %448 = arith.mulf %447, %447 : vector<1x64xf32>
    %cst_293 = arith.constant dense<0.000000e+00> : vector<1xf32>
    %449 = vector.multi_reduction <add>, %448, %cst_293 [1] : vector<1x64xf32> to vector<1xf32>
    %450 = vector.shape_cast %449 : vector<1xf32> to vector<1x1xf32>
    %cst_294 = arith.constant 6.400000e+01 : f32
    %451 = vector.broadcast %cst_294 : f32 to vector<1x1xf32>
    %452 = arith.divf %450, %451 : vector<1x1xf32>
    %453 = vector.broadcast %445 : vector<1x1xf32> to vector<1x64xf32>
    %454 = arith.subf %439, %453 : vector<1x64xf32>
    %cst_295 = arith.constant 9.99999974E-6 : f32
    %455 = vector.broadcast %cst_295 : f32 to vector<1x1xf32>
    %456 = arith.addf %452, %455 : vector<1x1xf32>
    %457 = math.rsqrt %456 : vector<1x1xf32>
    %458 = vector.broadcast %457 : vector<1x1xf32> to vector<1x64xf32>
    %459 = arith.mulf %454, %458 : vector<1x64xf32>
    %460 = arith.mulf %459, %440 : vector<1x64xf32>
    %461 = arith.addf %460, %441 : vector<1x64xf32>
    %cst_296 = arith.constant 0.000000e+00 : f32
    %462 = vector.broadcast %cst_296 : f32 to vector<1x64xf32>
    %463 = arith.maximumf %461, %462 : vector<1x64xf32>
    %c0_297 = arith.constant 0 : index
    %c0_298 = arith.constant 0 : index
    %464 = vector.load %arg52[%c0_297, %c0_298] : memref<1x64xf32, #tpu.memory_space<vmem>>, vector<1x64xf32>
    %c0_299 = arith.constant 0 : index
    %c0_300 = arith.constant 0 : index
    %465 = vector.load %arg53[%c0_299, %c0_300] : memref<1x64xf32, #tpu.memory_space<vmem>>, vector<1x64xf32>
    %cst_301 = arith.constant dense<0.000000e+00> : vector<1xf32>
    %466 = vector.multi_reduction <add>, %463, %cst_301 [1] : vector<1x64xf32> to vector<1xf32>
    %467 = vector.shape_cast %466 : vector<1xf32> to vector<1x1xf32>
    %cst_302 = arith.constant 6.400000e+01 : f32
    %468 = vector.broadcast %cst_302 : f32 to vector<1x1xf32>
    %469 = arith.divf %467, %468 : vector<1x1xf32>
    %470 = vector.broadcast %469 : vector<1x1xf32> to vector<1x64xf32>
    %471 = arith.subf %463, %470 : vector<1x64xf32>
    %472 = arith.mulf %471, %471 : vector<1x64xf32>
    %cst_303 = arith.constant dense<0.000000e+00> : vector<1xf32>
    %473 = vector.multi_reduction <add>, %472, %cst_303 [1] : vector<1x64xf32> to vector<1xf32>
    %474 = vector.shape_cast %473 : vector<1xf32> to vector<1x1xf32>
    %cst_304 = arith.constant 6.400000e+01 : f32
    %475 = vector.broadcast %cst_304 : f32 to vector<1x1xf32>
    %476 = arith.divf %474, %475 : vector<1x1xf32>
    %477 = vector.broadcast %469 : vector<1x1xf32> to vector<1x64xf32>
    %478 = arith.subf %463, %477 : vector<1x64xf32>
    %cst_305 = arith.constant 9.99999974E-6 : f32
    %479 = vector.broadcast %cst_305 : f32 to vector<1x1xf32>
    %480 = arith.addf %476, %479 : vector<1x1xf32>
    %481 = math.rsqrt %480 : vector<1x1xf32>
    %482 = vector.broadcast %481 : vector<1x1xf32> to vector<1x64xf32>
    %483 = arith.mulf %478, %482 : vector<1x64xf32>
    %484 = arith.mulf %483, %464 : vector<1x64xf32>
    %485 = arith.addf %484, %465 : vector<1x64xf32>
    %cst_306 = arith.constant 0.000000e+00 : f32
    %486 = vector.broadcast %cst_306 : f32 to vector<1x64xf32>
    %487 = arith.maximumf %485, %486 : vector<1x64xf32>
    %c0_307 = arith.constant 0 : index
    %c0_308 = arith.constant 0 : index
    %488 = vector.load %arg54[%c0_307, %c0_308] : memref<64x64xf32, #tpu.memory_space<vmem>>, vector<64x64xf32>
    %cst_309 = arith.constant dense<0.000000e+00> : vector<1x64xf32>
    %489 = tpu.matmul %487, %488, %cst_309 {dimension_numbers = #tpu.dot_dimension_numbers<[1], [0], [0], [1], [0, 0, 1, 1], [], []>} : vector<1x64xf32>, vector<64x64xf32>, vector<1x64xf32> -> vector<1x64xf32>
    %c0_310 = arith.constant 0 : index
    %c0_311 = arith.constant 0 : index
    %490 = vector.load %arg55[%c0_310, %c0_311] : memref<1x64xf32, #tpu.memory_space<vmem>>, vector<1x64xf32>
    %491 = arith.addf %489, %490 : vector<1x64xf32>
    %c0_312 = arith.constant 0 : index
    %c0_313 = arith.constant 0 : index
    %492 = vector.load %arg56[%c0_312, %c0_313] : memref<1x64xf32, #tpu.memory_space<vmem>>, vector<1x64xf32>
    %c0_314 = arith.constant 0 : index
    %c0_315 = arith.constant 0 : index
    %493 = vector.load %arg57[%c0_314, %c0_315] : memref<1x64xf32, #tpu.memory_space<vmem>>, vector<1x64xf32>
    %cst_316 = arith.constant dense<0.000000e+00> : vector<1xf32>
    %494 = vector.multi_reduction <add>, %491, %cst_316 [1] : vector<1x64xf32> to vector<1xf32>
    %495 = vector.shape_cast %494 : vector<1xf32> to vector<1x1xf32>
    %cst_317 = arith.constant 6.400000e+01 : f32
    %496 = vector.broadcast %cst_317 : f32 to vector<1x1xf32>
    %497 = arith.divf %495, %496 : vector<1x1xf32>
    %498 = vector.broadcast %497 : vector<1x1xf32> to vector<1x64xf32>
    %499 = arith.subf %491, %498 : vector<1x64xf32>
    %500 = arith.mulf %499, %499 : vector<1x64xf32>
    %cst_318 = arith.constant dense<0.000000e+00> : vector<1xf32>
    %501 = vector.multi_reduction <add>, %500, %cst_318 [1] : vector<1x64xf32> to vector<1xf32>
    %502 = vector.shape_cast %501 : vector<1xf32> to vector<1x1xf32>
    %cst_319 = arith.constant 6.400000e+01 : f32
    %503 = vector.broadcast %cst_319 : f32 to vector<1x1xf32>
    %504 = arith.divf %502, %503 : vector<1x1xf32>
    %505 = vector.broadcast %497 : vector<1x1xf32> to vector<1x64xf32>
    %506 = arith.subf %491, %505 : vector<1x64xf32>
    %cst_320 = arith.constant 9.99999974E-6 : f32
    %507 = vector.broadcast %cst_320 : f32 to vector<1x1xf32>
    %508 = arith.addf %504, %507 : vector<1x1xf32>
    %509 = math.rsqrt %508 : vector<1x1xf32>
    %510 = vector.broadcast %509 : vector<1x1xf32> to vector<1x64xf32>
    %511 = arith.mulf %506, %510 : vector<1x64xf32>
    %512 = arith.mulf %511, %492 : vector<1x64xf32>
    %513 = arith.addf %512, %493 : vector<1x64xf32>
    %cst_321 = arith.constant 0.000000e+00 : f32
    %514 = vector.broadcast %cst_321 : f32 to vector<1x64xf32>
    %515 = arith.maximumf %513, %514 : vector<1x64xf32>
    %c0_322 = arith.constant 0 : index
    %c0_323 = arith.constant 0 : index
    %516 = vector.load %arg58[%c0_322, %c0_323] : memref<64x64xf32, #tpu.memory_space<vmem>>, vector<64x64xf32>
    %cst_324 = arith.constant dense<0.000000e+00> : vector<1x64xf32>
    %517 = tpu.matmul %515, %516, %cst_324 {dimension_numbers = #tpu.dot_dimension_numbers<[1], [0], [0], [1], [0, 0, 1, 1], [], []>} : vector<1x64xf32>, vector<64x64xf32>, vector<1x64xf32> -> vector<1x64xf32>
    %c0_325 = arith.constant 0 : index
    %c0_326 = arith.constant 0 : index
    %518 = vector.load %arg59[%c0_325, %c0_326] : memref<1x64xf32, #tpu.memory_space<vmem>>, vector<1x64xf32>
    %519 = arith.addf %517, %518 : vector<1x64xf32>
    %520 = arith.addf %463, %519 : vector<1x64xf32>
    %c0_327 = arith.constant 0 : index
    %c0_328 = arith.constant 0 : index
    %521 = vector.load %arg60[%c0_327, %c0_328] : memref<64x1xf32, #tpu.memory_space<vmem>>, vector<64x1xf32>
    %cst_329 = arith.constant dense<0.000000e+00> : vector<1x1xf32>
    %522 = tpu.matmul %520, %521, %cst_329 {dimension_numbers = #tpu.dot_dimension_numbers<[1], [0], [0], [1], [0, 0, 1, 1], [], []>} : vector<1x64xf32>, vector<64x1xf32>, vector<1x1xf32> -> vector<1x1xf32>
    %c0_330 = arith.constant 0 : index
    %c0_331 = arith.constant 0 : index
    %523 = vector.load %arg61[%c0_330, %c0_331] : memref<1x1xf32, #tpu.memory_space<vmem>>, vector<1x1xf32>
    %524 = arith.addf %522, %523 : vector<1x1xf32>
    %525 = vector.shape_cast %524 : vector<1x1xf32> to vector<1x1xf32>
    %526 = vector.broadcast %525 : vector<1x1xf32> to vector<1x128xf32>
    %c0_332 = arith.constant 0 : index
    %c0_333 = arith.constant 0 : index
    %c0_334 = arith.constant 0 : index
    %527 = vector.load %arg62[%c0_332, %c0_333, %c0_334] : memref<1x1x128xf32, #tpu.memory_space<vmem>>, vector<1x1x128xf32>
    %528 = vector.shape_cast %527 : vector<1x1x128xf32> to vector<1x128xf32>
    %529 = vector.shape_cast %526 : vector<1x128xf32> to vector<1x1x128xf32>
    tpu.vector_store %arg62[%c0_332, %c0_333, %c0_334], %529 {strides = array<i32>} : memref<1x1x128xf32, #tpu.memory_space<vmem>>, vector<1x1x128xf32>,
    return
  }
  func.func @transform_0(%arg0: i32) -> (i32, i32, i32) {
    %c0_i32 = arith.constant 0 : i32
    %c0_i32_0 = arith.constant 0 : i32
    %c0_i32_1 = arith.constant 0 : i32
    return %arg0, %c0_i32, %c0_i32_0 : i32, i32, i32
  }
  func.func @transform_1(%arg0: i32) -> (i32, i32, i32) {
    %c0_i32 = arith.constant 0 : i32
    %c0_i32_0 = arith.constant 0 : i32
    %c0_i32_1 = arith.constant 0 : i32
    return %arg0, %c0_i32, %c0_i32_0 : i32, i32, i32
  }
  func.func @transform_2(%arg0: i32) -> (i32, i32, i32) {
    %c0_i32 = arith.constant 0 : i32
    %c0_i32_0 = arith.constant 0 : i32
    %c0_i32_1 = arith.constant 0 : i32
    return %arg0, %c0_i32, %c0_i32_0 : i32, i32, i32
  }
  func.func @transform_3(%arg0: i32) -> (i32, i32, i32) {
    %c0_i32 = arith.constant 0 : i32
    %c0_i32_0 = arith.constant 0 : i32
    %c0_i32_1 = arith.constant 0 : i32
    return %arg0, %c0_i32, %c0_i32_0 : i32, i32, i32
  }
  func.func @transform_4(%arg0: i32) -> (i32, i32, i32) {
    %c0_i32 = arith.constant 0 : i32
    %c0_i32_0 = arith.constant 0 : i32
    %c0_i32_1 = arith.constant 0 : i32
    return %arg0, %c0_i32, %c0_i32_0 : i32, i32, i32
  }
  func.func @transform_5(%arg0: i32) -> (i32, i32) {
    %c0_i32 = arith.constant 0 : i32
    %c0_i32_0 = arith.constant 0 : i32
    %c0_i32_1 = arith.constant 0 : i32
    return %c0_i32, %c0_i32_0 : i32, i32
  }
  func.func @transform_6(%arg0: i32) -> (i32, i32) {
    %c0_i32 = arith.constant 0 : i32
    %c0_i32_0 = arith.constant 0 : i32
    %c0_i32_1 = arith.constant 0 : i32
    return %c0_i32, %c0_i32_0 : i32, i32
  }
  func.func @transform_7(%arg0: i32) -> (i32, i32) {
    %c0_i32 = arith.constant 0 : i32
    %c0_i32_0 = arith.constant 0 : i32
    %c0_i32_1 = arith.constant 0 : i32
    return %c0_i32, %c0_i32_0 : i32, i32
  }
  func.func @transform_8(%arg0: i32) -> (i32, i32) {
    %c0_i32 = arith.constant 0 : i32
    %c0_i32_0 = arith.constant 0 : i32
    %c0_i32_1 = arith.constant 0 : i32
    return %c0_i32, %c0_i32_0 : i32, i32
  }
  func.func @transform_9(%arg0: i32) -> (i32, i32, i32) {
    %c0_i32 = arith.constant 0 : i32
    %c0_i32_0 = arith.constant 0 : i32
    %c0_i32_1 = arith.constant 0 : i32
    %c0_i32_2 = arith.constant 0 : i32
    return %c0_i32, %c0_i32_0, %c0_i32_1 : i32, i32, i32
  }
  func.func @transform_10(%arg0: i32) -> (i32, i32, i32) {
    %c0_i32 = arith.constant 0 : i32
    %c0_i32_0 = arith.constant 0 : i32
    %c0_i32_1 = arith.constant 0 : i32
    %c0_i32_2 = arith.constant 0 : i32
    return %c0_i32, %c0_i32_0, %c0_i32_1 : i32, i32, i32
  }
  func.func @transform_11(%arg0: i32) -> (i32, i32, i32, i32) {
    %c0_i32 = arith.constant 0 : i32
    %c0_i32_0 = arith.constant 0 : i32
    %c0_i32_1 = arith.constant 0 : i32
    %c0_i32_2 = arith.constant 0 : i32
    %c0_i32_3 = arith.constant 0 : i32
    return %c0_i32, %c0_i32_0, %c0_i32_1, %c0_i32_2 : i32, i32, i32, i32
  }
  func.func @transform_12(%arg0: i32) -> (i32, i32, i32, i32) {
    %c0_i32 = arith.constant 0 : i32
    %c0_i32_0 = arith.constant 0 : i32
    %c0_i32_1 = arith.constant 0 : i32
    %c0_i32_2 = arith.constant 0 : i32
    %c0_i32_3 = arith.constant 0 : i32
    return %c0_i32, %c0_i32_0, %c0_i32_1, %c0_i32_2 : i32, i32, i32, i32
  }
  func.func @transform_13(%arg0: i32) -> (i32, i32, i32, i32) {
    %c0_i32 = arith.constant 0 : i32
    %c0_i32_0 = arith.constant 0 : i32
    %c0_i32_1 = arith.constant 0 : i32
    %c0_i32_2 = arith.constant 0 : i32
    %c0_i32_3 = arith.constant 0 : i32
    return %c0_i32, %c0_i32_0, %c0_i32_1, %c0_i32_2 : i32, i32, i32, i32
  }
  func.func @transform_14(%arg0: i32) -> (i32, i32, i32, i32) {
    %c0_i32 = arith.constant 0 : i32
    %c0_i32_0 = arith.constant 0 : i32
    %c0_i32_1 = arith.constant 0 : i32
    %c0_i32_2 = arith.constant 0 : i32
    %c0_i32_3 = arith.constant 0 : i32
    return %c0_i32, %c0_i32_0, %c0_i32_1, %c0_i32_2 : i32, i32, i32, i32
  }
  func.func @transform_15(%arg0: i32) -> (i32, i32, i32, i32) {
    %c0_i32 = arith.constant 0 : i32
    %c0_i32_0 = arith.constant 0 : i32
    %c0_i32_1 = arith.constant 0 : i32
    %c0_i32_2 = arith.constant 0 : i32
    %c0_i32_3 = arith.constant 0 : i32
    return %c0_i32, %c0_i32_0, %c0_i32_1, %c0_i32_2 : i32, i32, i32, i32
  }
  func.func @transform_16(%arg0: i32) -> (i32, i32, i32, i32) {
    %c0_i32 = arith.constant 0 : i32
    %c0_i32_0 = arith.constant 0 : i32
    %c0_i32_1 = arith.constant 0 : i32
    %c0_i32_2 = arith.constant 0 : i32
    %c0_i32_3 = arith.constant 0 : i32
    return %c0_i32, %c0_i32_0, %c0_i32_1, %c0_i32_2 : i32, i32, i32, i32
  }
  func.func @transform_17(%arg0: i32) -> (i32, i32, i32, i32) {
    %c0_i32 = arith.constant 0 : i32
    %c0_i32_0 = arith.constant 0 : i32
    %c0_i32_1 = arith.constant 0 : i32
    %c0_i32_2 = arith.constant 0 : i32
    %c0_i32_3 = arith.constant 0 : i32
    return %c0_i32, %c0_i32_0, %c0_i32_1, %c0_i32_2 : i32, i32, i32, i32
  }
  func.func @transform_18(%arg0: i32) -> (i32, i32, i32) {
    %c0_i32 = arith.constant 0 : i32
    %c0_i32_0 = arith.constant 0 : i32
    %c0_i32_1 = arith.constant 0 : i32
    %c0_i32_2 = arith.constant 0 : i32
    return %c0_i32, %c0_i32_0, %c0_i32_1 : i32, i32, i32
  }
  func.func @transform_19(%arg0: i32) -> (i32, i32, i32) {
    %c0_i32 = arith.constant 0 : i32
    %c0_i32_0 = arith.constant 0 : i32
    %c0_i32_1 = arith.constant 0 : i32
    %c0_i32_2 = arith.constant 0 : i32
    return %c0_i32, %c0_i32_0, %c0_i32_1 : i32, i32, i32
  }
  func.func @transform_20(%arg0: i32) -> (i32, i32, i32) {
    %c0_i32 = arith.constant 0 : i32
    %c0_i32_0 = arith.constant 0 : i32
    %c0_i32_1 = arith.constant 0 : i32
    %c0_i32_2 = arith.constant 0 : i32
    return %c0_i32, %c0_i32_0, %c0_i32_1 : i32, i32, i32
  }
  func.func @transform_21(%arg0: i32) -> (i32, i32, i32) {
    %c0_i32 = arith.constant 0 : i32
    %c0_i32_0 = arith.constant 0 : i32
    %c0_i32_1 = arith.constant 0 : i32
    %c0_i32_2 = arith.constant 0 : i32
    return %c0_i32, %c0_i32_0, %c0_i32_1 : i32, i32, i32
  }
  func.func @transform_22(%arg0: i32) -> (i32, i32, i32) {
    %c0_i32 = arith.constant 0 : i32
    %c0_i32_0 = arith.constant 0 : i32
    %c0_i32_1 = arith.constant 0 : i32
    %c0_i32_2 = arith.constant 0 : i32
    return %c0_i32, %c0_i32_0, %c0_i32_1 : i32, i32, i32
  }
  func.func @transform_23(%arg0: i32) -> (i32, i32, i32) {
    %c0_i32 = arith.constant 0 : i32
    %c0_i32_0 = arith.constant 0 : i32
    %c0_i32_1 = arith.constant 0 : i32
    %c0_i32_2 = arith.constant 0 : i32
    return %c0_i32, %c0_i32_0, %c0_i32_1 : i32, i32, i32
  }
  func.func @transform_24(%arg0: i32) -> (i32, i32, i32) {
    %c0_i32 = arith.constant 0 : i32
    %c0_i32_0 = arith.constant 0 : i32
    %c0_i32_1 = arith.constant 0 : i32
    %c0_i32_2 = arith.constant 0 : i32
    return %c0_i32, %c0_i32_0, %c0_i32_1 : i32, i32, i32
  }
  func.func @transform_25(%arg0: i32) -> (i32, i32, i32) {
    %c0_i32 = arith.constant 0 : i32
    %c0_i32_0 = arith.constant 0 : i32
    %c0_i32_1 = arith.constant 0 : i32
    %c0_i32_2 = arith.constant 0 : i32
    return %c0_i32, %c0_i32_0, %c0_i32_1 : i32, i32, i32
  }
  func.func @transform_26(%arg0: i32) -> (i32, i32, i32) {
    %c0_i32 = arith.constant 0 : i32
    %c0_i32_0 = arith.constant 0 : i32
    %c0_i32_1 = arith.constant 0 : i32
    %c0_i32_2 = arith.constant 0 : i32
    return %c0_i32, %c0_i32_0, %c0_i32_1 : i32, i32, i32
  }
  func.func @transform_27(%arg0: i32) -> (i32, i32, i32) {
    %c0_i32 = arith.constant 0 : i32
    %c0_i32_0 = arith.constant 0 : i32
    %c0_i32_1 = arith.constant 0 : i32
    %c0_i32_2 = arith.constant 0 : i32
    return %c0_i32, %c0_i32_0, %c0_i32_1 : i32, i32, i32
  }
  func.func @transform_28(%arg0: i32) -> (i32, i32, i32) {
    %c0_i32 = arith.constant 0 : i32
    %c0_i32_0 = arith.constant 0 : i32
    %c0_i32_1 = arith.constant 0 : i32
    %c0_i32_2 = arith.constant 0 : i32
    return %c0_i32, %c0_i32_0, %c0_i32_1 : i32, i32, i32
  }
  func.func @transform_29(%arg0: i32) -> (i32, i32, i32) {
    %c0_i32 = arith.constant 0 : i32
    %c0_i32_0 = arith.constant 0 : i32
    %c0_i32_1 = arith.constant 0 : i32
    %c0_i32_2 = arith.constant 0 : i32
    return %c0_i32, %c0_i32_0, %c0_i32_1 : i32, i32, i32
  }
  func.func @transform_30(%arg0: i32) -> (i32, i32, i32) {
    %c0_i32 = arith.constant 0 : i32
    %c0_i32_0 = arith.constant 0 : i32
    %c0_i32_1 = arith.constant 0 : i32
    %c0_i32_2 = arith.constant 0 : i32
    return %c0_i32, %c0_i32_0, %c0_i32_1 : i32, i32, i32
  }
  func.func @transform_31(%arg0: i32) -> (i32, i32, i32) {
    %c0_i32 = arith.constant 0 : i32
    %c0_i32_0 = arith.constant 0 : i32
    %c0_i32_1 = arith.constant 0 : i32
    %c0_i32_2 = arith.constant 0 : i32
    return %c0_i32, %c0_i32_0, %c0_i32_1 : i32, i32, i32
  }
  func.func @transform_32(%arg0: i32) -> (i32, i32, i32) {
    %c0_i32 = arith.constant 0 : i32
    %c0_i32_0 = arith.constant 0 : i32
    %c0_i32_1 = arith.constant 0 : i32
    %c0_i32_2 = arith.constant 0 : i32
    return %c0_i32, %c0_i32_0, %c0_i32_1 : i32, i32, i32
  }
  func.func @transform_33(%arg0: i32) -> (i32, i32, i32) {
    %c0_i32 = arith.constant 0 : i32
    %c0_i32_0 = arith.constant 0 : i32
    %c0_i32_1 = arith.constant 0 : i32
    %c0_i32_2 = arith.constant 0 : i32
    return %c0_i32, %c0_i32_0, %c0_i32_1 : i32, i32, i32
  }
  func.func @transform_34(%arg0: i32) -> (i32, i32) {
    %c0_i32 = arith.constant 0 : i32
    %c0_i32_0 = arith.constant 0 : i32
    %c0_i32_1 = arith.constant 0 : i32
    return %c0_i32, %c0_i32_0 : i32, i32
  }
  func.func @transform_35(%arg0: i32) -> (i32, i32) {
    %c0_i32 = arith.constant 0 : i32
    %c0_i32_0 = arith.constant 0 : i32
    %c0_i32_1 = arith.constant 0 : i32
    return %c0_i32, %c0_i32_0 : i32, i32
  }
  func.func @transform_36(%arg0: i32) -> (i32, i32) {
    %c0_i32 = arith.constant 0 : i32
    %c0_i32_0 = arith.constant 0 : i32
    %c0_i32_1 = arith.constant 0 : i32
    return %c0_i32, %c0_i32_0 : i32, i32
  }
  func.func @transform_37(%arg0: i32) -> (i32, i32, i32) {
    %c0_i32 = arith.constant 0 : i32
    %c0_i32_0 = arith.constant 0 : i32
    %c0_i32_1 = arith.constant 0 : i32
    %c0_i32_2 = arith.constant 0 : i32
    return %c0_i32, %c0_i32_0, %c0_i32_1 : i32, i32, i32
  }
  func.func @transform_38(%arg0: i32) -> (i32, i32, i32) {
    %c0_i32 = arith.constant 0 : i32
    %c0_i32_0 = arith.constant 0 : i32
    %c0_i32_1 = arith.constant 0 : i32
    %c0_i32_2 = arith.constant 0 : i32
    return %c0_i32, %c0_i32_0, %c0_i32_1 : i32, i32, i32
  }
  func.func @transform_39(%arg0: i32) -> (i32, i32, i32) {
    %c0_i32 = arith.constant 0 : i32
    %c0_i32_0 = arith.constant 0 : i32
    %c0_i32_1 = arith.constant 0 : i32
    %c0_i32_2 = arith.constant 0 : i32
    return %c0_i32, %c0_i32_0, %c0_i32_1 : i32, i32, i32
  }
  func.func @transform_40(%arg0: i32) -> (i32, i32, i32) {
    %c0_i32 = arith.constant 0 : i32
    %c0_i32_0 = arith.constant 0 : i32
    %c0_i32_1 = arith.constant 0 : i32
    %c0_i32_2 = arith.constant 0 : i32
    return %c0_i32, %c0_i32_0, %c0_i32_1 : i32, i32, i32
  }
  func.func @transform_41(%arg0: i32) -> (i32, i32, i32) {
    %c0_i32 = arith.constant 0 : i32
    %c0_i32_0 = arith.constant 0 : i32
    %c0_i32_1 = arith.constant 0 : i32
    %c0_i32_2 = arith.constant 0 : i32
    return %c0_i32, %c0_i32_0, %c0_i32_1 : i32, i32, i32
  }
  func.func @transform_42(%arg0: i32) -> (i32, i32, i32) {
    %c0_i32 = arith.constant 0 : i32
    %c0_i32_0 = arith.constant 0 : i32
    %c0_i32_1 = arith.constant 0 : i32
    %c0_i32_2 = arith.constant 0 : i32
    return %c0_i32, %c0_i32_0, %c0_i32_1 : i32, i32, i32
  }
  func.func @transform_43(%arg0: i32) -> (i32, i32, i32) {
    %c0_i32 = arith.constant 0 : i32
    %c0_i32_0 = arith.constant 0 : i32
    %c0_i32_1 = arith.constant 0 : i32
    %c0_i32_2 = arith.constant 0 : i32
    return %c0_i32, %c0_i32_0, %c0_i32_1 : i32, i32, i32
  }
  func.func @transform_44(%arg0: i32) -> (i32, i32) {
    %c0_i32 = arith.constant 0 : i32
    %c0_i32_0 = arith.constant 0 : i32
    %c0_i32_1 = arith.constant 0 : i32
    return %c0_i32, %c0_i32_0 : i32, i32
  }
  func.func @transform_45(%arg0: i32) -> (i32, i32) {
    %c0_i32 = arith.constant 0 : i32
    %c0_i32_0 = arith.constant 0 : i32
    %c0_i32_1 = arith.constant 0 : i32
    return %c0_i32, %c0_i32_0 : i32, i32
  }
  func.func @transform_46(%arg0: i32) -> (i32, i32) {
    %c0_i32 = arith.constant 0 : i32
    %c0_i32_0 = arith.constant 0 : i32
    %c0_i32_1 = arith.constant 0 : i32
    return %c0_i32, %c0_i32_0 : i32, i32
  }
  func.func @transform_47(%arg0: i32) -> (i32, i32) {
    %c0_i32 = arith.constant 0 : i32
    %c0_i32_0 = arith.constant 0 : i32
    %c0_i32_1 = arith.constant 0 : i32
    return %c0_i32, %c0_i32_0 : i32, i32
  }
  func.func @transform_48(%arg0: i32) -> (i32, i32) {
    %c0_i32 = arith.constant 0 : i32
    %c0_i32_0 = arith.constant 0 : i32
    %c0_i32_1 = arith.constant 0 : i32
    return %c0_i32, %c0_i32_0 : i32, i32
  }
  func.func @transform_49(%arg0: i32) -> (i32, i32) {
    %c0_i32 = arith.constant 0 : i32
    %c0_i32_0 = arith.constant 0 : i32
    %c0_i32_1 = arith.constant 0 : i32
    return %c0_i32, %c0_i32_0 : i32, i32
  }
  func.func @transform_50(%arg0: i32) -> (i32, i32) {
    %c0_i32 = arith.constant 0 : i32
    %c0_i32_0 = arith.constant 0 : i32
    %c0_i32_1 = arith.constant 0 : i32
    return %c0_i32, %c0_i32_0 : i32, i32
  }
  func.func @transform_51(%arg0: i32) -> (i32, i32) {
    %c0_i32 = arith.constant 0 : i32
    %c0_i32_0 = arith.constant 0 : i32
    %c0_i32_1 = arith.constant 0 : i32
    return %c0_i32, %c0_i32_0 : i32, i32
  }
  func.func @transform_52(%arg0: i32) -> (i32, i32) {
    %c0_i32 = arith.constant 0 : i32
    %c0_i32_0 = arith.constant 0 : i32
    %c0_i32_1 = arith.constant 0 : i32
    return %c0_i32, %c0_i32_0 : i32, i32
  }
  func.func @transform_53(%arg0: i32) -> (i32, i32) {
    %c0_i32 = arith.constant 0 : i32
    %c0_i32_0 = arith.constant 0 : i32
    %c0_i32_1 = arith.constant 0 : i32
    return %c0_i32, %c0_i32_0 : i32, i32
  }
  func.func @transform_54(%arg0: i32) -> (i32, i32) {
    %c0_i32 = arith.constant 0 : i32
    %c0_i32_0 = arith.constant 0 : i32
    %c0_i32_1 = arith.constant 0 : i32
    return %c0_i32, %c0_i32_0 : i32, i32
  }
  func.func @transform_55(%arg0: i32) -> (i32, i32) {
    %c0_i32 = arith.constant 0 : i32
    %c0_i32_0 = arith.constant 0 : i32
    %c0_i32_1 = arith.constant 0 : i32
    return %c0_i32, %c0_i32_0 : i32, i32
  }
  func.func @transform_56(%arg0: i32) -> (i32, i32) {
    %c0_i32 = arith.constant 0 : i32
    %c0_i32_0 = arith.constant 0 : i32
    %c0_i32_1 = arith.constant 0 : i32
    return %c0_i32, %c0_i32_0 : i32, i32
  }
  func.func @transform_57(%arg0: i32) -> (i32, i32) {
    %c0_i32 = arith.constant 0 : i32
    %c0_i32_0 = arith.constant 0 : i32
    %c0_i32_1 = arith.constant 0 : i32
    return %c0_i32, %c0_i32_0 : i32, i32
  }
  func.func @transform_58(%arg0: i32) -> (i32, i32) {
    %c0_i32 = arith.constant 0 : i32
    %c0_i32_0 = arith.constant 0 : i32
    %c0_i32_1 = arith.constant 0 : i32
    return %c0_i32, %c0_i32_0 : i32, i32
  }
  func.func @transform_59(%arg0: i32) -> (i32, i32) {
    %c0_i32 = arith.constant 0 : i32
    %c0_i32_0 = arith.constant 0 : i32
    %c0_i32_1 = arith.constant 0 : i32
    return %c0_i32, %c0_i32_0 : i32, i32
  }
  func.func @transform_60(%arg0: i32) -> (i32, i32) {
    %c0_i32 = arith.constant 0 : i32
    %c0_i32_0 = arith.constant 0 : i32
    %c0_i32_1 = arith.constant 0 : i32
    return %c0_i32, %c0_i32_0 : i32, i32
  }
  func.func @transform_61(%arg0: i32) -> (i32, i32, i32) {
    %c0_i32 = arith.constant 0 : i32
    %c0_i32_0 = arith.constant 0 : i32
    %c0_i32_1 = arith.constant 0 : i32
    return %arg0, %c0_i32, %c0_i32_0 : i32, i32, i32
  }
}

</mosaic_0001>

<bundles_post_ra>
// kernel: forward.1
= control target key start
LH: loop header
LB: loop body
LE: loop exit
PB: predicated region body
PF: predicated region fallthrough
CT: control target
= control target key end

     0   :  { %s14689_s6 = smov 1   ;;  %s14690_s10 = smov 2   ;;  %s16488_s0 = inlined_call_operand.smem [shape: u32[62], index: -1, kind: input, shape index: {}] }
   0x1   :  { %s14762_s5 = sld [smem:[%s16488_s0]]   ;;  %s14691_s14 = smov 3  }
   0x2   :  { %s14767_s9 = sld [smem:[%s16488_s0 + %s14689_s6]]   ;;  %s14692_s18 = smov 4  }
   0x3   :  { %s14772_s13 = sld [smem:[%s16488_s0 + %s14690_s10]]   ;;  %s14693_s22 = smov 5  }
   0x4   :  { %s14777_s17 = sld [smem:[%s16488_s0 + %s14691_s14]]   ;;  %s14694_s26 = smov 6  }
   0x5   :  { %s14782_s21 = sld [smem:[%s16488_s0 + %s14692_s18]]   ;;  %s14695_s30 = smov 7  }
   0x6   :  { %s14787_s25 = sld [smem:[%s16488_s0 + %s14693_s22]]   ;;  %s14696_s4 = smov 8  }
   0x7   :  { %s14792_s29 = sld [smem:[%s16488_s0 + %s14694_s26]]   ;;  %s14697_s10 = smov 9  }
   0x8   :  { %s14797_s3 = sld [smem:[%s16488_s0 + %s14695_s30]]   ;;  %s14698_s15 = smov 10  }
   0x9   :  { %s14802_s8 = sld [smem:[%s16488_s0 + %s14696_s4]]   ;;  %s14699_s20 = smov 11  }
   0xa   :  { %16534 = sst [smem:[#allocation3_spill]] %s14777_s17  ;;  %s14700_s26 = smov 12  }
   0xb   :  { %16535 = sst [smem:[#allocation4_spill]] %s14782_s21  ;;  %s14701_s1 = smov 13  }
   0xc   :  { %s14807_s14 = sld [smem:[%s16488_s0 + %s14697_s10]]   ;;  %s14702_s7 = smov 14  }
   0xd   :  { %s14812_s19 = sld [smem:[%s16488_s0 + %s14698_s15]]   ;;  %s14703_s15 = smov 15  }
   0xe   :  { %16536 = sst [smem:[#allocation5_spill]] %s14797_s3  ;;  %s14704_s22 = smov 16  }
   0xf   :  { %s14817_s24 = sld [smem:[%s16488_s0 + %s14699_s20]]   ;;  %s14705_s28 = smov 17  }
  0x10   :  { %s14822_s30 = sld [smem:[%s16488_s0 + %s14700_s26]]  }
  0x11   :  { %s14827_s6 = sld [smem:[%s16488_s0 + %s14701_s1]]   ;;  %s14749_s1 = smov 61  }
  0x12   :  { %s14832_s12 = sld [smem:[%s16488_s0 + %s14702_s7]]   ;;  %s14706_s7 = smov 18  }
  0x13   :  { %16537 = sst [smem:[#allocation6_spill]] %s14812_s19 }
  0x14   :  { %s14837_s20 = sld [smem:[%s16488_s0 + %s14703_s15]]   ;;  %s14707_s15 = smov 19  }
  0x15   :  { %s14842_s27 = sld [smem:[%s16488_s0 + %s14704_s22]]   ;;  %s14708_s22 = smov 20  }
  0x16   :  { %s14847_s4 = sld [smem:[%s16488_s0 + %s14705_s28]]   ;;  %s14709_s28 = smov 21  }
  0x17   :  { %s14852_s21 = sld [smem:[%s16488_s0 + %s14706_s7]]   ;;  %s14710_s7 = smov 22  }
  0x18   :  { %s14857_s17 = sld [smem:[%s16488_s0 + %s14707_s15]]   ;;  %s14711_s15 = smov 23  }
  0x19   :  { %s14862_s19 = sld [smem:[%s16488_s0 + %s14708_s22]]   ;;  %s14712_s22 = smov 24  }
  0x1c   :  { %16538 = sst [smem:[#allocation7_spill]] %s14847_s4 }
  0x1d   :  { %16539 = sst [smem:[#allocation8_spill]] %s14852_s21 }
  0x1e   :  { %16540 = sst [smem:[#allocation9_spill]] %s14857_s17 }
  0x1f   :  { %16541 = sst [smem:[#allocation10_spill]] %s14862_s19 }
  0x20   :  { %s14867_s4 = sld [smem:[%s16488_s0 + %s14709_s28]]   ;;  %s14713_s28 = smov 25  }
  0x21   :  { %s14872_s21 = sld [smem:[%s16488_s0 + %s14710_s7]]   ;;  %s14714_s7 = smov 26  }
  0x22   :  { %s14877_s17 = sld [smem:[%s16488_s0 + %s14711_s15]]   ;;  %s14715_s15 = smov 27  }
  0x23   :  { %s14882_s19 = sld [smem:[%s16488_s0 + %s14712_s22]]   ;;  %s14716_s22 = smov 28  }
  0x26   :  { %16542 = sst [smem:[#allocation11_spill]] %s14867_s4 }
  0x27   :  { %16543 = sst [smem:[#allocation12_spill]] %s14872_s21 }
  0x28   :  { %16544 = sst [smem:[#allocation13_spill]] %s14877_s17 }
  0x29   :  { %16545 = sst [smem:[#allocation14_spill]] %s14882_s19 }
  0x2a   :  { %s14887_s4 = sld [smem:[%s16488_s0 + %s14713_s28]]   ;;  %s14717_s28 = smov 29  }
  0x2b   :  { %s14892_s21 = sld [smem:[%s16488_s0 + %s14714_s7]]   ;;  %s14718_s7 = smov 30  }
  0x2c   :  { %s14897_s17 = sld [smem:[%s16488_s0 + %s14715_s15]]   ;;  %s14719_s15 = smov 31  }
  0x2d   :  { %s14902_s19 = sld [smem:[%s16488_s0 + %s14716_s22]]   ;;  %s14720_s22 = smov 32  }
  0x30   :  { %16546 = sst [smem:[#allocation15_spill]] %s14887_s4 }
  0x31   :  { %16547 = sst [smem:[#allocation16_spill]] %s14892_s21 }
  0x32   :  { %16548 = sst [smem:[#allocation17_spill]] %s14897_s17 }
  0x33   :  { %16549 = sst [smem:[#allocation18_spill]] %s14902_s19 }
  0x34   :  { %s14907_s4 = sld [smem:[%s16488_s0 + %s14717_s28]]   ;;  %s14721_s28 = smov 33  }
  0x35   :  { %s14912_s21 = sld [smem:[%s16488_s0 + %s14718_s7]]   ;;  %s14722_s7 = smov 34  }
  0x36   :  { %s14917_s17 = sld [smem:[%s16488_s0 + %s14719_s15]]   ;;  %s14723_s15 = smov 35  }
  0x37   :  { %s14922_s19 = sld [smem:[%s16488_s0 + %s14720_s22]]   ;;  %s14724_s22 = smov 36  }
  0x3a   :  { %16550 = sst [smem:[#allocation19_spill]] %s14907_s4 }
  0x3b   :  { %16551 = sst [smem:[#allocation20_spill]] %s14912_s21 }
  0x3c   :  { %16552 = sst [smem:[#allocation21_spill]] %s14917_s17 }
  0x3d   :  { %16553 = sst [smem:[#allocation22_spill]] %s14922_s19 }
  0x3e   :  { %s14927_s4 = sld [smem:[%s16488_s0 + %s14721_s28]]   ;;  %s14725_s28 = smov 37  }
  0x3f   :  { %s14932_s21 = sld [smem:[%s16488_s0 + %s14722_s7]]   ;;  %s14726_s7 = smov 38  }
  0x40   :  { %s14937_s17 = sld [smem:[%s16488_s0 + %s14723_s15]]   ;;  %s14727_s15 = smov 39  }
  0x41   :  { %s14942_s19 = sld [smem:[%s16488_s0 + %s14724_s22]]   ;;  %s14728_s22 = smov 40  }
  0x44   :  { %16554 = sst [smem:[#allocation23_spill]] %s14927_s4 }
  0x45   :  { %16555 = sst [smem:[#allocation24_spill]] %s14932_s21 }
  0x46   :  { %16556 = sst [smem:[#allocation25_spill]] %s14937_s17 }
  0x47   :  { %16557 = sst [smem:[#allocation26_spill]] %s14942_s19 }
  0x48   :  { %s14947_s4 = sld [smem:[%s16488_s0 + %s14725_s28]]   ;;  %s14729_s28 = smov 41  }
  0x49   :  { %s14952_s21 = sld [smem:[%s16488_s0 + %s14726_s7]]   ;;  %s14730_s7 = smov 42  }
  0x4a   :  { %s14957_s17 = sld [smem:[%s16488_s0 + %s14727_s15]]   ;;  %s14731_s15 = smov 43  }
  0x4b   :  { %s14962_s19 = sld [smem:[%s16488_s0 + %s14728_s22]]   ;;  %s14732_s22 = smov 44  }
  0x4e   :  { %16558 = sst [smem:[#allocation27_spill]] %s14947_s4 }
  0x4f   :  { %16559 = sst [smem:[#allocation28_spill]] %s14952_s21 }
  0x50   :  { %16560 = sst [smem:[#allocation29_spill]] %s14957_s17 }
  0x51   :  { %16561 = sst [smem:[#allocation30_spill]] %s14962_s19 }
  0x52   :  { %s14967_s4 = sld [smem:[%s16488_s0 + %s14729_s28]]   ;;  %s14733_s28 = smov 45  }
  0x53   :  { %s14972_s21 = sld [smem:[%s16488_s0 + %s14730_s7]]   ;;  %s14734_s7 = smov 46  }
  0x54   :  { %s14977_s17 = sld [smem:[%s16488_s0 + %s14731_s15]]   ;;  %s14735_s15 = smov 47  }
  0x55   :  { %s14982_s19 = sld [smem:[%s16488_s0 + %s14732_s22]]   ;;  %s14736_s22 = smov 48  }
  0x58   :  { %16562 = sst [smem:[#allocation31_spill]] %s14967_s4 }
  0x59   :  { %16563 = sst [smem:[#allocation32_spill]] %s14972_s21 }
  0x5a   :  { %16564 = sst [smem:[#allocation33_spill]] %s14977_s17 }
  0x5b   :  { %16565 = sst [smem:[#allocation34_spill]] %s14982_s19 }
  0x5c   :  { %s14987_s4 = sld [smem:[%s16488_s0 + %s14733_s28]]   ;;  %s14737_s28 = smov 49  }
  0x5d   :  { %s14992_s21 = sld [smem:[%s16488_s0 + %s14734_s7]]   ;;  %s14738_s7 = smov 50  }
  0x5e   :  { %s14997_s17 = sld [smem:[%s16488_s0 + %s14735_s15]]   ;;  %s14739_s15 = smov 51  }
  0x5f   :  { %s15002_s19 = sld [smem:[%s16488_s0 + %s14736_s22]]   ;;  %s14740_s22 = smov 52  }
  0x62   :  { %16566 = sst [smem:[#allocation35_spill]] %s14987_s4 }
  0x63   :  { %16567 = sst [smem:[#allocation36_spill]] %s14992_s21 }
  0x64   :  { %16568 = sst [smem:[#allocation37_spill]] %s14997_s17 }
  0x65   :  { %16569 = sst [smem:[#allocation38_spill]] %s15002_s19 }
  0x66   :  { %s15007_s4 = sld [smem:[%s16488_s0 + %s14737_s28]]   ;;  %s14741_s28 = smov 53  }
  0x67   :  { %s15012_s21 = sld [smem:[%s16488_s0 + %s14738_s7]]   ;;  %s14742_s7 = smov 54  }
  0x68   :  { %s15017_s17 = sld [smem:[%s16488_s0 + %s14739_s15]]   ;;  %s14743_s15 = smov 55  }
  0x69   :  { %s15022_s19 = sld [smem:[%s16488_s0 + %s14740_s22]]   ;;  %s14744_s22 = smov 56  }
  0x6c   :  { %16570 = sst [smem:[#allocation39_spill]] %s15007_s4 }
  0x6d   :  { %16571 = sst [smem:[#allocation40_spill]] %s15012_s21 }
  0x6e   :  { %16572 = sst [smem:[#allocation41_spill]] %s15017_s17 }
  0x6f   :  { %16573 = sst [smem:[#allocation42_spill]] %s15022_s19 }
  0x70   :  { %s15027_s4 = sld [smem:[%s16488_s0 + %s14741_s28]]   ;;  %s14745_s28 = smov 57  }
  0x71   :  { %s15032_s21 = sld [smem:[%s16488_s0 + %s14742_s7]]   ;;  %s14746_s7 = smov 58  }
  0x72   :  { %s15037_s17 = sld [smem:[%s16488_s0 + %s14743_s15]]   ;;  %s14747_s15 = smov 59  }
  0x73   :  { %s15042_s19 = sld [smem:[%s16488_s0 + %s14744_s22]]   ;;  %s14748_s22 = smov 60  }
  0x76   :  { %16574 = sst [smem:[#allocation43_spill]] %s15027_s4 }
  0x77   :  { %16575 = sst [smem:[#allocation44_spill]] %s15032_s21 }
  0x78   :  { %16576 = sst [smem:[#allocation45_spill]] %s15037_s17 }
  0x79   :  { %16577 = sst [smem:[#allocation46_spill]] %s15042_s19 }
  0x7a   :  { %s15047_s4 = sld [smem:[%s16488_s0 + %s14745_s28]]  }
  0x7b   :  { %s15052_s21 = sld [smem:[%s16488_s0 + %s14746_s7]]   ;;  %s15067_s7 = smov 0  }
  0x7c   :  { %s15057_s17 = sld [smem:[%s16488_s0 + %s14747_s15]]  }
  0x7d   :  { %s11895_s19 = sld [smem:[%s16488_s0 + %s14748_s22]]  }
  0x80   :  { %16578 = sst [smem:[#allocation47_spill]] %s15047_s4 }
  0x81   :  { %s15065_s4 = sld [smem:[%s16488_s0 + %s14749_s1]]  }
  0x83   :  { %v128_v0 = vstv %s11895_s19 }
  0x84   :  { %129 = vst [vmem:[#allocation2] sm:$0x1] %v128_v0 }
  0x85 LB: > { %s16579_s3 = sld [smem:[#allocation5_spill]]  ;;  %s11897_s10 = sadd.s32 4294967295, %s14687_s7   ;;  %s14687_s7 = sphi %s15067_s7, %s135_s7  }
  0x86   : > { %p11901_p0 = scmp.ge.s32.totalorder %s14687_s7, 1  ;;  %p1686_p1 = scmp.lt.s32.totalorder %s14687_s7, 3 }
  0x88   : > { %p1687_p2 = pnand %p11901_p0, %p1686_p1 }
  0x89   : > { %v1900_v1 = vld [vmem:[%s14787_s25 + $0x80] sm:$0xff] (!%p1687_p2)  ;;  %v1901_v2 = vld [vmem:[%s14787_s25 + $0x88] sm:$0xff] (!%p1687_p2)  ;;  %v1902_v12 = vld [vmem:[%s14787_s25 + $0x90] sm:$0xff] (!%p1687_p2)  ;;  %p15101_p3 = scmp.lt.s32.totalorder (!%p1687_p2), %s11897_s10, 1  ;;  %vm14751_vm0 = vmmov (!%p1687_p2), 0   ;;  %vm2807_vm1 = vcmask (!%p1687_p2), 261120  }
  0x8a   : > { %1690 = sbr.rel (%p1687_p2) target bundleno = 9678 (0x25ce), region = 264  ;;  %v1884_v3 = vld [vmem:[%s14787_s25] sm:$0xff] (!%p1687_p2)  ;;  %v13844_v4 = vpack.c.bf16 (!%p1687_p2), %v1901_v2, %v1900_v1  ;;  %v1885_v5 = vld [vmem:[%s14787_s25 + $0x8] sm:$0xff] (!%p1687_p2)  ;;  %v1903_v14 = vld [vmem:[%s14787_s25 + $0x98] sm:$0xff] (!%p1687_p2)  ;;  %vm3699_vm2 = vcmask (!%p1687_p2), 64512   ;;  %s16581_s18 = sld [smem:[#allocation7_spill]] (!%p1687_p2) }
  0x8b   : > { %v1932_v6 = vld [vmem:[%s14787_s25 + $0x180] sm:$0xff] (!%p1687_p2)  ;;  %v1933_v7 = vld [vmem:[%s14787_s25 + $0x188] sm:$0xff] (!%p1687_p2)  ;;  %v13846_v8 = vpack.c.bf16 (!%p1687_p2), %v1885_v5, %v1884_v3  ;;  %v1886_v15 = vld [vmem:[%s14787_s25 + $0x10] sm:$0xff] (!%p1687_p2)  ;;  %v13848_v17 = vpack.c.bf16 (!%p1687_p2), %v1903_v14, %v1902_v12  ;;  %s16582_s22 = sld [smem:[#allocation8_spill]] (!%p1687_p2)  ;;  %s16583_s23 = sld [smem:[#allocation11_spill]] (!%p1687_p2)  ;;  %vm11021_vm3 = vcmask (!%p1687_p2), 57344  }
  0x8c   : > { %v13876_v9 = vpack.c.bf16 (!%p1687_p2), %v1933_v7, %v1932_v6  ;;  %v1916_v10 = vld [vmem:[%s14787_s25 + $0x100] sm:$0xff] (!%p1687_p2)  ;;  %v1917_v11 = vld [vmem:[%s14787_s25 + $0x108] sm:$0xff] (!%p1687_p2)  ;;  %13845 = vmatprep.subr.bf16.mxu0 (!%p1687_p2), %v13844_v4  ;;  %v1887_v16 = vld [vmem:[%s14787_s25 + $0x18] sm:$0xff] (!%p1687_p2)  ;;  %s16584_s26 = sld [smem:[#allocation13_spill]] (!%p1687_p2)  ;;  %s16585_s1 = sld [smem:[#allocation9_spill]] (!%p1687_p2)  ;;  %vm11439_vm4 = vcmask (!%p1687_p2), 516096  }
  0x8d   : > { %v13878_v13 = vpack.c.bf16 (!%p1687_p2), %v1917_v11, %v1916_v10  ;;  %13847 = vmatpush3.bf16.msra.mxu0 (!%p1687_p2), %v13846_v8  ;;  %v13850_v18 = vpack.c.bf16 (!%p1687_p2), %v1887_v16, %v1886_v15  ;;  %v1934_v19 = vld [vmem:[%s14787_s25 + $0x190] sm:$0xff] (!%p1687_p2)  ;;  %v1935_v20 = vld [vmem:[%s14787_s25 + $0x198] sm:$0xff] (!%p1687_p2)  ;;  %v1904_v24 = vld [vmem:[%s14787_s25 + $0xa0] sm:$0xff] (!%p1687_p2)  ;;  %s16586_s28 = sld [smem:[#allocation10_spill]] (!%p1687_p2)  ;;  %s16587_s2 = sld [smem:[#allocation12_spill]] (!%p1687_p2)  ;;  %vm11484_vm5 = vcmask (!%p1687_p2), 523264  }
  0x8e   : > { %13877 = vmatprep.subr.bf16.mxu1 (!%p1687_p2), %v13876_v9  ;;  %v1918_v21 = vld [vmem:[%s14787_s25 + $0x110] sm:$0xff] (!%p1687_p2)  ;;  %v13880_v22 = vpack.c.bf16 (!%p1687_p2), %v1935_v20, %v1934_v19  ;;  %v1919_v23 = vld [vmem:[%s14787_s25 + $0x118] sm:$0xff] (!%p1687_p2)  ;;  %v1905_v25 = vld [vmem:[%s14787_s25 + $0xa8] sm:$0xff] (!%p1687_p2)  ;;  %13849 = vmatprep.subr.bf16.mxu0 (!%p1687_p2), %v13848_v17  ;;  %s16588_s0 = sld [smem:[#allocation14_spill]] (!%p1687_p2) }
  0x8f   : > { %13879 = vmatpush3.bf16.msra.mxu1 (!%p1687_p2), %v13878_v13  ;;  %v13882_v26 = vpack.c.bf16 (!%p1687_p2), %v1919_v23, %v1918_v21  ;;  %v13852_v27 = vpack.c.bf16 (!%p1687_p2), %v1905_v25, %v1904_v24  ;;  %v1888_v28 = vld [vmem:[%s14787_s25 + $0x20] sm:$0xff] (!%p1687_p2)  ;;  %v1889_v29 = vld [vmem:[%s14787_s25 + $0x28] sm:$0xff] (!%p1687_p2)  ;;  %v1906_v36 = vld [vmem:[%s14787_s25 + $0xb0] sm:$0xff] (!%p1687_p2) }
  0x90   : > { %v1936_v30 = vld [vmem:[%s14787_s25 + $0x1a0] sm:$0xff] (!%p1687_p2)  ;;  %13881 = vmatprep.subr.bf16.mxu1 (!%p1687_p2), %v13880_v22  ;;  %v1937_v31 = vld [vmem:[%s14787_s25 + $0x1a8] sm:$0xff] (!%p1687_p2)  ;;  %v13854_v34 = vpack.c.bf16 (!%p1687_p2), %v1889_v29, %v1888_v28  ;;  %v1907_v37 = vld [vmem:[%s14787_s25 + $0xb8] sm:$0xff] (!%p1687_p2) }
  0x91   : > { %v1920_v32 = vld [vmem:[%s14787_s25 + $0x120] sm:$0xff]  ;;  %v1921_v33 = vld [vmem:[%s14787_s25 + $0x128] sm:$0xff]  ;;  %13851 = vmatpush3.bf16.msra.mxu0 %v13850_v18  ;;  %v13884_v35 = vpack.c.bf16 %v1937_v31, %v1936_v30  ;;  %v1890_v38 = vld [vmem:[%s14787_s25 + $0x30] sm:$0xff]  ;;  %v13856_v40 = vpack.c.bf16 %v1907_v37, %v1906_v36  ;;  %s16626_s10 = smov (!%p15101_p3, %s11897_s10), 1 }
  0x92   : > { %13853 = vmatprep.subr.bf16.mxu0 %v13852_v27  ;;  %v13886_v39 = vpack.c.bf16 %v1921_v33, %v1920_v32  ;;  %v1891_v41 = vld [vmem:[%s14787_s25 + $0x38] sm:$0xff]  ;;  %v1938_v42 = vld [vmem:[%s14787_s25 + $0x1b0] sm:$0xff]  ;;  %v1908_v47 = vld [vmem:[%s14787_s25 + $0xc0] sm:$0xff]  ;;  %s12192_s19 = sshll.u32 %s16626_s10, 6  ;;  %s15541_s16 = scalar_lea.vmem %s14772_s13, %s16626_s10 }
  0x93   : > { %13883 = vmatpush3.bf16.msra.mxu1 %v13882_v26  ;;  %v1939_v43 = vld [vmem:[%s14787_s25 + $0x1b8] sm:$0xff]  ;;  %v1922_v45 = vld [vmem:[%s14787_s25 + $0x130] sm:$0xff]  ;;  %v1909_v48 = vld [vmem:[%s14787_s25 + $0xc8] sm:$0xff]  ;;  %v13858_v49 = vpack.c.bf16 %v1891_v41, %v1890_v38  ;;  %s15141_s11 = scalar_lea.vmem %s14762_s5, %s12192_s19  ;;  %s15244_s15 = scalar_lea.vmem %s14767_s9, %s12192_s19 }
  0x94   : > { %13885 = vmatprep.subr.bf16.mxu1 %v13884_v35  ;;  %v13888_v44 = vpack.c.bf16 %v1939_v43, %v1938_v42  ;;  %v1923_v46 = vld [vmem:[%s14787_s25 + $0x138] sm:$0xff]  ;;  %v1940_v50 = vld [vmem:[%s14787_s25 + $0x1c0] sm:$0xff]  ;;  %v1941_v51 = vld [vmem:[%s14787_s25 + $0x1c8] sm:$0xff]  ;;  %v13860_v53 = vpack.c.bf16 %v1909_v48, %v1908_v47  ;;  %s16589_s19 = sld [smem:[#allocation15_spill]] }
  0x95   : > { %13855 = vmatpush3.bf16.msra.mxu0 %v13854_v34  ;;  %v13890_v52 = vpack.c.bf16 %v1923_v46, %v1922_v45  ;;  %v1892_v54 = vld [vmem:[%s14787_s25 + $0x40] sm:$0xff]  ;;  %v1893_v55 = vld [vmem:[%s14787_s25 + $0x48] sm:$0xff]  ;;  %v13892_v57 = vpack.c.bf16 %v1941_v51, %v1940_v50  ;;  %v1910_v59 = vld [vmem:[%s14787_s25 + $0xd0] sm:$0xff] }
  0x96   : > { %13857 = vmatprep.subr.bf16.mxu0 %v13856_v40  ;;  %v1924_v56 = vld [vmem:[%s14787_s25 + $0x140] sm:$0xff]  ;;  %v1925_v58 = vld [vmem:[%s14787_s25 + $0x148] sm:$0xff]  ;;  %v1911_v60 = vld [vmem:[%s14787_s25 + $0xd8] sm:$0xff]  ;;  %v13862_v63 = vpack.c.bf16 %v1893_v55, %v1892_v54 }
  0x97   : > { %13887 = vmatpush3.bf16.msra.mxu1 %v13886_v39  ;;  %v1942_v61 = vld [vmem:[%s14787_s25 + $0x1d0] sm:$0xff]  ;;  %v1943_v62 = vld [vmem:[%s14787_s25 + $0x1d8] sm:$0xff]  ;;  %v13894_v0 = vpack.c.bf16 %v1925_v58, %v1924_v56  ;;  %v13864_v1 = vpack.c.bf16 %v1911_v60, %v1910_v59  ;;  %v1912_v7 = vld [vmem:[%s14787_s25 + $0xe0] sm:$0xff] }
  0x98   : > { %13889 = vmatprep.subr.bf16.mxu1 %v13888_v44  ;;  %v1894_v2 = vld [vmem:[%s14787_s25 + $0x50] sm:$0xff]  ;;  %v1895_v3 = vld [vmem:[%s14787_s25 + $0x58] sm:$0xff]  ;;  %v13896_v5 = vpack.c.bf16 %v1943_v62, %v1942_v61  ;;  %v1913_v8 = vld [vmem:[%s14787_s25 + $0xe8] sm:$0xff] }
  0x99   : > { %13859 = vmatpush3.bf16.msra.mxu0 %v13858_v49  ;;  %v1926_v4 = vld [vmem:[%s14787_s25 + $0x150] sm:$0xff]  ;;  %v1927_v6 = vld [vmem:[%s14787_s25 + $0x158] sm:$0xff]  ;;  %v1944_v9 = vld [vmem:[%s14787_s25 + $0x1e0] sm:$0xff]  ;;  %v13866_v11 = vpack.c.bf16 %v1895_v3, %v1894_v2  ;;  %v13868_v14 = vpack.c.bf16 %v1913_v8, %v1912_v7 }
  0x9a   : > { %13861 = vmatprep.subr.bf16.mxu0 %v13860_v53  ;;  %v1945_v10 = vld [vmem:[%s14787_s25 + $0x1e8] sm:$0xff]  ;;  %v1896_v12 = vld [vmem:[%s14787_s25 + $0x60] sm:$0xff]  ;;  %v13898_v13 = vpack.c.bf16 %v1927_v6, %v1926_v4  ;;  %v1914_v20 = vld [vmem:[%s14787_s25 + $0xf0] sm:$0xff] }
  0x9b   : > { %13891 = vmatpush3.bf16.msra.mxu1 %v13890_v52  ;;  %v1897_v15 = vld [vmem:[%s14787_s25 + $0x68] sm:$0xff]  ;;  %v1928_v16 = vld [vmem:[%s14787_s25 + $0x160] sm:$0xff]  ;;  %v13900_v18 = vpack.c.bf16 %v1945_v10, %v1944_v9  ;;  %v1915_v21 = vld [vmem:[%s14787_s25 + $0xf8] sm:$0xff] }
  0x9c   : > { %13893 = vmatprep.subr.bf16.mxu1 %v13892_v57  ;;  %v1863_v17 = vld [vmem:[%s15141_s11 + $0x8] sm:$0xff]  ;;  %v1946_v22 = vld [vmem:[%s14787_s25 + $0x1f0] sm:$0xff]  ;;  %v1947_v23 = vld [vmem:[%s14787_s25 + $0x1f8] sm:$0xff]  ;;  %v13870_v25 = vpack.c.bf16 %v1897_v15, %v1896_v12  ;;  %v13872_v27 = vpack.c.bf16 %v1915_v21, %v1914_v20 }
  0x9d   : > { %13863 = vmatpush3.bf16.msra.mxu0 %v13862_v63  ;;  %v1929_v19 = vld [vmem:[%s14787_s25 + $0x168] sm:$0xff]  ;;  %2083 = vmatprep.mubr.f32.mxu0 %v1863_v17  ;;  %v1865_v24 = vld [vmem:[%s15141_s11 + $0x18] sm:$0xff]  ;;  %v1898_v28 = vld [vmem:[%s14787_s25 + $0x70] sm:$0xff]  ;;  %v13904_v31 = vpack.c.bf16 %v1947_v23, %v1946_v22 }
  0x9e   : > { %13865 = vmatprep.subr.bf16.mxu0 %v13864_v1  ;;  %2153 = vmatprep.mubr.f32.mxu1 %v1865_v24  ;;  %v13902_v26 = vpack.c.bf16 %v1929_v19, %v1928_v16  ;;  %v1899_v29 = vld [vmem:[%s14787_s25 + $0x78] sm:$0xff]  ;;  %v1930_v30 = vld [vmem:[%s14787_s25 + $0x170] sm:$0xff]  ;;  %v1964_v33 = vld [vmem:[%s14787_s25 + $0x280] sm:$0xff] }
  0x9f   : > { %13895 = vmatpush3.bf16.msra.mxu1 %v13894_v0  ;;  %v1931_v32 = vld [vmem:[%s14787_s25 + $0x178] sm:$0xff]  ;;  %v1965_v34 = vld [vmem:[%s14787_s25 + $0x288] sm:$0xff]  ;;  %v1996_v35 = vld [vmem:[%s14787_s25 + $0x380] sm:$0xff]  ;;  %v13874_v37 = vpack.c.bf16 %v1899_v29, %v1898_v28 }
  0xa0   : > { %13897 = vmatprep.subr.bf16.mxu1 %v13896_v5  ;;  %v1997_v36 = vld [vmem:[%s14787_s25 + $0x388] sm:$0xff]  ;;  %v13906_v38 = vpack.c.bf16 %v1931_v32, %v1930_v30  ;;  %v13908_v39 = vpack.c.bf16 %v1965_v34, %v1964_v33  ;;  %v1948_v40 = vld [vmem:[%s14787_s25 + $0x200] sm:$0xff]  ;;  %v1966_v45 = vld [vmem:[%s14787_s25 + $0x290] sm:$0xff] }
  0xa1   : > { %13867 = vmatpush3.bf16.msra.mxu0 %v13866_v11  ;;  %v1949_v41 = vld [vmem:[%s14787_s25 + $0x208] sm:$0xff]  ;;  %v1980_v42 = vld [vmem:[%s14787_s25 + $0x300] sm:$0xff]  ;;  %v13940_v43 = vpack.c.bf16 %v1997_v36, %v1996_v35  ;;  %v1967_v46 = vld [vmem:[%s14787_s25 + $0x298] sm:$0xff] }
  0xa2   : > { %13869 = vmatprep.subr.bf16.mxu0 %v13868_v14  ;;  %v1981_v44 = vld [vmem:[%s14787_s25 + $0x308] sm:$0xff]  ;;  %v1998_v47 = vld [vmem:[%s14787_s25 + $0x390] sm:$0xff]  ;;  %v1999_v48 = vld [vmem:[%s14787_s25 + $0x398] sm:$0xff]  ;;  %v13910_v50 = vpack.c.bf16 %v1949_v41, %v1948_v40  ;;  %v13912_v53 = vpack.c.bf16 %v1967_v46, %v1966_v45 }
  0xa3   : > { %13899 = vmatpush3.bf16.msra.mxu1 %v13898_v13  ;;  %v1862_v49 = vld [vmem:[%s15141_s11] sm:$0xff]  ;;  %v1864_v51 = vld [vmem:[%s15141_s11 + $0x10] sm:$0xff]  ;;  %v13942_v52 = vpack.c.bf16 %v1981_v44, %v1980_v42  ;;  %v1951_v55 = vld [vmem:[%s14787_s25 + $0x218] sm:$0xff]  ;;  %v13944_v57 = vpack.c.bf16 %v1999_v48, %v1998_v47 }
  0xa4   : > { %13901 = vmatprep.subr.bf16.mxu1 %v13900_v18  ;;  %v1950_v54 = vld [vmem:[%s14787_s25 + $0x210] sm:$0xff]  ;;  %v1983_v58 = vld [vmem:[%s14787_s25 + $0x318] sm:$0xff]  ;;  %v1968_v59 = vld [vmem:[%s14787_s25 + $0x2a0] sm:$0xff] }
  0xa5   : > { %13871 = vmatpush3.bf16.msra.mxu0 %v13870_v25  ;;  %v1982_v56 = vld [vmem:[%s14787_s25 + $0x310] sm:$0xff]  ;;  %v1969_v60 = vld [vmem:[%s14787_s25 + $0x2a8] sm:$0xff]  ;;  %v2000_v61 = vld [vmem:[%s14787_s25 + $0x3a0] sm:$0xff]  ;;  %v13914_v63 = vpack.c.bf16 %v1951_v55, %v1950_v54 }
  0xa6   : > { %13873 = vmatprep.subr.bf16.mxu0 %v13872_v27  ;;  %v2001_v62 = vld [vmem:[%s14787_s25 + $0x3a8] sm:$0xff]  ;;  %v13946_v0 = vpack.c.bf16 %v1983_v58, %v1982_v56  ;;  %v13916_v1 = vpack.c.bf16 %v1969_v60, %v1968_v59  ;;  %v1952_v2 = vld [vmem:[%s14787_s25 + $0x220] sm:$0xff]  ;;  %v1970_v7 = vld [vmem:[%s14787_s25 + $0x2b0] sm:$0xff] }
  0xa7   : > { %13903 = vmatpush3.bf16.msra.mxu1 %v13902_v26  ;;  %v1953_v3 = vld [vmem:[%s14787_s25 + $0x228] sm:$0xff]  ;;  %v1984_v4 = vld [vmem:[%s14787_s25 + $0x320] sm:$0xff]  ;;  %v13948_v5 = vpack.c.bf16 %v2001_v62, %v2000_v61  ;;  %v1971_v8 = vld [vmem:[%s14787_s25 + $0x2b8] sm:$0xff] }
  0xa8   : > { %13905 = vmatprep.subr.bf16.mxu1 %v13904_v31  ;;  %v1985_v6 = vld [vmem:[%s14787_s25 + $0x328] sm:$0xff]  ;;  %v2002_v9 = vld [vmem:[%s14787_s25 + $0x3b0] sm:$0xff]  ;;  %v2003_v10 = vld [vmem:[%s14787_s25 + $0x3b8] sm:$0xff]  ;;  %v13918_v11 = vpack.c.bf16 %v1953_v3, %v1952_v2  ;;  %v13920_v13 = vpack.c.bf16 %v1971_v8, %v1970_v7 }
  0xa9   : > { %13875 = vmatpush3.bf16.msra.mxu0 %v13874_v37  ;;  %v13950_v12 = vpack.c.bf16 %v1985_v6, %v1984_v4  ;;  %v1954_v14 = vld [vmem:[%s14787_s25 + $0x230] sm:$0xff]  ;;  %v1955_v15 = vld [vmem:[%s14787_s25 + $0x238] sm:$0xff]  ;;  %v13952_v17 = vpack.c.bf16 %v2003_v10, %v2002_v9  ;;  %v1972_v19 = vld [vmem:[%s14787_s25 + $0x2c0] sm:$0xff] }
  0xaa   : > { %13909 = vmatprep.subr.bf16.mxu0 %v13908_v39  ;;  %v1986_v16 = vld [vmem:[%s14787_s25 + $0x330] sm:$0xff]  ;;  %v1987_v18 = vld [vmem:[%s14787_s25 + $0x338] sm:$0xff]  ;;  %v1973_v20 = vld [vmem:[%s14787_s25 + $0x2c8] sm:$0xff]  ;;  %v13922_v23 = vpack.c.bf16 %v1955_v15, %v1954_v14 }
  0xab   : > { %13907 = vmatpush3.bf16.msra.mxu1 %v13906_v38  ;;  %v2004_v21 = vld [vmem:[%s14787_s25 + $0x3c0] sm:$0xff]  ;;  %v2005_v22 = vld [vmem:[%s14787_s25 + $0x3c8] sm:$0xff]  ;;  %v13954_v26 = vpack.c.bf16 %v1987_v18, %v1986_v16  ;;  %v13924_v27 = vpack.c.bf16 %v1973_v20, %v1972_v19  ;;  %v1869_v30 = vld [vmem:[%s15141_s11 + $0x38] sm:$0xff] }
  0xac   : > { %13941 = vmatprep.subr.bf16.mxu1 %v13940_v43  ;;  %2084 = vmatmul.mubr.f32.vlgmr.msra.gmra.mrb[0].mxu0 %v1862_v49  ;;  %v1956_v24 = vld [vmem:[%s14787_s25 + $0x240] sm:$0xff]  ;;  %v1867_v25 = vld [vmem:[%s15141_s11 + $0x28] sm:$0xff]  ;;  %v13956_v31 = vpack.c.bf16 %v2005_v22, %v2004_v21  ;;  %v1974_v33 = vld [vmem:[%s14787_s25 + $0x2d0] sm:$0xff] }
  0xad   : > { %13911 = vmatpush3.bf16.msra.mxu0 %v13910_v50  ;;  %v1957_v28 = vld [vmem:[%s14787_s25 + $0x248] sm:$0xff]  ;;  %v1988_v29 = vld [vmem:[%s14787_s25 + $0x340] sm:$0xff]  ;;  %v1975_v34 = vld [vmem:[%s14787_s25 + $0x2d8] sm:$0xff]  ;;  %2223 = vmatprep.mubr.f32.mxu0 %v1867_v25 }
  0xae   : > { %2154 = vmatmul.mubr.f32.vlgmr.msra.gmra.mrb[0].mxu1 %v1864_v51  ;;  %13913 = vmatprep.subr.bf16.mxu0 %v13912_v53  ;;  %v1989_v32 = vld [vmem:[%s14787_s25 + $0x348] sm:$0xff]  ;;  %v2006_v35 = vld [vmem:[%s14787_s25 + $0x3d0] sm:$0xff]  ;;  %v2007_v36 = vld [vmem:[%s14787_s25 + $0x3d8] sm:$0xff]  ;;  %v13926_v37 = vpack.c.bf16 %v1957_v28, %v1956_v24  ;;  %v13928_v39 = vpack.c.bf16 %v1975_v34, %v1974_v33 }
  0xaf   : > { %13943 = vmatpush3.bf16.msra.mxu1 %v13942_v52  ;;  %2293 = vmatprep.mubr.f32.mxu1 %v1869_v30  ;;  %v13958_v38 = vpack.c.bf16 %v1989_v32, %v1988_v29  ;;  %v1958_v40 = vld [vmem:[%s14787_s25 + $0x250] sm:$0xff]  ;;  %v1959_v41 = vld [vmem:[%s14787_s25 + $0x258] sm:$0xff]  ;;  %v13960_v43 = vpack.c.bf16 %v2007_v36, %v2006_v35  ;;  %v1976_v45 = vld [vmem:[%s14787_s25 + $0x2e0] sm:$0xff] }
  0xb0   : > { %13945 = vmatprep.subr.bf16.mxu1 %v13944_v57  ;;  %v1990_v42 = vld [vmem:[%s14787_s25 + $0x350] sm:$0xff]  ;;  %v1991_v44 = vld [vmem:[%s14787_s25 + $0x358] sm:$0xff]  ;;  %v1977_v46 = vld [vmem:[%s14787_s25 + $0x2e8] sm:$0xff]  ;;  %v13930_v49 = vpack.c.bf16 %v1959_v41, %v1958_v40 }
  0xb1   : > { %13915 = vmatpush3.bf16.msra.mxu0 %v13914_v63  ;;  %v2008_v47 = vld [vmem:[%s14787_s25 + $0x3e0] sm:$0xff]  ;;  %v2009_v48 = vld [vmem:[%s14787_s25 + $0x3e8] sm:$0xff]  ;;  %v13962_v50 = vpack.c.bf16 %v1991_v44, %v1990_v42  ;;  %v13932_v51 = vpack.c.bf16 %v1977_v46, %v1976_v45  ;;  %v1978_v57 = vld [vmem:[%s14787_s25 + $0x2f0] sm:$0xff] }
  0xb2   : > { %13917 = vmatprep.subr.bf16.mxu0 %v13916_v1  ;;  %v1960_v52 = vld [vmem:[%s14787_s25 + $0x260] sm:$0xff]  ;;  %v1961_v53 = vld [vmem:[%s14787_s25 + $0x268] sm:$0xff]  ;;  %v13964_v55 = vpack.c.bf16 %v2009_v48, %v2008_v47  ;;  %v1979_v58 = vld [vmem:[%s14787_s25 + $0x2f8] sm:$0xff] }
  0xb3   : > { %13947 = vmatpush3.bf16.msra.mxu1 %v13946_v0  ;;  %v1992_v54 = vld [vmem:[%s14787_s25 + $0x360] sm:$0xff]  ;;  %v1993_v56 = vld [vmem:[%s14787_s25 + $0x368] sm:$0xff]  ;;  %v2010_v59 = vld [vmem:[%s14787_s25 + $0x3f0] sm:$0xff]  ;;  %v13934_v61 = vpack.c.bf16 %v1961_v53, %v1960_v52  ;;  %v13936_v63 = vpack.c.bf16 %v1979_v58, %v1978_v57 }
  0xb4   : > { %13949 = vmatprep.subr.bf16.mxu1 %v13948_v5  ;;  %v2011_v60 = vld [vmem:[%s14787_s25 + $0x3f8] sm:$0xff]  ;;  %v13966_v62 = vpack.c.bf16 %v1993_v56, %v1992_v54  ;;  %v1962_v0 = vld [vmem:[%s14787_s25 + $0x270] sm:$0xff]  ;;  %v2317_v5 = vld [vmem:[%s16579_s3 + $0x80] sm:$0xff] }
  0xb5   : > { %13919 = vmatpush3.bf16.msra.mxu0 %v13918_v11  ;;  %v1963_v1 = vld [vmem:[%s14787_s25 + $0x278] sm:$0xff]  ;;  %v1994_v2 = vld [vmem:[%s14787_s25 + $0x370] sm:$0xff]  ;;  %v13968_v3 = vpack.c.bf16 %v2011_v60, %v2010_v59  ;;  %v2318_v6 = vld [vmem:[%s16579_s3 + $0x88] sm:$0xff] }
  0xb6   : > { %13921 = vmatprep.subr.bf16.mxu0 %v13920_v13  ;;  %v1995_v4 = vld [vmem:[%s14787_s25 + $0x378] sm:$0xff]  ;;  %v2349_v7 = vld [vmem:[%s16579_s3 + $0x180] sm:$0xff]  ;;  %v2350_v8 = vld [vmem:[%s16579_s3 + $0x188] sm:$0xff]  ;;  %v13938_v9 = vpack.c.bf16 %v1963_v1, %v1962_v0  ;;  %v13972_v11 = vpack.c.bf16 %v2318_v6, %v2317_v5 }
  0xb7   : > { %13951 = vmatpush3.bf16.msra.mxu1 %v13950_v12  ;;  %v13970_v10 = vpack.c.bf16 %v1995_v4, %v1994_v2  ;;  %v2301_v12 = vld [vmem:[%s16579_s3] sm:$0xff]  ;;  %v2302_v13 = vld [vmem:[%s16579_s3 + $0x8] sm:$0xff]  ;;  %v14004_v15 = vpack.c.bf16 %v2350_v8, %v2349_v7  ;;  %v2320_v18 = vld [vmem:[%s16579_s3 + $0x98] sm:$0xff] }
  0xb8   : > { %13953 = vmatprep.subr.bf16.mxu1 %v13952_v17  ;;  %v2333_v14 = vld [vmem:[%s16579_s3 + $0x100] sm:$0xff]  ;;  %v2334_v16 = vld [vmem:[%s16579_s3 + $0x108] sm:$0xff]  ;;  %v2319_v17 = vld [vmem:[%s16579_s3 + $0x90] sm:$0xff] }
  0xb9   : > { %13923 = vmatpush3.bf16.msra.mxu0 %v13922_v23  ;;  %v2351_v19 = vld [vmem:[%s16579_s3 + $0x190] sm:$0xff]  ;;  %v2352_v20 = vld [vmem:[%s16579_s3 + $0x198] sm:$0xff]  ;;  %v1866_v21 = vld [vmem:[%s15141_s11 + $0x20] sm:$0xff]  ;;  %v13974_v23 = vpack.c.bf16 %v2302_v13, %v2301_v12  ;;  %v14006_v24 = vpack.c.bf16 %v2334_v16, %v2333_v14  ;;  %v13976_v25 = vpack.c.bf16 %v2320_v18, %v2319_v17 }
  0xba   : > { %13925 = vmatprep.subr.bf16.mxu0 %v13924_v27  ;;  %v1868_v22 = vld [vmem:[%s15141_s11 + $0x30] sm:$0xff]  ;;  %v2304_v27 = vld [vmem:[%s16579_s3 + $0x18] sm:$0xff]  ;;  %v14008_v29 = vpack.c.bf16 %v2352_v20, %v2351_v19  ;;  %v2322_v32 = vld [vmem:[%s16579_s3 + $0xa8] sm:$0xff]  ;;  %s16590_s11 = sld [smem:[#allocation16_spill]] }
  0xbb   : > { %13955 = vmatpush3.bf16.msra.mxu1 %v13954_v26  ;;  %v2303_v26 = vld [vmem:[%s16579_s3 + $0x10] sm:$0xff]  ;;  %v2336_v30 = vld [vmem:[%s16579_s3 + $0x118] sm:$0xff]  ;;  %v2353_v33 = vld [vmem:[%s16579_s3 + $0x1a0] sm:$0xff] }
  0xbc   : > { %13957 = vmatprep.subr.bf16.mxu1 %v13956_v31  ;;  %v2335_v28 = vld [vmem:[%s16579_s3 + $0x110] sm:$0xff]  ;;  %v2321_v31 = vld [vmem:[%s16579_s3 + $0xa0] sm:$0xff]  ;;  %v2354_v34 = vld [vmem:[%s16579_s3 + $0x1a8] sm:$0xff]  ;;  %v13978_v36 = vpack.c.bf16 %v2304_v27, %v2303_v26 }
  0xbd   : > { %13927 = vmatpush3.bf16.msra.mxu0 %v13926_v37  ;;  %v1871_v35 = vld [vmem:[%s15244_s15 + $0x8] sm:$0xff]  ;;  %v2305_v37 = vld [vmem:[%s16579_s3 + $0x20] sm:$0xff]  ;;  %v1873_v42 = vld [vmem:[%s15244_s15 + $0x18] sm:$0xff] }
  0xbe   : > { %13929 = vmatprep.subr.bf16.mxu0 %v13928_v39  ;;  %v13980_v39 = vpack.c.bf16 %v2322_v32, %v2321_v31  ;;  %v2306_v40 = vld [vmem:[%s16579_s3 + $0x28] sm:$0xff]  ;;  %v2337_v41 = vld [vmem:[%s16579_s3 + $0x120] sm:$0xff]  ;;  %v2323_v45 = vld [vmem:[%s16579_s3 + $0xb0] sm:$0xff] }
  0xbf   : > { %13959 = vmatpush3.bf16.msra.mxu1 %v13958_v38  ;;  %v14010_v38 = vpack.c.bf16 %v2336_v30, %v2335_v28  ;;  %v2338_v44 = vld [vmem:[%s16579_s3 + $0x128] sm:$0xff]  ;;  %v2324_v46 = vld [vmem:[%s16579_s3 + $0xb8] sm:$0xff]  ;;  %v2355_v47 = vld [vmem:[%s16579_s3 + $0x1b0] sm:$0xff] }
  0xc0   : > { %13961 = vmatprep.subr.bf16.mxu1 %v13960_v43  ;;  %v14012_v43 = vpack.c.bf16 %v2354_v34, %v2353_v33  ;;  %v2356_v48 = vld [vmem:[%s16579_s3 + $0x1b8] sm:$0xff]  ;;  %v2307_v52 = vld [vmem:[%s16579_s3 + $0x30] sm:$0xff]  ;;  %v2325_v57 = vld [vmem:[%s16579_s3 + $0xc0] sm:$0xff] }
  0xc1   : > { %13931 = vmatpush3.bf16.msra.mxu0 %v13930_v49  ;;  %v13982_v49 = vpack.c.bf16 %v2306_v40, %v2305_v37  ;;  %v2308_v53 = vld [vmem:[%s16579_s3 + $0x38] sm:$0xff]  ;;  %v2339_v54 = vld [vmem:[%s16579_s3 + $0x130] sm:$0xff]  ;;  %v2326_v58 = vld [vmem:[%s16579_s3 + $0xc8] sm:$0xff] }
  0xc2   : > { %13933 = vmatprep.subr.bf16.mxu0 %v13932_v51  ;;  %v13984_v51 = vpack.c.bf16 %v2324_v46, %v2323_v45  ;;  %v2340_v56 = vld [vmem:[%s16579_s3 + $0x138] sm:$0xff]  ;;  %v2357_v59 = vld [vmem:[%s16579_s3 + $0x1c0] sm:$0xff]  ;;  %v2358_v60 = vld [vmem:[%s16579_s3 + $0x1c8] sm:$0xff] }
  0xc3   : > { %13963 = vmatpush3.bf16.msra.mxu1 %v13962_v50  ;;  %v14014_v50 = vpack.c.bf16 %v2338_v44, %v2337_v41  ;;  %v2309_v0 = vld [vmem:[%s16579_s3 + $0x40] sm:$0xff]  ;;  %v2310_v1 = vld [vmem:[%s16579_s3 + $0x48] sm:$0xff]  ;;  %v2327_v5 = vld [vmem:[%s16579_s3 + $0xd0] sm:$0xff] }
  0xc4   : > { %13965 = vmatprep.subr.bf16.mxu1 %v13964_v55  ;;  %v14016_v55 = vpack.c.bf16 %v2356_v48, %v2355_v47  ;;  %v2341_v2 = vld [vmem:[%s16579_s3 + $0x140] sm:$0xff]  ;;  %v2342_v4 = vld [vmem:[%s16579_s3 + $0x148] sm:$0xff]  ;;  %v2328_v6 = vld [vmem:[%s16579_s3 + $0xd8] sm:$0xff] }
  0xc5   : > { %13935 = vmatpush3.bf16.msra.mxu0 %v13934_v61  ;;  %v13986_v61 = vpack.c.bf16 %v2308_v53, %v2307_v52  ;;  %v2359_v7 = vld [vmem:[%s16579_s3 + $0x1d0] sm:$0xff]  ;;  %v2360_v8 = vld [vmem:[%s16579_s3 + $0x1d8] sm:$0xff]  ;;  %v2329_v17 = vld [vmem:[%s16579_s3 + $0xe0] sm:$0xff] }
  0xc6   : > { %13937 = vmatprep.subr.bf16.mxu0 %v13936_v63  ;;  %v13988_v63 = vpack.c.bf16 %v2326_v58, %v2325_v57  ;;  %v2311_v12 = vld [vmem:[%s16579_s3 + $0x50] sm:$0xff]  ;;  %v2312_v13 = vld [vmem:[%s16579_s3 + $0x58] sm:$0xff]  ;;  %v2330_v18 = vld [vmem:[%s16579_s3 + $0xe8] sm:$0xff] }
  0xc7   : > { %13967 = vmatpush3.bf16.msra.mxu1 %v13966_v62  ;;  %v14018_v62 = vpack.c.bf16 %v2340_v56, %v2339_v54  ;;  %v2343_v14 = vld [vmem:[%s16579_s3 + $0x150] sm:$0xff]  ;;  %v2344_v16 = vld [vmem:[%s16579_s3 + $0x158] sm:$0xff]  ;;  %v2361_v19 = vld [vmem:[%s16579_s3 + $0x1e0] sm:$0xff] }
  0xc8   : > { %13969 = vmatprep.subr.bf16.mxu1 %v13968_v3  ;;  %v14020_v3 = vpack.c.bf16 %v2358_v60, %v2357_v59  ;;  %v2362_v20 = vld [vmem:[%s16579_s3 + $0x1e8] sm:$0xff]  ;;  %v2345_v26 = vld [vmem:[%s16579_s3 + $0x160] sm:$0xff]  ;;  %v2332_v30 = vld [vmem:[%s16579_s3 + $0xf8] sm:$0xff] }
  0xc9   : > { %13939 = vmatpush3.bf16.msra.mxu0 %v13938_v9  ;;  %v13990_v9 = vpack.c.bf16 %v2310_v1, %v2309_v0  ;;  %v14028_v27 = vpack.c.bf16 %v2362_v20, %v2361_v19  ;;  %v2346_v28 = vld [vmem:[%s16579_s3 + $0x168] sm:$0xff]  ;;  %v2363_v31 = vld [vmem:[%s16579_s3 + $0x1f0] sm:$0xff]  ;;  %v2364_v32 = vld [vmem:[%s16579_s3 + $0x1f8] sm:$0xff] }
  0xca   : > { %13973 = vmatprep.subr.bf16.mxu0 %v13972_v11  ;;  %v13992_v11 = vpack.c.bf16 %v2328_v6, %v2327_v5  ;;  %v14030_v34 = vpack.c.bf16 %v2346_v28, %v2345_v26  ;;  %v2316_v37 = vld [vmem:[%s16579_s3 + $0x78] sm:$0xff]  ;;  %v2381_v41 = vld [vmem:[%s16579_s3 + $0x280] sm:$0xff]  ;;  %v2414_v44 = vld [vmem:[%s16579_s3 + $0x388] sm:$0xff] }
  0xcb   : > { %13971 = vmatpush3.bf16.msra.mxu1 %v13970_v10  ;;  %v14022_v10 = vpack.c.bf16 %v2342_v4, %v2341_v2  ;;  %v2348_v40 = vld [vmem:[%s16579_s3 + $0x178] sm:$0xff]  ;;  %v2365_v48 = vld [vmem:[%s16579_s3 + $0x200] sm:$0xff]  ;;  %v2398_v52 = vld [vmem:[%s16579_s3 + $0x308] sm:$0xff] }
  0xcc   : > { %14005 = vmatprep.subr.bf16.mxu1 %v14004_v15  ;;  %2224 = vmatmul.mubr.f32.vlgmr.msra.gmra.mrb[2].mxu0 %v1866_v21  ;;  %v14024_v15 = vpack.c.bf16 %v2360_v8, %v2359_v7  ;;  %v13994_v21 = vpack.c.bf16 %v2312_v13, %v2311_v12  ;;  %v2383_v53 = vld [vmem:[%s16579_s3 + $0x290] sm:$0xff]  ;;  %v2384_v54 = vld [vmem:[%s16579_s3 + $0x298] sm:$0xff]  ;;  %v1870_v57 = vld [vmem:[%s15244_s15] sm:$0xff] }
  0xcd   : > { %13975 = vmatpush3.bf16.msra.mxu0 %v13974_v23  ;;  %2500 = vmatprep.mubr.f32.mxu0 %v1871_v35  ;;  %v13996_v23 = vpack.c.bf16 %v2330_v18, %v2329_v17  ;;  %v2416_v56 = vld [vmem:[%s16579_s3 + $0x398] sm:$0xff]  ;;  %v1872_v59 = vld [vmem:[%s15244_s15 + $0x10] sm:$0xff]  ;;  %v2386_v4 = vld [vmem:[%s16579_s3 + $0x2a8] sm:$0xff] }
  0xce   : > { %2294 = vmatmul.mubr.f32.vlgmr.msra.gmra.mrb[2].mxu1 %v1868_v22  ;;  %13977 = vmatprep.subr.bf16.mxu0 %v13976_v25  ;;  %v14026_v22 = vpack.c.bf16 %v2344_v16, %v2343_v14  ;;  %v2314_v25 = vld [vmem:[%s16579_s3 + $0x68] sm:$0xff]  ;;  %v2399_v0 = vld [vmem:[%s16579_s3 + $0x310] sm:$0xff]  ;;  %v2400_v2 = vld [vmem:[%s16579_s3 + $0x318] sm:$0xff] }
  0xcf   : > { %14007 = vmatpush3.bf16.msra.mxu1 %v14006_v24  ;;  %2570 = vmatprep.mubr.f32.mxu1 %v1873_v42  ;;  %v2313_v24 = vld [vmem:[%s16579_s3 + $0x60] sm:$0xff]  ;;  %v2382_v42 = vld [vmem:[%s16579_s3 + $0x288] sm:$0xff]  ;;  %v14074_v8 = vpack.c.bf16 %v2400_v2, %v2399_v0  ;;  %v2388_v16 = vld [vmem:[%s16579_s3 + $0x2b8] sm:$0xff] }
  0xd0   : > { %14009 = vmatprep.subr.bf16.mxu1 %v14008_v29  ;;  %v2331_v29 = vld [vmem:[%s16579_s3 + $0xf0] sm:$0xff]  ;;  %v13998_v33 = vpack.c.bf16 %v2314_v25, %v2313_v24  ;;  %v14036_v47 = vpack.c.bf16 %v2382_v42, %v2381_v41  ;;  %v2417_v5 = vld [vmem:[%s16579_s3 + $0x3a0] sm:$0xff]  ;;  %v2418_v6 = vld [vmem:[%s16579_s3 + $0x3a8] sm:$0xff] }
  0xd1   : > { %13979 = vmatpush3.bf16.msra.mxu0 %v13978_v36  ;;  %v14000_v35 = vpack.c.bf16 %v2332_v30, %v2331_v29  ;;  %v2315_v36 = vld [vmem:[%s16579_s3 + $0x70] sm:$0xff]  ;;  %v2401_v12 = vld [vmem:[%s16579_s3 + $0x320] sm:$0xff]  ;;  %v14076_v13 = vpack.c.bf16 %v2418_v6, %v2417_v5  ;;  %v2402_v14 = vld [vmem:[%s16579_s3 + $0x328] sm:$0xff] }
  0xd2   : > { %13981 = vmatprep.subr.bf16.mxu0 %v13980_v39  ;;  %v14032_v39 = vpack.c.bf16 %v2364_v32, %v2363_v31  ;;  %v14002_v45 = vpack.c.bf16 %v2316_v37, %v2315_v36  ;;  %v2419_v17 = vld [vmem:[%s16579_s3 + $0x3b0] sm:$0xff]  ;;  %v2420_v18 = vld [vmem:[%s16579_s3 + $0x3b8] sm:$0xff]  ;;  %v14078_v20 = vpack.c.bf16 %v2402_v14, %v2401_v12  ;;  %v2390_v28 = vld [vmem:[%s16579_s3 + $0x2c8] sm:$0xff] }
  0xd3   : > { %14011 = vmatpush3.bf16.msra.mxu1 %v14010_v38  ;;  %v2347_v38 = vld [vmem:[%s16579_s3 + $0x170] sm:$0xff]  ;;  %v14080_v25 = vpack.c.bf16 %v2420_v18, %v2419_v17  ;;  %v2404_v26 = vld [vmem:[%s16579_s3 + $0x338] sm:$0xff]  ;;  %v2421_v29 = vld [vmem:[%s16579_s3 + $0x3c0] sm:$0xff] }
  0xd4   : > { %14013 = vmatprep.subr.bf16.mxu1 %v14012_v43  ;;  %v2413_v43 = vld [vmem:[%s16579_s3 + $0x380] sm:$0xff]  ;;  %v14034_v46 = vpack.c.bf16 %v2348_v40, %v2347_v38  ;;  %v2403_v24 = vld [vmem:[%s16579_s3 + $0x330] sm:$0xff]  ;;  %v2422_v30 = vld [vmem:[%s16579_s3 + $0x3c8] sm:$0xff] }
  0xd5   : > { %13983 = vmatpush3.bf16.msra.mxu0 %v13982_v49  ;;  %v2366_v49 = vld [vmem:[%s16579_s3 + $0x208] sm:$0xff]  ;;  %v14082_v32 = vpack.c.bf16 %v2404_v26, %v2403_v24  ;;  %v2405_v36 = vld [vmem:[%s16579_s3 + $0x340] sm:$0xff]  ;;  %v14084_v37 = vpack.c.bf16 %v2422_v30, %v2421_v29  ;;  %v2392_v40 = vld [vmem:[%s16579_s3 + $0x2d8] sm:$0xff]  ;;  %v14752_v30 = vmov 0.0  }
  0xd6   : > { %13985 = vmatprep.subr.bf16.mxu0 %v13984_v51  ;;  %v14068_v51 = vpack.c.bf16 %v2414_v44, %v2413_v43  ;;  %v14038_v58 = vpack.c.bf16 %v2366_v49, %v2365_v48  ;;  %v2406_v38 = vld [vmem:[%s16579_s3 + $0x348] sm:$0xff]  ;;  %v2423_v41 = vld [vmem:[%s16579_s3 + $0x3d0] sm:$0xff]  ;;  %v2424_v42 = vld [vmem:[%s16579_s3 + $0x3d8] sm:$0xff] }
  0xd7   : > { %14015 = vmatpush3.bf16.msra.mxu1 %v14014_v50  ;;  %v2397_v50 = vld [vmem:[%s16579_s3 + $0x300] sm:$0xff]  ;;  %v14086_v44 = vpack.c.bf16 %v2406_v38, %v2405_v36  ;;  %v2407_v48 = vld [vmem:[%s16579_s3 + $0x350] sm:$0xff]  ;;  %v14088_v49 = vpack.c.bf16 %v2424_v42, %v2423_v41  ;;  %v2396_v0 = vld [vmem:[%s16579_s3 + $0x2f8] sm:$0xff] }
  0xd8   : > { %14017 = vmatprep.subr.bf16.mxu1 %v14016_v55  ;;  %v2415_v55 = vld [vmem:[%s16579_s3 + $0x390] sm:$0xff]  ;;  %v14070_v60 = vpack.c.bf16 %v2398_v52, %v2397_v50  ;;  %v2408_v50 = vld [vmem:[%s16579_s3 + $0x358] sm:$0xff]  ;;  %v2394_v52 = vld [vmem:[%s16579_s3 + $0x2e8] sm:$0xff] }
  0xd9   : > { %13987 = vmatpush3.bf16.msra.mxu0 %v13986_v61  ;;  %v14040_v61 = vpack.c.bf16 %v2384_v54, %v2383_v53  ;;  %v14072_v1 = vpack.c.bf16 %v2416_v56, %v2415_v55  ;;  %v2425_v53 = vld [vmem:[%s16579_s3 + $0x3e0] sm:$0xff]  ;;  %v2426_v54 = vld [vmem:[%s16579_s3 + $0x3e8] sm:$0xff]  ;;  %v14090_v56 = vpack.c.bf16 %v2408_v50, %v2407_v48  ;;  %v2428_v2 = vld [vmem:[%s16579_s3 + $0x3f8] sm:$0xff] }
  0xda   : > { %13989 = vmatprep.subr.bf16.mxu0 %v13988_v63  ;;  %v2368_v63 = vld [vmem:[%s16579_s3 + $0x218] sm:$0xff]  ;;  %v2379_v6 = vld [vmem:[%s16579_s3 + $0x270] sm:$0xff]  ;;  %v2718_v17 = vld [vmem:[%s14817_s24] sm:$0xff] }
  0xdb   : > { %14019 = vmatpush3.bf16.msra.mxu1 %v14018_v62  ;;  %v2367_v62 = vld [vmem:[%s16579_s3 + $0x210] sm:$0xff]  ;;  %v1877_v12 = vld [vmem:[%s15244_s15 + $0x38] sm:$0xff]  ;;  %v2719_v18 = vld [vmem:[%s14817_s24 + $0x8] sm:$0xff] }
  0xdc   : > { %14021 = vmatprep.subr.bf16.mxu1 %v14020_v3  ;;  %v2385_v3 = vld [vmem:[%s16579_s3 + $0x2a0] sm:$0xff]  ;;  %v14042_v7 = vpack.c.bf16 %v2368_v63, %v2367_v62  ;;  %v2410_v62 = vld [vmem:[%s16579_s3 + $0x368] sm:$0xff]  ;;  %v2395_v63 = vld [vmem:[%s16579_s3 + $0x2f0] sm:$0xff] }
  0xdd   : > { %13991 = vmatpush3.bf16.msra.mxu0 %v13990_v9  ;;  %v14044_v9 = vpack.c.bf16 %v2386_v4, %v2385_v3  ;;  %v14064_v5 = vpack.c.bf16 %v2396_v0, %v2395_v63  ;;  %v2720_v24 = vld [vmem:[%s14817_s24 + $0x10] sm:$0xff]  ;;  %v2723_v48 = vld [vmem:[%s14817_s24 + $0x28] sm:$0xff]  ;;  %v2750_v0 = vld [vmem:[%s14827_s6 + $0x60] sm:$0xff] }
  0xde   : > { %13993 = vmatprep.subr.bf16.mxu0 %v13992_v11  ;;  %v2370_v11 = vld [vmem:[%s16579_s3 + $0x228] sm:$0xff]  ;;  %v2732_v26 = vld [vmem:[%s14817_s24 + $0x70] sm:$0xff] }
  0xdf   : > { %14023 = vmatpush3.bf16.msra.mxu1 %v14022_v10  ;;  %v2369_v10 = vld [vmem:[%s16579_s3 + $0x220] sm:$0xff]  ;;  %v2743_v50 = vld [vmem:[%s14827_s6 + $0x28] sm:$0xff] }
  0xe0   : > { %14025 = vmatprep.subr.bf16.mxu1 %v14024_v15  ;;  %v2387_v15 = vld [vmem:[%s16579_s3 + $0x2b0] sm:$0xff]  ;;  %v14046_v19 = vpack.c.bf16 %v2370_v11, %v2369_v10  ;;  %v2412_v11 = vld [vmem:[%s16579_s3 + $0x378] sm:$0xff]  ;;  %v2727_v63 = vld [vmem:[%s14817_s24 + $0x48] sm:$0xff] }
  0xe1   : > { %13995 = vmatpush3.bf16.msra.mxu0 %v13994_v21  ;;  %v14048_v21 = vpack.c.bf16 %v2388_v16, %v2387_v15  ;;  %v2411_v10 = vld [vmem:[%s16579_s3 + $0x370] sm:$0xff]  ;;  %v1874_v15 = vld [vmem:[%s15244_s15 + $0x20] sm:$0xff] }
  0xe2   : > { %13997 = vmatprep.subr.bf16.mxu0 %v13996_v23  ;;  %v2372_v23 = vld [vmem:[%s16579_s3 + $0x238] sm:$0xff]  ;;  %v14098_v14 = vpack.c.bf16 %v2412_v11, %v2411_v10  ;;  %v1876_v16 = vld [vmem:[%s15244_s15 + $0x30] sm:$0xff]  ;;  %v2738_v10 = vld [vmem:[%s14827_s6] sm:$0xff] }
  0xe3   : > { %14027 = vmatpush3.bf16.msra.mxu1 %v14026_v22  ;;  %v2371_v22 = vld [vmem:[%s16579_s3 + $0x230] sm:$0xff]  ;;  %v2739_v11 = vld [vmem:[%s14827_s6 + $0x8] sm:$0xff] }
  0xe4   : > { %14029 = vmatprep.subr.bf16.mxu1 %v14028_v27  ;;  %v2389_v27 = vld [vmem:[%s16579_s3 + $0x2c0] sm:$0xff]  ;;  %v14050_v31 = vpack.c.bf16 %v2372_v23, %v2371_v22  ;;  %v14750_v22 = vmov 0.0|0.0  }
  0xe5   : > { %13999 = vmatpush3.bf16.msra.mxu0 %v13998_v33  ;;  %v14052_v33 = vpack.c.bf16 %v2390_v28, %v2389_v27  ;;  %v2733_v28 = vld [vmem:[%s14817_s24 + $0x78] sm:$0xff] }
  0xe6   : > { %14001 = vmatprep.subr.bf16.mxu0 %v14000_v35  ;;  %v2374_v35 = vld [vmem:[%s16579_s3 + $0x248] sm:$0xff]  ;;  %v14122_v29 = vpack.c.bf16 %v2733_v28, %v2732_v26 }
  0xe7   : > { %14031 = vmatpush3.bf16.msra.mxu1 %v14030_v34  ;;  %v2373_v34 = vld [vmem:[%s16579_s3 + $0x240] sm:$0xff]  ;;  %v2771_v26 = vld [vmem:[%s14837_s20 + $0x68] sm:$0xff] }
  0xe8   : > { %14033 = vmatprep.subr.bf16.mxu1 %v14032_v39  ;;  %v2391_v39 = vld [vmem:[%s16579_s3 + $0x2d0] sm:$0xff]  ;;  %v14054_v43 = vpack.c.bf16 %v2374_v35, %v2373_v34 }
  0xe9   : > { %14003 = vmatpush3.bf16.msra.mxu0 %v14002_v45  ;;  %v14056_v45 = vpack.c.bf16 %v2392_v40, %v2391_v39 }
  0xea   : > { %14037 = vmatprep.subr.bf16.mxu0 %v14036_v47  ;;  %v2376_v47 = vld [vmem:[%s16579_s3 + $0x258] sm:$0xff] }
  0xeb   : > { %14035 = vmatpush3.bf16.msra.mxu1 %v14034_v46  ;;  %v2375_v46 = vld [vmem:[%s16579_s3 + $0x250] sm:$0xff] }
  0xec   : > { %14069 = vmatprep.subr.bf16.mxu1 %v14068_v51  ;;  %2501 = vmatmul.mubr.f32.vlgmr.msra.gmra.mrb[4].mxu0 %v1870_v57  ;;  %v2393_v51 = vld [vmem:[%s16579_s3 + $0x2e0] sm:$0xff]  ;;  %v14058_v55 = vpack.c.bf16 %v2376_v47, %v2375_v46 }
  0xed   : > { %14039 = vmatpush3.bf16.msra.mxu0 %v14038_v58  ;;  %v14060_v57 = vpack.c.bf16 %v2394_v52, %v2393_v51  ;;  %v2377_v58 = vld [vmem:[%s16579_s3 + $0x260] sm:$0xff] }
  0xee   : > { %2571 = vmatmul.mubr.f32.vlgmr.msra.gmra.mrb[4].mxu1 %v1872_v59  ;;  %14041 = vmatprep.subr.bf16.mxu0 %v14040_v61  ;;  %v2378_v59 = vld [vmem:[%s16579_s3 + $0x268] sm:$0xff]  ;;  %v14092_v61 = vpack.c.bf16 %v2426_v54, %v2425_v53  ;;  %v2722_v46 = vld [vmem:[%s14817_s24 + $0x20] sm:$0xff] }
  0xef   : > { %14071 = vmatpush3.bf16.msra.mxu1 %v14070_v60  ;;  %v2409_v60 = vld [vmem:[%s16579_s3 + $0x360] sm:$0xff]  ;;  %v14062_v3 = vpack.c.bf16 %v2378_v59, %v2377_v58  ;;  %2710 = vmatprep.mubr.f32.mxu1 %v1877_v12  ;;  %v14107_v53 = vpack.c.bf16 %v2723_v48, %v2722_v46  ;;  %v2744_v58 = vld [vmem:[%s14827_s6 + $0x30] sm:$0xff]  ;;  %v2745_v59 = vld [vmem:[%s14827_s6 + $0x38] sm:$0xff] }
  0xf0   : > { %14073 = vmatprep.subr.bf16.mxu1 %v14072_v1  ;;  %v2427_v1 = vld [vmem:[%s16579_s3 + $0x3f0] sm:$0xff]  ;;  %v14094_v4 = vpack.c.bf16 %v2410_v62, %v2409_v60  ;;  %v2299_v51 = vld [vmem:[%s14807_s14] sm:$0xff] }
  0xf1   : > { %14043 = vmatpush3.bf16.msra.mxu0 %v14042_v7  ;;  %v2380_v7 = vld [vmem:[%s16579_s3 + $0x278] sm:$0xff]  ;;  %v2726_v62 = vld [vmem:[%s14817_s24 + $0x40] sm:$0xff]  ;;  %v2760_v48 = vld [vmem:[%s14837_s20 + $0x10] sm:$0xff]  ;;  %s16595_s3 = sld [smem:[#allocation17_spill]] }
  0xf2   : > { %14045 = vmatprep.subr.bf16.mxu0 %v14044_v9  ;;  %v14096_v9 = vpack.c.bf16 %v2428_v2, %v2427_v1  ;;  %v2751_v1 = vld [vmem:[%s14827_s6 + $0x68] sm:$0xff]  ;;  %v14113_v2 = vpack.c.bf16 %v2727_v63, %v2726_v62  ;;  %v2762_v12 = vld [vmem:[%s14837_s20 + $0x20] sm:$0xff] }
  0xf3   : > { %14075 = vmatpush3.bf16.msra.mxu1 %v14074_v8  ;;  %v1875_v8 = vld [vmem:[%s15244_s15 + $0x28] sm:$0xff]  ;;  %s16591_s15 = sld [smem:[#allocation19_spill]] }
  0xf4   : > { %14077 = vmatprep.subr.bf16.mxu1 %v14076_v13  ;;  %2640 = vmatprep.mubr.f32.mxu0 %v1875_v8  ;;  %v14066_v13 = vpack.c.bf16 %v2380_v7, %v2379_v6  ;;  %v2752_v6 = vld [vmem:[%s14827_s6 + $0x70] sm:$0xff]  ;;  %v2753_v7 = vld [vmem:[%s14827_s6 + $0x78] sm:$0xff] }
  0xf5   : > { %14047 = vmatpush3.bf16.msra.mxu0 %v14046_v19  ;;  %v2730_v19 = vld [vmem:[%s14817_s24 + $0x60] sm:$0xff] }
  0xf6   : > { %14049 = vmatprep.subr.bf16.mxu0 %v14048_v21  ;;  %v2731_v21 = vld [vmem:[%s14817_s24 + $0x68] sm:$0xff] }
  0xf7   : > { %14079 = vmatpush3.bf16.msra.mxu1 %v14078_v20  ;;  %v14101_v20 = vpack.c.bf16 %v2719_v18, %v2718_v17  ;;  %v14119_v23 = vpack.c.bf16 %v2731_v21, %v2730_v19  ;;  %v2741_v17 = vld [vmem:[%s14827_s6 + $0x18] sm:$0xff]  ;;  %v2764_v18 = vld [vmem:[%s14837_s20 + $0x30] sm:$0xff] }
  0xf8   : > { %14081 = vmatprep.subr.bf16.mxu1 %v14080_v25  ;;  %v2721_v25 = vld [vmem:[%s14817_s24 + $0x18] sm:$0xff] }
  0xf9   : > { %14051 = vmatpush3.bf16.msra.mxu0 %v14050_v31  ;;  %v14104_v27 = vpack.c.bf16 %v2721_v25, %v2720_v24  ;;  %v2765_v19 = vld [vmem:[%s14837_s20 + $0x38] sm:$0xff]  ;;  %v2747_v24 = vld [vmem:[%s14827_s6 + $0x48] sm:$0xff]  ;;  %v2770_v25 = vld [vmem:[%s14837_s20 + $0x60] sm:$0xff] }
  0xfa   : > { %14053 = vmatprep.subr.bf16.mxu0 %v14052_v33  ;;  %v14158_v21 = vpack.c.bf16 %v2765_v19, %v2764_v18  ;;  %v14167_v28 = vpack.c.bf16 %v2771_v26, %v2770_v25 }
  0xfb   : > { %14083 = vmatpush3.bf16.msra.mxu1 %v14082_v32  ;;  %v11907_v32 = vld [vmem:[%s14792_s29] ss:$0 sm:$0xff] }
  0xfc   : > { %14085 = vmatprep.subr.bf16.mxu1 %v14084_v37 }
  0xfd   : > { %14055 = vmatpush3.bf16.msra.mxu0 %v14054_v43 }
  0xfe   : > { %14057 = vmatprep.subr.bf16.mxu0 %v14056_v45 }
  0xff   : > { %14087 = vmatpush3.bf16.msra.mxu1 %v14086_v44 }
 0x100   : > { %14089 = vmatprep.subr.bf16.mxu1 %v14088_v49  ;;  %v2742_v49 = vld [vmem:[%s14827_s6 + $0x20] sm:$0xff] }
 0x101   : > { %14059 = vmatpush3.bf16.msra.mxu0 %v14058_v55  ;;  %v14131_v54 = vpack.c.bf16 %v2743_v50, %v2742_v49  ;;  %v2724_v55 = vld [vmem:[%s14817_s24 + $0x30] sm:$0xff]  ;;  %v2761_v49 = vld [vmem:[%s14837_s20 + $0x18] sm:$0xff] }
 0x102   : > { %14061 = vmatprep.subr.bf16.mxu0 %v14060_v57  ;;  %v2725_v57 = vld [vmem:[%s14817_s24 + $0x38] sm:$0xff]  ;;  %v14152_v50 = vpack.c.bf16 %v2761_v49, %v2760_v48 }
 0x103   : > { %14091 = vmatpush3.bf16.msra.mxu1 %v14090_v56  ;;  %v14110_v60 = vpack.c.bf16 %v2725_v57, %v2724_v55  ;;  %v2769_v55 = vld [vmem:[%s14837_s20 + $0x58] sm:$0xff] }
 0x104   : > { %14093 = vmatprep.subr.bf16.mxu1 %v14092_v61  ;;  %v14134_v61 = vpack.c.bf16 %v2745_v59, %v2744_v58 }
 0x105   : > { %14063 = vmatpush3.bf16.msra.mxu0 %v14062_v3  ;;  %v14143_v3 = vpack.c.bf16 %v2751_v1, %v2750_v0 }
 0x106   : > { %14065 = vmatprep.subr.bf16.mxu0 %v14064_v5  ;;  %v2729_v5 = vld [vmem:[%s14817_s24 + $0x58] sm:$0xff] }
 0x107   : > { %14095 = vmatpush3.bf16.msra.mxu1 %v14094_v4  ;;  %v2728_v4 = vld [vmem:[%s14817_s24 + $0x50] sm:$0xff] }
 0x108   : > { %14097 = vmatprep.subr.bf16.mxu1 %v14096_v9  ;;  %v14116_v8 = vpack.c.bf16 %v2729_v5, %v2728_v4  ;;  %v14146_v9 = vpack.c.bf16 %v2753_v7, %v2752_v6  ;;  %v11918_v6 = vld [vmem:[%s14832_s12 + $0x1] ss:$0 sm:$0xff] }
 0x109   : > { %14067 = vmatpush3.bf16.msra.mxu0 %v14066_v13  ;;  %v2763_v13 = vld [vmem:[%s14837_s20 + $0x28] sm:$0xff] }
 0x10a   : > { %14100 = vmatprep.subr.bf16.mxu0 %v14750_v22 }
 0x10b   : > { %14099 = vmatpush3.bf16.msra.mxu1 %v14098_v14  ;;  %v14125_v14 = vpack.c.bf16 %v2739_v11, %v2738_v10 }
 0x10c   : > { %2641 = vmatmul.mubr.f32.vlgmr.msra.gmra.mrb[6].mxu0 %v1874_v15  ;;  %14118 = vmatprep.subr.bf16.mxu1 %v14750_v22  ;;  %v14155_v15 = vpack.c.bf16 %v2763_v13, %v2762_v12 }
 0x10d   : > { %14102 = vmatpush3.bf16.msra.mxu0 %v14101_v20  ;;  %12903 = vmatprep.mubr.msk.f32.mxu0 %vm14751_vm0, %v14752_v30 }
 0x10e   : > { %2711 = vmatmul.mubr.f32.vlgmr.msra.gmra.mrb[6].mxu1 %v1876_v16  ;;  %14103 = vmatprep.subr.bf16.mxu0 %v14750_v22  ;;  %v2740_v16 = vld [vmem:[%s14827_s6 + $0x10] sm:$0xff] }
 0x10f   : > { %14120 = vmatpush3.bf16.msra.mxu1 %v14119_v23  ;;  %12936 = vmatprep.mubr.msk.f32.mxu1 %vm14751_vm0, %v14752_v30  ;;  %v14128_v20 = vpack.c.bf16 %v2741_v17, %v2740_v16  ;;  %v2746_v23 = vld [vmem:[%s14827_s6 + $0x40] sm:$0xff] }
 0x110   : > { %14121 = vmatprep.subr.bf16.mxu1 %v14750_v22  ;;  %v11912_v17 = vld [vmem:[%s14822_s30 + $0x3] ss:$0 sm:$0xff] }
 0x111   : > { %14105 = vmatpush3.bf16.msra.mxu0 %v14104_v27  ;;  %v14137_v27 = vpack.c.bf16 %v2747_v24, %v2746_v23  ;;  %v11917_v23 = vld [vmem:[%s14832_s12] ss:$0 sm:$0xff]  ;;  %v11926_v24 = vld [vmem:[%s14842_s27 + $0x1] ss:$0 sm:$0xff] }
 0x112   : > { %14106 = vmatprep.subr.bf16.mxu0 %v14750_v22 }
 0x113   : > { %14123 = vmatpush3.bf16.msra.mxu1 %v14122_v29  ;;  %v2748_v29 = vld [vmem:[%s14827_s6 + $0x50] sm:$0xff] }
 0x114   : > { %14130 = vmatprep.subr.bf16.mxu1 %v14750_v22 }
 0x17f   : > { %v12226_v31 = vpop.f32.mrb[0].mxu0 }
 0x180   : > { %v12227_v33 = vpop.f32.mrb[1].mxu0 }
 0x181   : > { %v12261_v34 = vpop.f32.mrb[0].mxu1  ;;  %v12228_v35 = vadd.f32 %v12227_v33, %v12226_v31  ;;  %v2749_v31 = vld [vmem:[%s14827_s6 + $0x58] sm:$0xff] }
 0x182   : > { %v12262_v36 = vpop.f32.mrb[1].mxu1  ;;  %v2773_v33 = vld [vmem:[%s14837_s20 + $0x78] sm:$0xff] }
 0x183   : > { %v12263_v37 = vadd.f32 %v12262_v36, %v12261_v34  ;;  %v2086_v38 = vadd.f32 %v12228_v35, %v11907_v32  ;;  %v2772_v32 = vld [vmem:[%s14837_s20 + $0x70] sm:$0xff]  ;;  %v11908_v35 = vld [vmem:[%s14802_s8] ss:$0 sm:$0xff] }
 0x185   : > { %v2156_v39 = vadd.f32 %v12263_v37, %v2086_v38 }
 0x19f   : > { %v12296_v40 = vpop.f32.mrb[2].mxu0 }
 0x1a0   : > { %v12297_v41 = vpop.f32.mrb[3].mxu0 }
 0x1a1   : > { %v12331_v42 = vpop.f32.mrb[2].mxu1  ;;  %v12298_v43 = vadd.f32 %v12297_v41, %v12296_v40  ;;  %v14140_v40 = vpack.c.bf16 %v2749_v31, %v2748_v29  ;;  %v14170_v41 = vpack.c.bf16 %v2773_v33, %v2772_v32 }
 0x1a2   : > { %v12332_v44 = vpop.f32.mrb[3].mxu1 }
 0x1a3   : > { %v12333_v45 = vadd.f32 %v12332_v44, %v12331_v42  ;;  %v2226_v47 = vadd.f32 %v12298_v43, %v2156_v39  ;;  %v2758_v43 = vld [vmem:[%s14837_s20] sm:$0xff]  ;;  %v2759_v44 = vld [vmem:[%s14837_s20 + $0x8] sm:$0xff] }
 0x1a5   : > { %v2296_v52 = vadd.f32 %v12333_v45, %v2226_v47  ;;  %v14149_v47 = vpack.c.bf16 %v2759_v44, %v2758_v43 }
 0x1a7   : > { %v15395_v56 = vadd.f32 %v2299_v51, %v2296_v52  ;;  %v2766_v51 = vld [vmem:[%s14837_s20 + $0x40] sm:$0xff]  ;;  %v2767_v52 = vld [vmem:[%s14837_s20 + $0x48] sm:$0xff] }
 0x1a9   : > { %12904 = vmatmul.mubr.msk.f32.vlgmr.msra.gmra.mrb[8].mxu0 %vm2807_vm1, %v15395_v56  ;;  %12937 = vmatmul.mubr.msk.f32.vlgmr.msra.gmra.mrb[8].mxu1 %vm2807_vm1, %v15395_v56 }
 0x1aa   : > { %14108 = vmatpush3.bf16.msra.mxu0 %v14107_v53  ;;  %14132 = vmatpush3.bf16.msra.mxu1 %v14131_v54  ;;  %v14161_v53 = vpack.c.bf16 %v2767_v52, %v2766_v51  ;;  %v2768_v54 = vld [vmem:[%s14837_s20 + $0x50] sm:$0xff] }
 0x1ab   : > { %14109 = vmatprep.subr.bf16.mxu0 %v14750_v22  ;;  %14133 = vmatprep.subr.bf16.mxu1 %v14750_v22  ;;  %v14164_v57 = vpack.c.bf16 %v2769_v55, %v2768_v54  ;;  %v1878_v54 = vld [vmem:[%s15541_s16] sm:$0x1] }
 0x1ac   : > { %12914 = vmatprep.mubr.msk.f32.mxu0 %vm14751_vm0, %v14752_v30  ;;  %12958 = vmatprep.mubr.msk.f32.mxu1 %vm14751_vm0, %v14752_v30  ;;  %v1880_v55 = vmul.f32 -1e+09, %v1878_v54 }
 0x1ae   : > { %14111 = vmatpush3.bf16.msra.mxu0 %v14110_v60  ;;  %14135 = vmatpush3.bf16.msra.mxu1 %v14134_v61 }
 0x1af   : > { %14112 = vmatprep.subr.bf16.mxu0 %v14750_v22  ;;  %14142 = vmatprep.subr.bf16.mxu1 %v14750_v22 }
 0x1b1   : > { %12915 = vmatmul.mubr.msk.f32.vlgmr.msra.gmra.mrb[10].mxu0 %vm2807_vm1, %v15395_v56  ;;  %12959 = vmatmul.mubr.msk.f32.vlgmr.msra.gmra.mrb[10].mxu1 %vm2807_vm1, %v15395_v56 }
 0x1b2   : > { %14114 = vmatpush3.bf16.msra.mxu0 %v14113_v2  ;;  %14144 = vmatpush3.bf16.msra.mxu1 %v14143_v3 }
 0x1b3   : > { %14115 = vmatprep.subr.bf16.mxu0 %v14750_v22  ;;  %14145 = vmatprep.subr.bf16.mxu1 %v14750_v22 }
 0x1b4   : > { %12925 = vmatprep.mubr.msk.f32.mxu0 %vm14751_vm0, %v14752_v30  ;;  %12980 = vmatprep.mubr.msk.f32.mxu1 %vm14751_vm0, %v14752_v30 }
 0x1b6   : > { %14117 = vmatpush3.bf16.msra.mxu0 %v14116_v8  ;;  %14147 = vmatpush3.bf16.msra.mxu1 %v14146_v9  ;;  %v11910_v9 = vld [vmem:[%s14822_s30 + $0x1] ss:$0 sm:$0xff] }
 0x1b7   : > { %14124 = vmatprep.subr.bf16.mxu0 %v14750_v22  ;;  %14154 = vmatprep.subr.bf16.mxu1 %v14750_v22 }
 0x1b9   : > { %12926 = vmatmul.mubr.msk.f32.vlgmr.msra.gmra.mrb[12].mxu0 %vm2807_vm1, %v15395_v56  ;;  %12981 = vmatmul.mubr.msk.f32.vlgmr.msra.gmra.mrb[12].mxu1 %vm2807_vm1, %v15395_v56 }
 0x1ba   : > { %14126 = vmatpush3.bf16.msra.mxu0 %v14125_v14  ;;  %14156 = vmatpush3.bf16.msra.mxu1 %v14155_v15  ;;  %v11920_v14 = vld [vmem:[%s14832_s12 + $0x3] ss:$0 sm:$0xff] }
 0x1bb   : > { %14127 = vmatprep.subr.bf16.mxu0 %v14750_v22  ;;  %14157 = vmatprep.subr.bf16.mxu1 %v14750_v22 }
 0x1bc   : > { %12947 = vmatprep.mubr.msk.f32.mxu0 %vm14751_vm0, %v14752_v30  ;;  %13002 = vmatprep.mubr.msk.f32.mxu1 %vm14751_vm0, %v14752_v30 }
 0x1be   : > { %14129 = vmatpush3.bf16.msra.mxu0 %v14128_v20  ;;  %14159 = vmatpush3.bf16.msra.mxu1 %v14158_v21 }
 0x1bf   : > { %14136 = vmatprep.subr.bf16.mxu0 %v14750_v22  ;;  %14166 = vmatprep.subr.bf16.mxu1 %v14750_v22  ;;  %v12366_v34 = vpop.f32.mrb[4].mxu0 }
 0x1c0   : > { %v12367_v36 = vpop.f32.mrb[5].mxu0 }
 0x1c1   : > { %v12401_v37 = vpop.f32.mrb[4].mxu1  ;;  %12948 = vmatmul.mubr.msk.f32.vlgmr.msra.gmra.mrb[14].mxu0 %vm2807_vm1, %v15395_v56  ;;  %13003 = vmatmul.mubr.msk.f32.vlgmr.msra.gmra.mrb[14].mxu1 %vm2807_vm1, %v15395_v56  ;;  %v12368_v38 = vadd.f32 %v12367_v36, %v12366_v34  ;;  %v11919_v34 = vld [vmem:[%s14832_s12 + $0x2] ss:$0 sm:$0xff] }
 0x1c2   : > { %v12402_v39 = vpop.f32.mrb[5].mxu1  ;;  %14138 = vmatpush3.bf16.msra.mxu0 %v14137_v27  ;;  %14168 = vmatpush3.bf16.msra.mxu1 %v14167_v28  ;;  %v11909_v27 = vld [vmem:[%s14822_s30] ss:$0 sm:$0xff] }
 0x1c3   : > { %v12403_v42 = vadd.f32 %v12402_v39, %v12401_v37  ;;  %14139 = vmatprep.subr.bf16.mxu0 %v14750_v22  ;;  %14169 = vmatprep.subr.bf16.mxu1 %v14750_v22  ;;  %v2503_v45 = vadd.f32 %v12368_v38, %v11908_v35  ;;  %v11911_v37 = vld [vmem:[%s14822_s30 + $0x2] ss:$0 sm:$0xff] }
 0x1c4   : > { %12969 = vmatprep.mubr.msk.f32.mxu0 %vm14751_vm0, %v14752_v30  ;;  %13024 = vmatprep.mubr.msk.f32.mxu1 %vm14751_vm0, %v14752_v30 }
 0x1c5   : > { %v2573_v46 = vadd.f32 %v12403_v42, %v2503_v45  ;;  %v11925_v42 = vld [vmem:[%s14842_s27] ss:$0 sm:$0xff] }
 0x1c6   : > { %14141 = vmatpush3.bf16.msra.mxu0 %v14140_v40  ;;  %14171 = vmatpush3.bf16.msra.mxu1 %v14170_v41 }
 0x1c7   : > { %14148 = vmatprep.subr.bf16.mxu0 %v14750_v22  ;;  %13032 = vmatprep.subr.mxu1 %v14752_v30 }
 0x1c9   : > { %12970 = vmatmul.mubr.msk.f32.vlgmr.msra.gmra.mrb[16].mxu0 %vm2807_vm1, %v15395_v56  ;;  %13025 = vmatmul.mubr.msk.f32.vlgmr.msra.gmra.mrb[16].mxu1 %vm2807_vm1, %v15395_v56 }
 0x1ca   : > { %14150 = vmatpush3.bf16.msra.mxu0 %v14149_v47  ;;  %12991 = vmatprep.mubr.msk.f32.mxu0 %vm14751_vm0, %v14752_v30 }
 0x1cb   : > { %14151 = vmatprep.subr.bf16.mxu0 %v14750_v22  ;;  %13034 = vmatprep.mubr.msk.f32.mxu1 %vm14751_vm0, %v14752_v30 }
 0x1ce   : > { %14153 = vmatpush3.bf16.msra.mxu0 %v14152_v50  ;;  %v4009_v50 = vlaneseq }
 0x1cf   : > { %14160 = vmatprep.subr.bf16.mxu0 %v14750_v22 }
 0x1d0   : > { %v15543_v52 = vshrl.u32 %v4009_v50, 7  ;;  %v2778_v50 = vld [vmem:[%s16581_s18] sm:$0xff] }
 0x1d1   : > { %12992 = vmatmul.mubr.msk.f32.vlgmr.msra.gmra.mrb[18].mxu0 %vm2807_vm1, %v15395_v56 }
 0x1d2   : > { %14162 = vmatpush3.bf16.msra.mxu0 %v14161_v53  ;;  %13013 = vmatprep.mubr.msk.f32.mxu0 %vm14751_vm0, %v14752_v30 }
 0x1d3   : > { %14163 = vmatprep.subr.bf16.mxu0 %v14750_v22 }
 0x1d6   : > { %14165 = vmatpush3.bf16.msra.mxu0 %v14164_v57  ;;  %v15547_v57 = vsub.s32 0, %v15543_v52 }
 0x1d7   : > { %13027 = vmatprep.subr.mxu0 %v14752_v30 }
 0x1d9   : > { %13014 = vmatmul.mubr.msk.f32.vlgmr.msra.gmra.mrb[20].mxu0 %vm2807_vm1, %v15395_v56 }
 0x1da   : > { %13029 = vmatprep.mubr.msk.f32.mxu0 %vm14751_vm0, %v14752_v30 }
 0x1df   : > { %v12436_v58 = vpop.f32.mrb[6].mxu0 }
 0x1e0   : > { %v12437_v59 = vpop.f32.mrb[7].mxu0 }
 0x1e1   : > { %v12471_v60 = vpop.f32.mrb[6].mxu1  ;;  %v12438_v61 = vadd.f32 %v12437_v59, %v12436_v58  ;;  %v15550_v59 = vrot.slane %v1880_v55, %v15547_v57 }
 0x1e2   : > { %v12472_v62 = vpop.f32.mrb[7].mxu1 }
 0x1e3   : > { %v12473_v63 = vadd.f32 %v12472_v62, %v12471_v60  ;;  %v2643_v0 = vadd.f32 %v12438_v61, %v2573_v46 }
 0x1e5   : > { %v15501_v1 = vadd.f32 %v12473_v63, %v2643_v0 }
 0x27c   : > { %v2877_v2 = vpop.f32.mrb[8].mxu0  ;;  %v3087_v3 = vpop.f32.mrb[8].mxu1 }
 0x27d   : > { %v12905_v4 = vpop.f32.mrb[9].mxu0  ;;  %v12938_v5 = vpop.f32.mrb[9].mxu1  ;;  %v3088_v21 = vadd.f32 %v11912_v17, %v3087_v3  ;;  %v2878_v33 = vadd.f32 %v11909_v27, %v2877_v2 }
 0x284   : > { %v2947_v7 = vpop.f32.mrb[10].mxu0  ;;  %v3251_v8 = vpop.f32.mrb[10].mxu1 }
 0x285   : > { %v3252_v10 = vadd.f32 %v11918_v6, %v3251_v8  ;;  %v12916_v11 = vpop.f32.mrb[11].mxu0  ;;  %v12960_v12 = vpop.f32.mrb[11].mxu1  ;;  %v2948_v13 = vadd.f32 %v11910_v9, %v2947_v7 }
 0x287   : > { %13033 = vmatpush3.xpose.msk.msra.mxu1 %vm3699_vm2, %v3252_v10 }
 0x288   : > { %13042 = vmatprep.subr.mxu1 %v14752_v30 }
 0x28a   : > { %13035 = vmatmul.mubr.msk.f32.vlgmr.msra.gmra.mrb[18].mxu1 %vm3699_vm2, %v2948_v13 }
 0x28b   : > { %13044 = vmatprep.mubr.msk.f32.mxu1 %vm14751_vm0, %v14752_v30 }
 0x28c   : > { %v3017_v15 = vpop.f32.mrb[12].mxu0  ;;  %v3391_v16 = vpop.f32.mrb[12].mxu1 }
 0x28d   : > { %v3392_v18 = vadd.f32 %v11920_v14, %v3391_v16  ;;  %v12927_v19 = vpop.f32.mrb[13].mxu0  ;;  %v12982_v20 = vpop.f32.mrb[13].mxu1  ;;  %v3018_v41 = vadd.f32 %v11911_v37, %v3017_v15 }
 0x28f   : > { %13043 = vmatpush3.xpose.msk.msra.mxu1 %vm3699_vm2, %v3392_v18 }
 0x290   : > { %13052 = vmatprep.subr.mxu1 %v14752_v30 }
 0x292   : > { %13045 = vmatmul.mubr.msk.f32.vlgmr.msra.gmra.mrb[20].mxu1 %vm3699_vm2, %v3088_v21 }
 0x293   : > { %13054 = vmatprep.mubr.msk.f32.mxu1 %vm14751_vm0, %v14752_v30 }
 0x294   : > { %v3181_v25 = vpop.f32.mrb[14].mxu0  ;;  %v3555_v26 = vpop.f32.mrb[14].mxu1 }
 0x295   : > { %v3182_v28 = vadd.f32 %v11917_v23, %v3181_v25  ;;  %v3556_v29 = vadd.f32 %v11926_v24, %v3555_v26  ;;  %v12949_v31 = vpop.f32.mrb[15].mxu0  ;;  %v13004_v32 = vpop.f32.mrb[15].mxu1 }
 0x297   : > { %13028 = vmatpush3.xpose.msk.msra.mxu0 %vm3699_vm2, %v3182_v28  ;;  %13053 = vmatpush3.msra.mxu1 %v3556_v29 }
 0x298   : > { %13037 = vmatprep.subr.mxu0 %v14752_v30  ;;  %13062 = vmatprep.subr.mxu1 %v14752_v30 }
 0x29a   : > { %13030 = vmatmul.mubr.msk.f32.vlgmr.msra.gmra.mrb[22].mxu0 %vm3699_vm2, %v2878_v33 }
 0x29b   : > { %13039 = vmatprep.mubr.msk.f32.mxu0 %vm14751_vm0, %v14752_v30 }
 0x29c   : > { %v3321_v35 = vpop.f32.mrb[16].mxu0  ;;  %v15527_v36 = vpop.f32.mrb[16].mxu1 }
 0x29d   : > { %v3322_v38 = vadd.f32 %v11919_v34, %v3321_v35  ;;  %v12971_v39 = vpop.f32.mrb[17].mxu0  ;;  %v13026_v40 = vpop.f32.mrb[17].mxu1 }
 0x29f   : > { %13038 = vmatpush3.xpose.msk.msra.mxu0 %vm3699_vm2, %v3322_v38  ;;  %v11927_v38 = vld [vmem:[%s14842_s27 + $0x2] ss:$0 sm:$0xff] }
 0x2a0   : > { %13047 = vmatprep.subr.mxu0 %v14752_v30 }
 0x2a2   : > { %13040 = vmatmul.mubr.msk.f32.vlgmr.msra.gmra.mrb[24].mxu0 %vm3699_vm2, %v3018_v41 }
 0x2a3   : > { %13049 = vmatprep.mubr.msk.f32.mxu0 %vm14751_vm0, %v14752_v30 }
 0x2a4   : > { %v3485_v43 = vpop.f32.mrb[18].mxu0 }
 0x2a5   : > { %v3486_v44 = vadd.f32 %v11925_v42, %v3485_v43  ;;  %v12993_v45 = vpop.f32.mrb[19].mxu0  ;;  %v11928_v43 = vld [vmem:[%s14842_s27 + $0x3] ss:$0 sm:$0xff] }
 0x2a7   : > { %13048 = vmatpush3.msra.mxu0 %v3486_v44 }
 0x2a8   : > { %13057 = vmatprep.subr.mxu0 %v14752_v30 }
 0x2ac   : > { %v15537_v46 = vpop.f32.mrb[20].mxu0 }
 0x2ad   : > { %v13015_v47 = vpop.f32.mrb[21].mxu0  ;;  %v3626_v42 = vadd.f32 %v11927_v38, %v15537_v46 }
 0x2ae   : > { %v3696_v47 = vadd.f32 %v11928_v43, %v15527_v36 }
 0x35d   : > { %v3848_v48 = vpop.f32.mrb[18].mxu1 }
 0x35e   : > { %v13036_v49 = vpop.f32.mrb[19].mxu1  ;;  %v4005_v60 = vmul.f32 0.35355338, %v3848_v48 }
 0x360   : > { %v4015_v2 = vadd.f32 %v15550_v59, %v4005_v60 }
 0x362   : > { %v4021_v7 = vsel %vm3699_vm2, %v4015_v2, -inf }
 0x365   : > { %v4000_v51 = vpop.f32.mrb[20].mxu1 }
 0x366   : > { %v13046_v53 = vpop.f32.mrb[21].mxu1  ;;  %v4007_v4 = vmul.f32 0.35355338, %v4000_v51  ;;  %v2779_v51 = vld [vmem:[%s16581_s18 + $0x8] sm:$0xff] }
 0x367   : > { %v2780_v53 = vld [vmem:[%s16581_s18 + $0x10] sm:$0xff] }
 0x368   : > { %v4017_v10 = vadd.f32 %v15550_v59, %v4007_v4 }
 0x36a   : > { %v4027_v11 = vsel %vm3699_vm2, %v4017_v10, -inf }
 0x36d   : > { %v3772_v58 = vpop.f32.mrb[22].mxu0 }
 0x36e   : > { %v4004_v61 = vmul.f32 0.35355338, %v3772_v58  ;;  %v13031_v62 = vpop.f32.mrb[23].mxu0  ;;  %v2781_v58 = vld [vmem:[%s16581_s18 + $0x18] sm:$0xff] }
 0x370   : > { %v4014_v63 = vadd.f32 %v15550_v59, %v4004_v61 }
 0x372   : > { %v4018_v0 = vsel %vm3699_vm2, %v4014_v63, -inf }
 0x373   : > { %4019 = vmax.xlane.f32.xlu0 %v4018_v0 }
 0x375   : > { %v3924_v3 = vpop.f32.mrb[24].mxu0 }
 0x376   : > { %v4006_v5 = vmul.f32 0.35355338, %v3924_v3  ;;  %v13041_v6 = vpop.f32.mrb[25].mxu0 }
 0x377   : > { %4022 = vmax.xlane.f32.xlu0 %v4021_v7 }
 0x378   : > { %v4016_v8 = vadd.f32 %v15550_v59, %v4006_v5 }
 0x37a   : > { %v4024_v9 = vsel %vm3699_vm2, %v4016_v8, -inf }
 0x37b   : > { %4025 = vmax.xlane.f32.xlu1 %v4024_v9 }
 0x37f   : > { %4028 = vmax.xlane.f32.xlu1 %v4027_v11 }
 0x400   : > { %v4020_v12 = vpop.xlane.xlu0 %4019 }
 0x401   : > { %v4030_v13 = vsub.f32 %v4014_v63, %v4020_v12 }
 0x403   : > { %v4034_v14 = vmul.f32 1.442695, %v4030_v13 }
 0x404   : > { %v4023_v15 = vpop.xlane.xlu0 %4022 }
 0x405   : > { %14594 = vpow2.f32 %v4034_v14  ;;  %v4031_v16 = vsub.f32 %v4015_v2, %v4023_v15  ;;  %v11949_v15 = vld [vmem:[%s16582_s22] ss:$0 sm:$0xff] }
 0x407   : > { %v4036_v17 = vmul.f32 1.442695, %v4031_v16 }
 0x408   : > { %v4026_v18 = vpop.xlane.xlu1 %4025 }
 0x409   : > { %14596 = vpow2.f32 %v4036_v17  ;;  %v4032_v19 = vsub.f32 %v4016_v8, %v4026_v18 }
 0x40b   : > { %v4038_v20 = vmul.f32 1.442695, %v4032_v19 }
 0x40c   : > { %v4029_v21 = vpop.xlane.xlu1 %4028 }
 0x40d   : > { %14598 = vpow2.f32 %v4038_v20  ;;  %v4033_v23 = vsub.f32 %v4017_v10, %v4029_v21 }
 0x40f   : > { %v14595_v24 = vpop.eup %14594  ;;  %v4040_v25 = vmul.f32 1.442695, %v4033_v23 }
 0x410   : > { %v4042_v26 = vsel %vm3699_vm2, %v14595_v24, 0.0 }
 0x411   : > { %14600 = vpow2.f32 %v4040_v25  ;;  %4043 = vadd.xlane.f32.xlu0 %v4042_v26 }
 0x413   : > { %v14597_v27 = vpop.eup %14596 }
 0x414   : > { %v4045_v28 = vsel %vm3699_vm2, %v14597_v27, 0.0 }
 0x415   : > { %4046 = vadd.xlane.f32.xlu1 %v4045_v28  ;;  %v4691_v28 = vld [vmem:[%s16583_s23] sm:$0xff] }
 0x417   : > { %v14599_v29 = vpop.eup %14598 }
 0x418   : > { %v4048_v31 = vsel %vm3699_vm2, %v14599_v29, 0.0 }
 0x419   : > { %4049 = vadd.xlane.f32.xlu0 %v4048_v31 }
 0x41b   : > { %v14601_v32 = vpop.eup %14600 }
 0x41c   : > { %v4051_v33 = vsel %vm3699_vm2, %v14601_v32, 0.0 }
 0x41d   : > { %4052 = vadd.xlane.f32.xlu1 %v4051_v33 }
 0x49e   : > { %v4044_v34 = vpop.xlane.xlu0 %4043 }
 0x49f   : > { %14602 = vrcp.f32 %v4044_v34  ;;  %v4776_v34 = vld [vmem:[%s16584_s26] sm:$0xff] }
 0x4a2   : > { %v4047_v35 = vpop.xlane.xlu1 %4046 }
 0x4a3   : > { %14604 = vrcp.f32 %v4047_v35  ;;  %v4777_v35 = vld [vmem:[%s16584_s26 + $0x8] sm:$0xff] }
 0x4a4   : > { %v14179_v38 = vpack.c.bf16 %v4777_v35, %v4776_v34  ;;  %v11980_v35 = vld [vmem:[%s14827_s6 + $0x98] sm:$0xff] }
 0x4a6   : > { %v4050_v37 = vpop.xlane.xlu0 %4049 }
 0x4a7   : > { %14606 = vrcp.f32 %v4050_v37  ;;  %v4778_v37 = vld [vmem:[%s16584_s26 + $0x10] sm:$0xff] }
 0x4a9   : > { %v14603_v39 = vpop.eup %14602 }
 0x4aa   : > { %v4058_v40 = vmul.f32 %v14603_v39, %v14595_v24  ;;  %v4053_v41 = vpop.xlane.xlu1 %4052  ;;  %v4779_v39 = vld [vmem:[%s16584_s26 + $0x18] sm:$0xff] }
 0x4ab   : > { %14608 = vrcp.f32 %v4053_v41  ;;  %v4780_v41 = vld [vmem:[%s16584_s26 + $0x20] sm:$0xff] }
 0x4ac   : > { %13050 = vmatmul.mubr.msk.f32.vlgmr.msra.gmra.mrb[26].mxu0 %vm3699_vm2, %v4058_v40  ;;  %v14182_v40 = vpack.c.bf16 %v4779_v39, %v4778_v37 }
 0x4ad   : > { %v14605_v44 = vpop.eup %14604  ;;  %13058 = vmatpush3.msra.mxu0 %v3626_v42  ;;  %13059 = vmatprep.mubr.msk.f32.mxu0 %vm14751_vm0, %v14752_v30  ;;  %v4781_v42 = vld [vmem:[%s16584_s26 + $0x28] sm:$0xff] }
 0x4ae   : > { %v4059_v45 = vmul.f32 %v14605_v44, %v14597_v27  ;;  %13067 = vmatprep.subr.mxu0 %v14752_v30  ;;  %v14185_v43 = vpack.c.bf16 %v4781_v42, %v4780_v41  ;;  %v4782_v44 = vld [vmem:[%s16584_s26 + $0x30] sm:$0xff]  ;;  %v11955_v42 = vld [vmem:[%s16589_s19] ss:$0 sm:$0xff] }
 0x4b0   : > { %13055 = vmatmul.mubr.msk.f32.vlgmr.msra.gmra.mrb[22].mxu1 %vm3699_vm2, %v4059_v45  ;;  %v4783_v45 = vld [vmem:[%s16584_s26 + $0x38] sm:$0xff] }
 0x4b1   : > { %v14607_v48 = vpop.eup %14606  ;;  %13063 = vmatpush3.msra.mxu1 %v3696_v47  ;;  %13064 = vmatprep.mubr.msk.f32.mxu1 %vm14751_vm0, %v14752_v30  ;;  %v14188_v47 = vpack.c.bf16 %v4783_v45, %v4782_v44  ;;  %v11962_v45 = vld [vmem:[%s14817_s24 + $0xa8] sm:$0xff] }
 0x4b2   : > { %v4060_v46 = vmul.f32 %v14607_v48, %v14599_v29  ;;  %13072 = vmatprep.subr.mxu1 %v14752_v30  ;;  %v4692_v29 = vld [vmem:[%s16583_s23 + $0x8] sm:$0xff]  ;;  %v4784_v48 = vld [vmem:[%s16584_s26 + $0x40] sm:$0xff] }
 0x4b3   : > { %v14173_v31 = vpack.c.bf16 %v4692_v29, %v4691_v28  ;;  %v11978_v29 = vld [vmem:[%s14827_s6 + $0x88] sm:$0xff] }
 0x4b4   : > { %13060 = vmatmul.mubr.msk.f32.vlgmr.msra.gmra.mrb[28].mxu0 %vm3699_vm2, %v4060_v46  ;;  %v4785_v46 = vld [vmem:[%s16584_s26 + $0x48] sm:$0xff] }
 0x4b5   : > { %v14609_v49 = vpop.eup %14608  ;;  %13069 = vmatprep.mubr.msk.f32.mxu0 %vm14751_vm0, %v14752_v30  ;;  %13068 = vmatpush3.msra.mxu0 %v2778_v50  ;;  %v4787_v50 = vld [vmem:[%s16584_s26 + $0x58] sm:$0xff] }
 0x4b6   : > { %v4061_v36 = vmul.f32 %v14609_v49, %v14601_v32  ;;  %13077 = vmatprep.subr.mxu0 %v14752_v30  ;;  %v4694_v32 = vld [vmem:[%s16583_s23 + $0x18] sm:$0xff]  ;;  %v14191_v49 = vpack.c.bf16 %v4785_v46, %v4784_v48  ;;  %v11986_v48 = vld [vmem:[%s14827_s6 + $0xc8] sm:$0xff]  ;;  %v11956_v46 = vld [vmem:[%s16590_s11] ss:$0 sm:$0xff] }
 0x4b8   : > { %13065 = vmatmul.mubr.msk.f32.vlgmr.msra.gmra.mrb[24].mxu1 %vm3699_vm2, %v4061_v36  ;;  %v4786_v36 = vld [vmem:[%s16584_s26 + $0x50] sm:$0xff] }
 0x4b9   : > { %13074 = vmatprep.mubr.msk.f32.mxu1 %vm14751_vm0, %v14752_v30  ;;  %13073 = vmatpush3.msra.mxu1 %v2779_v51  ;;  %v14194_v51 = vpack.c.bf16 %v4787_v50, %v4786_v36 }
 0x4ba   : > { %13082 = vmatprep.subr.mxu1 %v14752_v30 }
 0x57f   : > { %v4131_v54 = vpop.f32.mrb[26].mxu0 }
 0x580   : > { %v13051_v55 = vpop.f32.mrb[27].mxu0  ;;  %13070 = vmatmul.mubr.msk.f32.vlgmr.msra.gmra.mrb[30].mxu0 %vm3699_vm2, %v4131_v54  ;;  %v4789_v54 = vld [vmem:[%s16584_s26 + $0x68] sm:$0xff] }
 0x581   : > { %13078 = vmatpush3.msra.mxu0 %v2780_v53  ;;  %13079 = vmatprep.mubr.msk.f32.mxu0 %vm14751_vm0, %v14752_v30  ;;  %v4788_v53 = vld [vmem:[%s16584_s26 + $0x60] sm:$0xff] }
 0x582   : > { %14172 = vmatprep.subr.bf16.mxu0 %v14750_v22  ;;  %v14197_v55 = vpack.c.bf16 %v4789_v54, %v4788_v53  ;;  %v11964_v54 = vld [vmem:[%s14817_s24 + $0xb8] sm:$0xff] }
 0x583   : > { %v4204_v60 = vpop.f32.mrb[22].mxu1 }
 0x584   : > { %v13056_v61 = vpop.f32.mrb[23].mxu1  ;;  %13075 = vmatmul.mubr.msk.f32.vlgmr.msra.gmra.mrb[26].mxu1 %vm3699_vm2, %v4204_v60 }
 0x585   : > { %13083 = vmatpush3.msra.mxu1 %v2781_v58  ;;  %13084 = vmatprep.mubr.msk.f32.mxu1 %vm14751_vm0, %v14752_v30 }
 0x586   : > { %14178 = vmatprep.subr.bf16.mxu1 %v14750_v22 }
 0x587   : > { %v4277_v62 = vpop.f32.mrb[28].mxu0 }
 0x588   : > { %v13061_v63 = vpop.f32.mrb[29].mxu0  ;;  %13080 = vmatmul.mubr.msk.f32.vlgmr.msra.gmra.mrb[32].mxu0 %vm3699_vm2, %v4277_v62 }
 0x589   : > { %13095 = vmatprep.mubr.msk.f32.mxu0 %vm14751_vm0, %v14752_v30  ;;  %14174 = vmatpush3.bf16.msra.mxu0 %v14173_v31  ;;  %v11950_v63 = vld [vmem:[%s16585_s1] ss:$0 sm:$0xff] }
 0x58a   : > { %14175 = vmatprep.subr.bf16.mxu0 %v14750_v22 }
 0x58b   : > { %v4350_v0 = vpop.f32.mrb[24].mxu1 }
 0x58c   : > { %v13066_v2 = vpop.f32.mrb[25].mxu1  ;;  %13085 = vmatmul.mubr.msk.f32.vlgmr.msra.gmra.mrb[28].mxu1 %vm3699_vm2, %v4350_v0 }
 0x58d   : > { %13130 = vmatprep.mubr.msk.f32.mxu1 %vm14751_vm0, %v14752_v30  ;;  %14180 = vmatpush3.bf16.msra.mxu1 %v14179_v38  ;;  %v11951_v2 = vld [vmem:[%s16586_s28] ss:$0 sm:$0xff] }
 0x58e   : > { %14181 = vmatprep.subr.bf16.mxu1 %v14750_v22 }
 0x591   : > { %14183 = vmatpush3.bf16.msra.mxu1 %v14182_v40 }
 0x592   : > { %14184 = vmatprep.subr.bf16.mxu1 %v14750_v22 }
 0x595   : > { %14186 = vmatpush3.bf16.msra.mxu1 %v14185_v43  ;;  %v11961_v43 = vld [vmem:[%s14817_s24 + $0xa0] sm:$0xff] }
 0x596   : > { %14187 = vmatprep.subr.bf16.mxu1 %v14750_v22  ;;  %v14209_v36 = vpack.c.bf16 %v11962_v45, %v11961_v43  ;;  %v12009_v43 = vld [vmem:[%s14837_s20 + $0xe0] sm:$0xff] }
 0x599   : > { %14189 = vmatpush3.bf16.msra.mxu1 %v14188_v47  ;;  %v11985_v47 = vld [vmem:[%s14827_s6 + $0xc0] sm:$0xff] }
 0x59a   : > { %14190 = vmatprep.subr.bf16.mxu1 %v14750_v22  ;;  %v14239_v50 = vpack.c.bf16 %v11986_v48, %v11985_v47  ;;  %v12011_v47 = vld [vmem:[%s14837_s20 + $0xf0] sm:$0xff]  ;;  %v12012_v48 = vld [vmem:[%s14837_s20 + $0xf8] sm:$0xff] }
 0x59d   : > { %14192 = vmatpush3.bf16.msra.mxu1 %v14191_v49 }
 0x59e   : > { %14193 = vmatprep.subr.bf16.mxu1 %v14750_v22 }
 0x5a1   : > { %14195 = vmatpush3.bf16.msra.mxu1 %v14194_v51  ;;  %v11963_v51 = vld [vmem:[%s14817_s24 + $0xb0] sm:$0xff] }
 0x5a2   : > { %14196 = vmatprep.subr.bf16.mxu1 %v14750_v22 }
 0x5a5   : > { %14198 = vmatpush3.bf16.msra.mxu1 %v14197_v55  ;;  %v11987_v55 = vld [vmem:[%s14827_s6 + $0xd0] sm:$0xff] }
 0x5a6   : > { %14199 = vmatprep.subr.bf16.mxu1 %v14750_v22 }
 0x653   : > { %v4423_v3 = vpop.f32.mrb[30].mxu0 }
 0x654   : > { %v13071_v4 = vpop.f32.mrb[31].mxu0  ;;  %v4646_v6 = vsel %vm2807_vm1, %v4423_v3, 0.0 }
 0x657   : > { %v4496_v5 = vpop.f32.mrb[26].mxu1 }
 0x658   : > { %v4647_v7 = vsel %vm2807_vm1, %v4496_v5, 0.0  ;;  %v13076_v8 = vpop.f32.mrb[27].mxu1  ;;  %v4790_v5 = vld [vmem:[%s16584_s26 + $0x70] sm:$0xff] }
 0x659   : > { %v4648_v9 = vadd.f32 %v4647_v7, %v4646_v6  ;;  %v4791_v6 = vld [vmem:[%s16584_s26 + $0x78] sm:$0xff]  ;;  %v11952_v8 = vld [vmem:[%s16587_s2] ss:$0 sm:$0xff] }
 0x65a   : > { %v14200_v7 = vpack.c.bf16 %v4791_v6, %v4790_v5  ;;  %v11967_v5 = vld [vmem:[%s14817_s24 + $0xd0] sm:$0xff]  ;;  %v11968_v6 = vld [vmem:[%s14817_s24 + $0xd8] sm:$0xff] }
 0x65b   : > { %v4569_v10 = vpop.f32.mrb[32].mxu0 }
 0x65c   : > { %v4649_v11 = vsel %vm2807_vm1, %v4569_v10, 0.0  ;;  %v13081_v12 = vpop.f32.mrb[33].mxu0  ;;  %14201 = vmatpush3.bf16.msra.mxu1 %v14200_v7  ;;  %v11999_v7 = vld [vmem:[%s14837_s20 + $0x90] sm:$0xff] }
 0x65d   : > { %v4650_v13 = vadd.f32 %v4649_v11, %v4648_v9  ;;  %14226 = vmatprep.subr.bf16.mxu1 %v14750_v22 }
 0x65f   : > { %v4642_v14 = vpop.f32.mrb[28].mxu1 }
 0x660   : > { %v4651_v16 = vsel %vm2807_vm1, %v4642_v14, 0.0  ;;  %v13086_v17 = vpop.f32.mrb[29].mxu1 }
 0x661   : > { %v4652_v18 = vadd.f32 %v4651_v16, %v4650_v13  ;;  %v11954_v13 = vld [vmem:[%s16588_s0] ss:$0 sm:$0xff] }
 0x663   : > { %v4659_v19 = vadd.f32 %v11949_v15, %v4652_v18 }
 0x665   : > { %v4660_v20 = vadd.f32 %v4659_v19, %v15395_v56  ;;  %v4693_v56 = vld [vmem:[%s16583_s23 + $0x10] sm:$0xff] }
 0x666   : > { %v14176_v33 = vpack.c.bf16 %v4694_v32, %v4693_v56  ;;  %v11959_v56 = vld [vmem:[%s14817_s24 + $0x90] sm:$0xff]  ;;  %v11960_v32 = vld [vmem:[%s14817_s24 + $0x98] sm:$0xff] }
 0x667   : > { %v4663_v21 = vsel %vm2807_vm1, %v4660_v20, 0.0  ;;  %v14206_v34 = vpack.c.bf16 %v11960_v32, %v11959_v56  ;;  %v11990_v56 = vld [vmem:[%s14827_s6 + $0xe8] sm:$0xff] }
 0x668   : > { %4664 = vadd.xlane.f32.xlu0 %v4663_v21  ;;  %14177 = vmatpush3.bf16.msra.mxu0 %v14176_v33  ;;  %v11979_v33 = vld [vmem:[%s14827_s6 + $0x90] sm:$0xff] }
 0x669   : > { %14202 = vmatprep.subr.bf16.mxu0 %v14750_v22  ;;  %v14230_v37 = vpack.c.bf16 %v11980_v35, %v11979_v33  ;;  %v11991_v33 = vld [vmem:[%s14827_s6 + $0xf0] sm:$0xff] }
 0x6f5   : > { %v4665_v23 = vpop.xlane.xlu0 %4664 }
 0x6f6   : > { %v4667_v24 = vmul.f32 0.03125, %v4665_v23 }
 0x6f8   : > { %v4668_v25 = vsub.f32 %v4660_v20, %v4667_v24 }
 0x6fa   : > { %v4669_v26 = vmul.f32 %v4668_v25, %v4668_v25 }
 0x6fc   : > { %v4670_v27 = vsel %vm2807_vm1, %v4669_v26, 0.0  ;;  %v11958_v26 = vld [vmem:[%s14817_s24 + $0x88] sm:$0xff] }
 0x6fd   : > { %4671 = vadd.xlane.f32.xlu1 %v4670_v27  ;;  %v11977_v27 = vld [vmem:[%s14827_s6 + $0x80] sm:$0xff] }
 0x6fe   : > { %v14227_v31 = vpack.c.bf16 %v11978_v29, %v11977_v27  ;;  %v11983_v27 = vld [vmem:[%s14827_s6 + $0xb0] sm:$0xff] }
 0x78a   : > { %v4672_v58 = vpop.xlane.xlu1 %4671 }
 0x78b   : > { %v4673_v60 = vmul.f32 0.03125, %v4672_v58  ;;  %v11988_v58 = vld [vmem:[%s14827_s6 + $0xd8] sm:$0xff] }
 0x78d   : > { %v4674_v61 = vadd.f32 1e-05, %v4673_v60  ;;  %v14212_v60 = vpack.c.bf16 %v11964_v54, %v11963_v51  ;;  %v12022_v51 = vld [vmem:[%s14822_s30 + $0x4] ss:$0 sm:$0xff] }
 0x78f   : > { %14610 = vrsqrt.f32 %v4674_v61  ;;  %v14242_v61 = vpack.c.bf16 %v11988_v58, %v11987_v55 }
 0x799   : > { %v14611_v62 = vpop.eup %14610 }
 0x79a   : > { %v4676_v0 = vmul.f32 %v14611_v62, %v4668_v25  ;;  %v11957_v25 = vld [vmem:[%s14817_s24 + $0x80] sm:$0xff] }
 0x79b   : > { %v14203_v28 = vpack.c.bf16 %v11958_v26, %v11957_v25  ;;  %v11965_v62 = vld [vmem:[%s14817_s24 + $0xc0] sm:$0xff]  ;;  %v11982_v25 = vld [vmem:[%s14827_s6 + $0xa8] sm:$0xff] }
 0x79c   : > { %v4683_v3 = vmul.f32 %v11950_v63, %v4676_v0  ;;  %v11966_v63 = vld [vmem:[%s14817_s24 + $0xc8] sm:$0xff]  ;;  %v11997_v0 = vld [vmem:[%s14837_s20 + $0x80] sm:$0xff] }
 0x79e   : > { %v4690_v4 = vadd.f32 %v11951_v2, %v4683_v3  ;;  %v11998_v2 = vld [vmem:[%s14837_s20 + $0x88] sm:$0xff]  ;;  %v14215_v3 = vpack.c.bf16 %v11966_v63, %v11965_v62 }
 0x7a0   : > { %13096 = vmatmul.mubr.msk.f32.vlgmr.msra.gmra.mrb[34].mxu0 %vm2807_vm1, %v4690_v4 }
 0x7a1   : > { %13141 = vmatprep.mubr.msk.f32.mxu0 %vm14751_vm0, %v14752_v30  ;;  %14204 = vmatpush3.bf16.msra.mxu0 %v14203_v28  ;;  %v11984_v28 = vld [vmem:[%s14827_s6 + $0xb8] sm:$0xff] }
 0x7a2   : > { %14205 = vmatprep.subr.bf16.mxu0 %v14750_v22  ;;  %v14236_v29 = vpack.c.bf16 %v11984_v28, %v11983_v27 }
 0x7a5   : > { %14207 = vmatpush3.bf16.msra.mxu0 %v14206_v34  ;;  %v11992_v34 = vld [vmem:[%s14827_s6 + $0xf8] sm:$0xff] }
 0x7a6   : > { %14208 = vmatprep.subr.bf16.mxu0 %v14750_v22  ;;  %v14248_v35 = vpack.c.bf16 %v11992_v34, %v11991_v33 }
 0x873   : > { %v4771_v9 = vpop.f32.mrb[34].mxu0 }
 0x874   : > { %v4772_v10 = vadd.f32 %v11952_v8, %v4771_v9  ;;  %v13097_v11 = vpop.f32.mrb[35].mxu0  ;;  %v12000_v8 = vld [vmem:[%s14837_s20 + $0x98] sm:$0xff]  ;;  %v14218_v9 = vpack.c.bf16 %v11968_v6, %v11967_v5  ;;  %v12038_v5 = vld [vmem:[%s14842_s27 + $0x4] ss:$0 sm:$0xff] }
 0x875   : > { %v11969_v11 = vld [vmem:[%s14817_s24 + $0xe0] sm:$0xff] }
 0x876   : > { %v4775_v12 = vmax.f32 %v4772_v10, 0.0  ;;  %v14254_v10 = vpack.c.bf16 %v12000_v8, %v11999_v7 }
 0x878   : > { %13131 = vmatmul.mubr.f32.vlgmr.msra.gmra.mrb[30].mxu1 %v4775_v12  ;;  %v11970_v12 = vld [vmem:[%s14817_s24 + $0xe8] sm:$0xff] }
 0x879   : > { %13185 = vmatprep.mubr.msk.f32.mxu1 %vm14751_vm0, %v14752_v30  ;;  %14228 = vmatpush3.bf16.msra.mxu1 %v14227_v31  ;;  %v11989_v31 = vld [vmem:[%s14827_s6 + $0xe0] sm:$0xff] }
 0x87a   : > { %14229 = vmatprep.subr.bf16.mxu1 %v14750_v22  ;;  %v14245_v32 = vpack.c.bf16 %v11990_v56, %v11989_v31 }
 0x87d   : > { %14231 = vmatpush3.bf16.msra.mxu1 %v14230_v37  ;;  %v12001_v37 = vld [vmem:[%s14837_s20 + $0xa0] sm:$0xff] }
 0x87e   : > { %14238 = vmatprep.subr.bf16.mxu1 %v14750_v22 }
 0x94b   : > { %v4865_v14 = vpop.f32.mrb[30].mxu1 }
 0x94c   : > { %v4866_v15 = vadd.f32 %v11954_v13, %v4865_v14  ;;  %v13132_v16 = vpop.f32.mrb[31].mxu1  ;;  %v12005_v13 = vld [vmem:[%s14837_s20 + $0xc0] sm:$0xff]  ;;  %v12006_v14 = vld [vmem:[%s14837_s20 + $0xc8] sm:$0xff] }
 0x94d   : > { %v14263_v16 = vpack.c.bf16 %v12006_v14, %v12005_v13 }
 0x94e   : > { %v4869_v17 = vadd.f32 %v4866_v15, %v4690_v4  ;;  %v14251_v4 = vpack.c.bf16 %v11998_v2, %v11997_v0  ;;  %v14221_v15 = vpack.c.bf16 %v11970_v12, %v11969_v11 }
 0x950   : > { %v4872_v18 = vsel %vm2807_vm1, %v4869_v17, 0.0 }
 0x951   : > { %4873 = vadd.xlane.f32.xlu0 %v4872_v18  ;;  %v11972_v18 = vld [vmem:[%s14817_s24 + $0xf8] sm:$0xff] }
 0x9de   : > { %v4874_v19 = vpop.xlane.xlu0 %4873 }
 0x9df   : > { %v4875_v20 = vmul.f32 0.03125, %v4874_v19  ;;  %v12007_v19 = vld [vmem:[%s14837_s20 + $0xd0] sm:$0xff] }
 0x9e1   : > { %v4876_v21 = vsub.f32 %v4869_v17, %v4875_v20  ;;  %v11971_v17 = vld [vmem:[%s14817_s24 + $0xf0] sm:$0xff]  ;;  %v12008_v20 = vld [vmem:[%s14837_s20 + $0xd8] sm:$0xff] }
 0x9e3   : > { %v4877_v23 = vmul.f32 %v4876_v21, %v4876_v21 }
 0x9e5   : > { %v4878_v24 = vsel %vm2807_vm1, %v4877_v23, 0.0  ;;  %v14266_v23 = vpack.c.bf16 %v12008_v20, %v12007_v19 }
 0x9e6   : > { %4879 = vadd.xlane.f32.xlu1 %v4878_v24  ;;  %v11981_v24 = vld [vmem:[%s14827_s6 + $0xa0] sm:$0xff] }
 0x9e7   : > { %v14233_v26 = vpack.c.bf16 %v11982_v25, %v11981_v24  ;;  %v12025_v25 = vld [vmem:[%s14822_s30 + $0x7] ss:$0 sm:$0xff] }
 0xa73   : > { %v4880_v38 = vpop.xlane.xlu1 %4879 }
 0xa74   : > { %v4881_v39 = vmul.f32 0.03125, %v4880_v38  ;;  %v12002_v38 = vld [vmem:[%s14837_s20 + $0xa8] sm:$0xff] }
 0xa76   : > { %v4882_v40 = vadd.f32 1e-05, %v4881_v39  ;;  %v14257_v39 = vpack.c.bf16 %v12002_v38, %v12001_v37 }
 0xa78   : > { %14612 = vrsqrt.f32 %v4882_v40  ;;  %v12003_v40 = vld [vmem:[%s14837_s20 + $0xb0] sm:$0xff] }
 0xa82   : > { %v14613_v41 = vpop.eup %14612 }
 0xa83   : > { %v4884_v44 = vmul.f32 %v14613_v41, %v4876_v21  ;;  %v14224_v21 = vpack.c.bf16 %v11972_v18, %v11971_v17  ;;  %v12004_v41 = vld [vmem:[%s14837_s20 + $0xb8] sm:$0xff]  ;;  %v12023_v18 = vld [vmem:[%s14822_s30 + $0x5] ss:$0 sm:$0xff] }
 0xa85   : > { %v4891_v49 = vmul.f32 %v11955_v42, %v4884_v44  ;;  %v14260_v42 = vpack.c.bf16 %v12004_v41, %v12003_v40  ;;  %v12010_v44 = vld [vmem:[%s14837_s20 + $0xe8] sm:$0xff] }
 0xa86   : > { %v14269_v45 = vpack.c.bf16 %v12010_v44, %v12009_v43 }
 0xa87   : > { %v15670_v53 = vadd.f32 %v11956_v46, %v4891_v49  ;;  %v14272_v46 = vpack.c.bf16 %v12012_v48, %v12011_v47  ;;  %v12030_v49 = vld [vmem:[%s14832_s12 + $0x4] ss:$0 sm:$0xff] }
 0xa89   : > { %13142 = vmatmul.mubr.msk.f32.vlgmr.msra.gmra.mrb[36].mxu0 %vm2807_vm1, %v15670_v53  ;;  %13186 = vmatmul.mubr.msk.f32.vlgmr.msra.gmra.mrb[32].mxu1 %vm2807_vm1, %v15670_v53 }
 0xa8a   : > { %14210 = vmatpush3.bf16.msra.mxu0 %v14209_v36  ;;  %14240 = vmatpush3.bf16.msra.mxu1 %v14239_v50 }
 0xa8b   : > { %14211 = vmatprep.subr.bf16.mxu0 %v14750_v22  ;;  %14241 = vmatprep.subr.bf16.mxu1 %v14750_v22 }
 0xa8c   : > { %13152 = vmatprep.mubr.msk.f32.mxu0 %vm14751_vm0, %v14752_v30  ;;  %13207 = vmatprep.mubr.msk.f32.mxu1 %vm14751_vm0, %v14752_v30 }
 0xa8e   : > { %14213 = vmatpush3.bf16.msra.mxu0 %v14212_v60  ;;  %14243 = vmatpush3.bf16.msra.mxu1 %v14242_v61  ;;  %v12032_v61 = vld [vmem:[%s14832_s12 + $0x6] ss:$0 sm:$0xff] }
 0xa8f   : > { %14214 = vmatprep.subr.bf16.mxu0 %v14750_v22  ;;  %14250 = vmatprep.subr.bf16.mxu1 %v14750_v22 }
 0xa91   : > { %13153 = vmatmul.mubr.msk.f32.vlgmr.msra.gmra.mrb[38].mxu0 %vm2807_vm1, %v15670_v53  ;;  %13208 = vmatmul.mubr.msk.f32.vlgmr.msra.gmra.mrb[34].mxu1 %vm2807_vm1, %v15670_v53 }
 0xa92   : > { %14216 = vmatpush3.bf16.msra.mxu0 %v14215_v3  ;;  %14252 = vmatpush3.bf16.msra.mxu1 %v14251_v4  ;;  %v12024_v4 = vld [vmem:[%s14822_s30 + $0x6] ss:$0 sm:$0xff] }
 0xa93   : > { %14217 = vmatprep.subr.bf16.mxu0 %v14750_v22  ;;  %14253 = vmatprep.subr.bf16.mxu1 %v14750_v22 }
 0xa94   : > { %13163 = vmatprep.mubr.msk.f32.mxu0 %vm14751_vm0, %v14752_v30  ;;  %13229 = vmatprep.mubr.msk.f32.mxu1 %vm14751_vm0, %v14752_v30 }
 0xa96   : > { %14219 = vmatpush3.bf16.msra.mxu0 %v14218_v9  ;;  %14255 = vmatpush3.bf16.msra.mxu1 %v14254_v10 }
 0xa97   : > { %14220 = vmatprep.subr.bf16.mxu0 %v14750_v22  ;;  %14262 = vmatprep.subr.bf16.mxu1 %v14750_v22 }
 0xa99   : > { %13164 = vmatmul.mubr.msk.f32.vlgmr.msra.gmra.mrb[40].mxu0 %vm2807_vm1, %v15670_v53  ;;  %13230 = vmatmul.mubr.msk.f32.vlgmr.msra.gmra.mrb[36].mxu1 %vm2807_vm1, %v15670_v53 }
 0xa9a   : > { %14222 = vmatpush3.bf16.msra.mxu0 %v14221_v15  ;;  %14264 = vmatpush3.bf16.msra.mxu1 %v14263_v16  ;;  %v12031_v16 = vld [vmem:[%s14832_s12 + $0x5] ss:$0 sm:$0xff] }
 0xa9b   : > { %14223 = vmatprep.subr.bf16.mxu0 %v14750_v22  ;;  %14265 = vmatprep.subr.bf16.mxu1 %v14750_v22 }
 0xa9c   : > { %13174 = vmatprep.mubr.msk.f32.mxu0 %vm14751_vm0, %v14752_v30  ;;  %13251 = vmatprep.mubr.msk.f32.mxu1 %vm14751_vm0, %v14752_v30 }
 0xa9e   : > { %14225 = vmatpush3.bf16.msra.mxu0 %v14224_v21  ;;  %14267 = vmatpush3.bf16.msra.mxu1 %v14266_v23  ;;  %v12033_v23 = vld [vmem:[%s14832_s12 + $0x7] ss:$0 sm:$0xff] }
 0xa9f   : > { %14232 = vmatprep.subr.bf16.mxu0 %v14750_v22  ;;  %13265 = vmatprep.subr.mxu1 %v14752_v30 }
 0xaa1   : > { %13175 = vmatmul.mubr.msk.f32.vlgmr.msra.gmra.mrb[42].mxu0 %vm2807_vm1, %v15670_v53  ;;  %13252 = vmatmul.mubr.msk.f32.vlgmr.msra.gmra.mrb[38].mxu1 %vm2807_vm1, %v15670_v53 }
 0xaa2   : > { %14234 = vmatpush3.bf16.msra.mxu0 %v14233_v26  ;;  %13196 = vmatprep.mubr.msk.f32.mxu0 %vm14751_vm0, %v14752_v30 }
 0xaa3   : > { %14235 = vmatprep.subr.bf16.mxu0 %v14750_v22  ;;  %13267 = vmatprep.mubr.msk.f32.mxu1 %vm14751_vm0, %v14752_v30 }
 0xaa6   : > { %14237 = vmatpush3.bf16.msra.mxu0 %v14236_v29  ;;  %v12039_v29 = vld [vmem:[%s14842_s27 + $0x5] ss:$0 sm:$0xff] }
 0xaa7   : > { %14244 = vmatprep.subr.bf16.mxu0 %v14750_v22 }
 0xaa9   : > { %13197 = vmatmul.mubr.msk.f32.vlgmr.msra.gmra.mrb[44].mxu0 %vm2807_vm1, %v15670_v53 }
 0xaaa   : > { %14246 = vmatpush3.bf16.msra.mxu0 %v14245_v32  ;;  %13218 = vmatprep.mubr.msk.f32.mxu0 %vm14751_vm0, %v14752_v30 }
 0xaab   : > { %14247 = vmatprep.subr.bf16.mxu0 %v14750_v22 }
 0xaae   : > { %14249 = vmatpush3.bf16.msra.mxu0 %v14248_v35 }
 0xaaf   : > { %14256 = vmatprep.subr.bf16.mxu0 %v14750_v22 }
 0xab1   : > { %13219 = vmatmul.mubr.msk.f32.vlgmr.msra.gmra.mrb[46].mxu0 %vm2807_vm1, %v15670_v53 }
 0xab2   : > { %14258 = vmatpush3.bf16.msra.mxu0 %v14257_v39  ;;  %13240 = vmatprep.mubr.msk.f32.mxu0 %vm14751_vm0, %v14752_v30 }
 0xab3   : > { %14259 = vmatprep.subr.bf16.mxu0 %v14750_v22 }
 0xab6   : > { %14261 = vmatpush3.bf16.msra.mxu0 %v14260_v42 }
 0xab7   : > { %14268 = vmatprep.subr.bf16.mxu0 %v14750_v22 }
 0xab9   : > { %13241 = vmatmul.mubr.msk.f32.vlgmr.msra.gmra.mrb[48].mxu0 %vm2807_vm1, %v15670_v53 }
 0xaba   : > { %14270 = vmatpush3.bf16.msra.mxu0 %v14269_v45  ;;  %13262 = vmatprep.mubr.msk.f32.mxu0 %vm14751_vm0, %v14752_v30 }
 0xabb   : > { %14271 = vmatprep.subr.bf16.mxu0 %v14750_v22 }
 0xabe   : > { %14273 = vmatpush3.bf16.msra.mxu0 %v14272_v46 }
 0xabf   : > { %13275 = vmatprep.subr.mxu0 %v14752_v30 }
 0xac1   : > { %13263 = vmatmul.mubr.msk.f32.vlgmr.msra.gmra.mrb[50].mxu0 %vm2807_vm1, %v15670_v53 }
 0xac2   : > { %13277 = vmatprep.mubr.msk.f32.mxu0 %vm14751_vm0, %v14752_v30 }
 0xb5c   : > { %v5065_v36 = vpop.f32.mrb[36].mxu0  ;;  %v5369_v50 = vpop.f32.mrb[32].mxu1 }
 0xb5d   : > { %v5370_v54 = vadd.f32 %v12030_v49, %v5369_v50  ;;  %v13143_v55 = vpop.f32.mrb[37].mxu0  ;;  %v13187_v58 = vpop.f32.mrb[33].mxu1  ;;  %v5066_v60 = vadd.f32 %v12022_v51, %v5065_v36 }
 0xb5f   : > { %13266 = vmatpush3.xpose.msk.msra.mxu1 %vm3699_vm2, %v5370_v54 }
 0xb60   : > { %13270 = vmatprep.subr.mxu1 %v14752_v30 }
 0xb62   : > { %13268 = vmatmul.mubr.msk.f32.vlgmr.msra.gmra.mrb[40].mxu1 %vm3699_vm2, %v5066_v60 }
 0xb63   : > { %13272 = vmatprep.mubr.msk.f32.mxu1 %vm14751_vm0, %v14752_v30 }
 0xb64   : > { %v5135_v62 = vpop.f32.mrb[38].mxu0  ;;  %v5509_v63 = vpop.f32.mrb[34].mxu1 }
 0xb65   : > { %v5510_v0 = vadd.f32 %v12032_v61, %v5509_v63  ;;  %v13154_v2 = vpop.f32.mrb[39].mxu0  ;;  %v13209_v3 = vpop.f32.mrb[35].mxu1  ;;  %v5136_v21 = vadd.f32 %v12023_v18, %v5135_v62 }
 0xb67   : > { %13276 = vmatpush3.xpose.msk.msra.mxu0 %vm3699_vm2, %v5510_v0 }
 0xb68   : > { %13285 = vmatprep.subr.mxu0 %v14752_v30 }
 0xb6c   : > { %v5205_v6 = vpop.f32.mrb[40].mxu0  ;;  %v5673_v7 = vpop.f32.mrb[36].mxu1 }
 0xb6d   : > { %v5206_v8 = vadd.f32 %v12024_v4, %v5205_v6  ;;  %v5674_v9 = vadd.f32 %v12038_v5, %v5673_v7  ;;  %v13165_v10 = vpop.f32.mrb[41].mxu0  ;;  %v13231_v11 = vpop.f32.mrb[37].mxu1 }
 0xb6f   : > { %13278 = vmatmul.mubr.msk.f32.vlgmr.msra.gmra.mrb[52].mxu0 %vm3699_vm2, %v5206_v8 }
 0xb70   : > { %13286 = vmatpush3.msra.mxu0 %v5674_v9  ;;  %13287 = vmatprep.mubr.msk.f32.mxu0 %vm14751_vm0, %v14752_v30 }
 0xb71   : > { %13295 = vmatprep.subr.mxu0 %v14752_v30 }
 0xb74   : > { %v5275_v12 = vpop.f32.mrb[42].mxu0  ;;  %v15791_v13 = vpop.f32.mrb[38].mxu1 }
 0xb75   : > { %v13176_v14 = vpop.f32.mrb[43].mxu0  ;;  %v13253_v15 = vpop.f32.mrb[39].mxu1  ;;  %v5276_v28 = vadd.f32 %v12025_v25, %v5275_v12 }
 0xb7c   : > { %v5439_v17 = vpop.f32.mrb[44].mxu0 }
 0xb7d   : > { %v5440_v19 = vadd.f32 %v12031_v16, %v5439_v17  ;;  %v13198_v20 = vpop.f32.mrb[45].mxu0 }
 0xb7f   : > { %13271 = vmatpush3.xpose.msk.msra.mxu1 %vm3699_vm2, %v5440_v19  ;;  %v12040_v19 = vld [vmem:[%s14842_s27 + $0x6] ss:$0 sm:$0xff] }
 0xb80   : > { %13280 = vmatprep.subr.mxu1 %v14752_v30 }
 0xb82   : > { %13273 = vmatmul.mubr.msk.f32.vlgmr.msra.gmra.mrb[42].mxu1 %vm3699_vm2, %v5136_v21 }
 0xb83   : > { %13282 = vmatprep.mubr.msk.f32.mxu1 %vm14751_vm0, %v14752_v30 }
 0xb84   : > { %v5579_v24 = vpop.f32.mrb[46].mxu0 }
 0xb85   : > { %v5580_v26 = vadd.f32 %v12033_v23, %v5579_v24  ;;  %v13220_v27 = vpop.f32.mrb[47].mxu0  ;;  %v5814_v23 = vadd.f32 %v12040_v19, %v15791_v13  ;;  %v12075_v19 = vld [vmem:[%s16584_s26 + $0x88] sm:$0xff] }
 0xb87   : > { %13281 = vmatpush3.xpose.msk.msra.mxu1 %vm3699_vm2, %v5580_v26 }
 0xb88   : > { %13290 = vmatprep.subr.mxu1 %v14752_v30 }
 0xb8a   : > { %13283 = vmatmul.mubr.msk.f32.vlgmr.msra.gmra.mrb[44].mxu1 %vm3699_vm2, %v5276_v28  ;;  %v12041_v28 = vld [vmem:[%s14842_s27 + $0x7] ss:$0 sm:$0xff] }
 0xb8b   : > { %13292 = vmatprep.mubr.msk.f32.mxu1 %vm14751_vm0, %v14752_v30 }
 0xb8c   : > { %v5743_v31 = vpop.f32.mrb[48].mxu0 }
 0xb8d   : > { %v5744_v56 = vadd.f32 %v12039_v29, %v5743_v31  ;;  %v13242_v32 = vpop.f32.mrb[49].mxu0 }
 0xb8f   : > { %13291 = vmatpush3.msra.mxu1 %v5744_v56 }
 0xb90   : > { %13300 = vmatprep.subr.mxu1 %v14752_v30 }
 0xb94   : > { %v15809_v33 = vpop.f32.mrb[50].mxu0 }
 0xb95   : > { %v13264_v34 = vpop.f32.mrb[51].mxu0  ;;  %v5884_v56 = vadd.f32 %v12041_v28, %v15809_v33  ;;  %v12018_v33 = vld [vmem:[%s16581_s18 + $0x28] sm:$0xff]  ;;  %v12081_v28 = vld [vmem:[%s16584_s26 + $0xb8] sm:$0xff] }
 0xc35   : > { %v5959_v35 = vpop.f32.mrb[40].mxu1 }
 0xc36   : > { %v6191_v37 = vmul.f32 0.35355338, %v5959_v35  ;;  %v13269_v38 = vpop.f32.mrb[41].mxu1  ;;  %v12017_v35 = vld [vmem:[%s16581_s18 + $0x20] sm:$0xff] }
 0xc38   : > { %v6195_v39 = vadd.f32 %v6191_v37, %v15550_v59  ;;  %v12019_v37 = vld [vmem:[%s16581_s18 + $0x30] sm:$0xff] }
 0xc3a   : > { %v6199_v40 = vsel %vm3699_vm2, %v6195_v39, -inf }
 0xc3b   : > { %6200 = vmax.xlane.f32.xlu0 %v6199_v40 }
 0xc42   : > { %v6111_v41 = vpop.f32.mrb[52].mxu0 }
 0xc43   : > { %v6193_v42 = vmul.f32 0.35355338, %v6111_v41  ;;  %v13279_v43 = vpop.f32.mrb[53].mxu0 }
 0xc45   : > { %v6197_v44 = vadd.f32 %v6193_v42, %v15550_v59  ;;  %v12020_v42 = vld [vmem:[%s16581_s18 + $0x38] sm:$0xff] }
 0xc47   : > { %v6205_v45 = vsel %vm3699_vm2, %v6197_v44, -inf }
 0xc48   : > { %6206 = vmax.xlane.f32.xlu0 %v6205_v45 }
 0xc55   : > { %v6035_v47 = vpop.f32.mrb[42].mxu1 }
 0xc56   : > { %v6192_v48 = vmul.f32 0.35355338, %v6035_v47  ;;  %v13274_v46 = vpop.f32.mrb[43].mxu1 }
 0xc58   : > { %v6196_v49 = vadd.f32 %v6192_v48, %v15550_v59 }
 0xc5a   : > { %v6202_v36 = vsel %vm3699_vm2, %v6196_v49, -inf }
 0xc5b   : > { %6203 = vmax.xlane.f32.xlu1 %v6202_v36 }
 0xc5d   : > { %v6187_v50 = vpop.f32.mrb[44].mxu1 }
 0xc5e   : > { %v6194_v51 = vmul.f32 0.35355338, %v6187_v50  ;;  %v13284_v54 = vpop.f32.mrb[45].mxu1 }
 0xc60   : > { %v6198_v55 = vadd.f32 %v6194_v51, %v15550_v59 }
 0xc62   : > { %v6208_v58 = vsel %vm3699_vm2, %v6198_v55, -inf }
 0xc63   : > { %6209 = vmax.xlane.f32.xlu1 %v6208_v58 }
 0xcc8   : > { %v6201_v60 = vpop.xlane.xlu0 %6200 }
 0xcc9   : > { %v6211_v61 = vsub.f32 %v6195_v39, %v6201_v60 }
 0xccb   : > { %v6215_v62 = vmul.f32 1.442695, %v6211_v61 }
 0xccd   : > { %14614 = vpow2.f32 %v6215_v62 }
 0xcd5   : > { %v6207_v63 = vpop.xlane.xlu0 %6206 }
 0xcd6   : > { %v6213_v0 = vsub.f32 %v6197_v44, %v6207_v63  ;;  %v12062_v63 = vld [vmem:[%s16582_s22 + $0x1] ss:$0 sm:$0xff] }
 0xcd7   : > { %v14615_v2 = vpop.eup %14614 }
 0xcd8   : > { %v6219_v3 = vmul.f32 1.442695, %v6213_v0  ;;  %v6223_v4 = vsel %vm3699_vm2, %v14615_v2, 0.0 }
 0xcd9   : > { %6224 = vadd.xlane.f32.xlu0 %v6223_v4 }
 0xcda   : > { %14616 = vpow2.f32 %v6219_v3 }
 0xce4   : > { %v14617_v5 = vpop.eup %14616 }
 0xce5   : > { %v6229_v6 = vsel %vm3699_vm2, %v14617_v5, 0.0 }
 0xce6   : > { %6230 = vadd.xlane.f32.xlu0 %v6229_v6 }
 0xce8   : > { %v6204_v7 = vpop.xlane.xlu1 %6203 }
 0xce9   : > { %v6212_v8 = vsub.f32 %v6196_v49, %v6204_v7 }
 0xceb   : > { %v6217_v9 = vmul.f32 1.442695, %v6212_v8 }
 0xced   : > { %14618 = vpow2.f32 %v6217_v9 }
 0xcf0   : > { %v6210_v10 = vpop.xlane.xlu1 %6209 }
 0xcf1   : > { %v6214_v11 = vsub.f32 %v6198_v55, %v6210_v10 }
 0xcf3   : > { %v6221_v12 = vmul.f32 1.442695, %v6214_v11 }
 0xcf5   : > { %14620 = vpow2.f32 %v6221_v12  ;;  %v12067_v12 = vld [vmem:[%s16583_s23 + $0x20] sm:$0xff] }
 0xcf7   : > { %v14619_v14 = vpop.eup %14618 }
 0xcf8   : > { %v6226_v15 = vsel %vm3699_vm2, %v14619_v14, 0.0 }
 0xcf9   : > { %6227 = vadd.xlane.f32.xlu1 %v6226_v15 }
 0xcff   : > { %v14621_v16 = vpop.eup %14620 }
 0xd00   : > { %v6232_v17 = vsel %vm3699_vm2, %v14621_v16, 0.0 }
 0xd01   : > { %6233 = vadd.xlane.f32.xlu1 %v6232_v17 }
 0xd66   : > { %v6225_v18 = vpop.xlane.xlu0 %6224 }
 0xd67   : > { %14622 = vrcp.f32 %v6225_v18  ;;  %v12074_v18 = vld [vmem:[%s16584_s26 + $0x80] sm:$0xff] }
 0xd71   : > { %v14623_v20 = vpop.eup %14622 }
 0xd72   : > { %v6239_v21 = vmul.f32 %v14623_v20, %v14615_v2  ;;  %v12076_v20 = vld [vmem:[%s16584_s26 + $0x90] sm:$0xff] }
 0xd73   : > { %v6231_v24 = vpop.xlane.xlu0 %6230 }
 0xd74   : > { %14624 = vrcp.f32 %v6231_v24  ;;  %13288 = vmatmul.mubr.msk.f32.vlgmr.msra.gmra.mrb[54].mxu0 %vm3699_vm2, %v6239_v21  ;;  %v14281_v21 = vpack.c.bf16 %v12075_v19, %v12074_v18 }
 0xd75   : > { %13296 = vmatpush3.msra.mxu0 %v5814_v23  ;;  %13297 = vmatprep.mubr.msk.f32.mxu0 %vm14751_vm0, %v14752_v30  ;;  %v12077_v23 = vld [vmem:[%s16584_s26 + $0x98] sm:$0xff] }
 0xd76   : > { %13305 = vmatprep.subr.mxu0 %v14752_v30  ;;  %v14284_v24 = vpack.c.bf16 %v12077_v23, %v12076_v20 }
 0xd7e   : > { %v14625_v25 = vpop.eup %14624 }
 0xd7f   : > { %v6241_v26 = vmul.f32 %v14625_v25, %v14617_v5  ;;  %v12078_v25 = vld [vmem:[%s16584_s26 + $0xa0] sm:$0xff] }
 0xd81   : > { %13298 = vmatmul.mubr.msk.f32.vlgmr.msra.gmra.mrb[56].mxu0 %vm3699_vm2, %v6241_v26  ;;  %v12079_v26 = vld [vmem:[%s16584_s26 + $0xa8] sm:$0xff] }
 0xd82   : > { %13307 = vmatprep.mubr.msk.f32.mxu0 %vm14751_vm0, %v14752_v30  ;;  %13306 = vmatpush3.msra.mxu0 %v12017_v35  ;;  %v12085_v35 = vld [vmem:[%s16584_s26 + $0xd8] sm:$0xff] }
 0xd83   : > { %13315 = vmatprep.subr.mxu0 %v14752_v30 }
 0xd86   : > { %v6228_v27 = vpop.xlane.xlu1 %6227 }
 0xd87   : > { %14626 = vrcp.f32 %v6228_v27  ;;  %v14287_v27 = vpack.c.bf16 %v12079_v26, %v12078_v25 }
 0xd8e   : > { %v6234_v13 = vpop.xlane.xlu1 %6233 }
 0xd8f   : > { %14628 = vrcp.f32 %v6234_v13  ;;  %v12080_v13 = vld [vmem:[%s16584_s26 + $0xb0] sm:$0xff] }
 0xd91   : > { %v14627_v29 = vpop.eup %14626 }
 0xd92   : > { %v6240_v31 = vmul.f32 %v14627_v29, %v14619_v14  ;;  %v12068_v14 = vld [vmem:[%s16583_s23 + $0x28] sm:$0xff]  ;;  %v14290_v29 = vpack.c.bf16 %v12081_v28, %v12080_v13 }
 0xd93   : > { %v14275_v15 = vpack.c.bf16 %v12068_v14, %v12067_v12 }
 0xd94   : > { %13293 = vmatmul.mubr.msk.f32.vlgmr.msra.gmra.mrb[46].mxu1 %vm3699_vm2, %v6240_v31  ;;  %v12082_v31 = vld [vmem:[%s16584_s26 + $0xc0] sm:$0xff] }
 0xd95   : > { %13301 = vmatpush3.msra.mxu1 %v5884_v56  ;;  %13302 = vmatprep.mubr.msk.f32.mxu1 %vm14751_vm0, %v14752_v30  ;;  %v12083_v56 = vld [vmem:[%s16584_s26 + $0xc8] sm:$0xff] }
 0xd96   : > { %13310 = vmatprep.subr.mxu1 %v14752_v30 }
 0xd99   : > { %v14629_v32 = vpop.eup %14628 }
 0xd9a   : > { %v6242_v34 = vmul.f32 %v14629_v32, %v14621_v16  ;;  %v12070_v16 = vld [vmem:[%s16583_s23 + $0x38] sm:$0xff]  ;;  %v14293_v32 = vpack.c.bf16 %v12083_v56, %v12082_v31 }
 0xd9c   : > { %13303 = vmatmul.mubr.msk.f32.vlgmr.msra.gmra.mrb[48].mxu1 %vm3699_vm2, %v6242_v34  ;;  %v12084_v34 = vld [vmem:[%s16584_s26 + $0xd0] sm:$0xff] }
 0xd9d   : > { %13312 = vmatprep.mubr.msk.f32.mxu1 %vm14751_vm0, %v14752_v30  ;;  %13311 = vmatpush3.msra.mxu1 %v12018_v33  ;;  %v14296_v33 = vpack.c.bf16 %v12085_v35, %v12084_v34 }
 0xd9e   : > { %13320 = vmatprep.subr.mxu1 %v14752_v30 }
 0xe47   : > { %v6312_v38 = vpop.f32.mrb[54].mxu0 }
 0xe48   : > { %v13289_v39 = vpop.f32.mrb[55].mxu0  ;;  %13308 = vmatmul.mubr.msk.f32.vlgmr.msra.gmra.mrb[58].mxu0 %vm3699_vm2, %v6312_v38  ;;  %v12087_v38 = vld [vmem:[%s16584_s26 + $0xe8] sm:$0xff] }
 0xe49   : > { %13316 = vmatpush3.msra.mxu0 %v12019_v37  ;;  %13317 = vmatprep.mubr.msk.f32.mxu0 %vm14751_vm0, %v14752_v30  ;;  %v12086_v37 = vld [vmem:[%s16584_s26 + $0xe0] sm:$0xff] }
 0xe4a   : > { %14274 = vmatprep.subr.bf16.mxu0 %v14750_v22  ;;  %v14299_v39 = vpack.c.bf16 %v12087_v38, %v12086_v37 }
 0xe54   : > { %v6458_v40 = vpop.f32.mrb[56].mxu0 }
 0xe55   : > { %v13299_v41 = vpop.f32.mrb[57].mxu0  ;;  %13318 = vmatmul.mubr.msk.f32.vlgmr.msra.gmra.mrb[60].mxu0 %vm3699_vm2, %v6458_v40 }
 0xe56   : > { %13333 = vmatprep.mubr.msk.f32.mxu0 %vm14751_vm0, %v14752_v30  ;;  %14276 = vmatpush3.bf16.msra.mxu0 %v14275_v15 }
 0xe57   : > { %14277 = vmatprep.subr.bf16.mxu0 %v14750_v22 }
 0xe67   : > { %v6385_v43 = vpop.f32.mrb[46].mxu1 }
 0xe68   : > { %v13294_v44 = vpop.f32.mrb[47].mxu1  ;;  %13313 = vmatmul.mubr.msk.f32.vlgmr.msra.gmra.mrb[50].mxu1 %vm3699_vm2, %v6385_v43 }
 0xe69   : > { %13321 = vmatpush3.msra.mxu1 %v12020_v42  ;;  %13322 = vmatprep.mubr.msk.f32.mxu1 %vm14751_vm0, %v14752_v30  ;;  %v12065_v44 = vld [vmem:[%s16585_s1 + $0x1] ss:$0 sm:$0xff]  ;;  %s16592_s1 = sld [smem:[#allocation6_spill]] }
 0xe6a   : > { %14280 = vmatprep.subr.bf16.mxu1 %v14750_v22 }
 0xe6f   : > { %v6531_v45 = vpop.f32.mrb[48].mxu1 }
 0xe70   : > { %v13304_v47 = vpop.f32.mrb[49].mxu1  ;;  %13323 = vmatmul.mubr.msk.f32.vlgmr.msra.gmra.mrb[52].mxu1 %vm3699_vm2, %v6531_v45 }
 0xe71   : > { %13368 = vmatprep.mubr.msk.f32.mxu1 %vm14751_vm0, %v14752_v30  ;;  %14282 = vmatpush3.bf16.msra.mxu1 %v14281_v21  ;;  %v12066_v47 = vld [vmem:[%s16586_s28 + $0x1] ss:$0 sm:$0xff] }
 0xe72   : > { %14283 = vmatprep.subr.bf16.mxu1 %v14750_v22 }
 0xe75   : > { %14285 = vmatpush3.bf16.msra.mxu1 %v14284_v24  ;;  %v12091_v24 = vld [vmem:[%s16588_s0 + $0x1] ss:$0 sm:$0xff]  ;;  %s16596_s0 = sld [smem:[#allocation18_spill]] }
 0xe76   : > { %14286 = vmatprep.subr.bf16.mxu1 %v14750_v22 }
 0xe79   : > { %14288 = vmatpush3.bf16.msra.mxu1 %v14287_v27 }
 0xe7a   : > { %14289 = vmatprep.subr.bf16.mxu1 %v14750_v22 }
 0xe7d   : > { %14291 = vmatpush3.bf16.msra.mxu1 %v14290_v29 }
 0xe7e   : > { %14292 = vmatprep.subr.bf16.mxu1 %v14750_v22 }
 0xe81   : > { %14294 = vmatpush3.bf16.msra.mxu1 %v14293_v32 }
 0xe82   : > { %14295 = vmatprep.subr.bf16.mxu1 %v14750_v22 }
 0xe85   : > { %14297 = vmatpush3.bf16.msra.mxu1 %v14296_v33 }
 0xe86   : > { %14298 = vmatprep.subr.bf16.mxu1 %v14750_v22 }
 0xe89   : > { %14300 = vmatpush3.bf16.msra.mxu1 %v14299_v39 }
 0xe8a   : > { %14301 = vmatprep.subr.bf16.mxu1 %v14750_v22 }
 0xf1b   : > { %v6604_v48 = vpop.f32.mrb[58].mxu0 }
 0xf1c   : > { %v13309_v46 = vpop.f32.mrb[59].mxu0  ;;  %v6827_v51 = vsel %vm2807_vm1, %v6604_v48, 0.0 }
 0xf28   : > { %v6750_v49 = vpop.f32.mrb[60].mxu0 }
 0xf29   : > { %v13319_v36 = vpop.f32.mrb[61].mxu0  ;;  %v6830_v60 = vsel %vm2807_vm1, %v6750_v49, 0.0  ;;  %v12088_v49 = vld [vmem:[%s16584_s26 + $0xf0] sm:$0xff] }
 0xf2a   : > { %v12089_v36 = vld [vmem:[%s16584_s26 + $0xf8] sm:$0xff] }
 0xf3b   : > { %v6677_v50 = vpop.f32.mrb[50].mxu1 }
 0xf3c   : > { %v6828_v54 = vsel %vm2807_vm1, %v6677_v50, 0.0  ;;  %v13314_v55 = vpop.f32.mrb[51].mxu1  ;;  %v14302_v50 = vpack.c.bf16 %v12089_v36, %v12088_v49  ;;  %v7090_v49 = vld [vmem:[%s16595_s3 + $0x18] sm:$0xff] }
 0xf3d   : > { %v6829_v58 = vadd.f32 %v6828_v54, %v6827_v51  ;;  %v12072_v51 = vld [vmem:[%s16587_s2 + $0x1] ss:$0 sm:$0xff]  ;;  %v7108_v55 = vld [vmem:[%s16591_s15 + $0x8] sm:$0xff]  ;;  %s16593_s2 = sld [smem:[#allocation21_spill]] }
 0xf3e   : > { %14303 = vmatpush3.bf16.msra.mxu1 %v14302_v50  ;;  %v7107_v54 = vld [vmem:[%s16591_s15] sm:$0xff] }
 0xf3f   : > { %v6831_v61 = vadd.f32 %v6830_v60, %v6829_v58  ;;  %14328 = vmatprep.subr.bf16.mxu1 %v14750_v22 }
 0xf43   : > { %v6823_v62 = vpop.f32.mrb[52].mxu1  ;;  %v7127_v12 = vld [vmem:[%s16593_s2] sm:$0xff]  ;;  %v7128_v14 = vld [vmem:[%s16593_s2 + $0x8] sm:$0xff]  ;;  %v7129_v15 = vld [vmem:[%s16593_s2 + $0x10] sm:$0xff] }
 0xf44   : > { %v6832_v0 = vsel %vm2807_vm1, %v6823_v62, 0.0  ;;  %v13324_v2 = vpop.f32.mrb[53].mxu1  ;;  %v14329_v62 = vpack.c.bf16 %v7108_v55, %v7107_v54  ;;  %v7136_v18 = vld [vmem:[%s16593_s2 + $0x48] sm:$0xff]  ;;  %v7137_v20 = vld [vmem:[%s16593_s2 + $0x50] sm:$0xff]  ;;  %v7138_v21 = vld [vmem:[%s16593_s2 + $0x58] sm:$0xff] }
 0xf45   : > { %v6833_v3 = vadd.f32 %v6832_v0, %v6831_v61  ;;  %v7109_v0 = vld [vmem:[%s16591_s15 + $0x10] sm:$0xff]  ;;  %v7110_v2 = vld [vmem:[%s16591_s15 + $0x18] sm:$0xff]  ;;  %v14368_v23 = vpack.c.bf16 %v7138_v21, %v7137_v20  ;;  %v7112_v20 = vld [vmem:[%s16591_s15 + $0x28] sm:$0xff] }
 0xf47   : > { %v6840_v4 = vadd.f32 %v12062_v63, %v6833_v3  ;;  %v14332_v3 = vpack.c.bf16 %v7110_v2, %v7109_v0 }
 0xf49   : > { %v6841_v5 = vadd.f32 %v6840_v4, %v15670_v53  ;;  %v12069_v53 = vld [vmem:[%s16583_s23 + $0x30] sm:$0xff]  ;;  %v7115_v4 = vld [vmem:[%s16591_s15 + $0x40] sm:$0xff] }
 0xf4a   : > { %v14278_v17 = vpack.c.bf16 %v12070_v16, %v12069_v53  ;;  %v7130_v53 = vld [vmem:[%s16593_s2 + $0x18] sm:$0xff] }
 0xf4b   : > { %v6846_v6 = vsel %vm2807_vm1, %v6841_v5, 0.0  ;;  %v14356_v16 = vpack.c.bf16 %v7130_v53, %v7129_v15  ;;  %v7100_v15 = vld [vmem:[%s16595_s3 + $0x68] sm:$0xff] }
 0xf4c   : > { %6847 = vadd.xlane.f32.xlu0 %v6846_v6  ;;  %14279 = vmatpush3.bf16.msra.mxu0 %v14278_v17  ;;  %v2716_v6 = vld [vmem:[%s16592_s1] sm:$0xff]  ;;  %s16594_s1 = sld [smem:[#allocation20_spill]] }
 0xf4d   : > { %14304 = vmatprep.subr.bf16.mxu0 %v14750_v22  ;;  %v7135_v17 = vld [vmem:[%s16593_s2 + $0x40] sm:$0xff] }
 0xf4e   : > { %v14365_v19 = vpack.c.bf16 %v7136_v18, %v7135_v17  ;;  %v7102_v17 = vld [vmem:[%s16595_s3 + $0x78] sm:$0xff] }
 0xf52   : > { %v12104_v29 = vld [vmem:[%s16594_s1] ss:$0 sm:$0xff] }
 0xfd9   : > { %v6848_v7 = vpop.xlane.xlu0 %6847 }
 0xfda   : > { %v6849_v8 = vmul.f32 0.03125, %v6848_v7 }
 0xfdc   : > { %v6850_v9 = vsub.f32 %v6841_v5, %v6849_v8  ;;  %v7116_v5 = vld [vmem:[%s16591_s15 + $0x48] sm:$0xff]  ;;  %v15919_v8 = vadd.f32 %v2716_v6, %v15501_v1  ;;  %v14353_v1 = vpack.c.bf16 %v7128_v14, %v7127_v12  ;;  %v7098_v12 = vld [vmem:[%s16595_s3 + $0x58] sm:$0xff] }
 0xfdd   : > { %v14341_v7 = vpack.c.bf16 %v7116_v5, %v7115_v4  ;;  %v7093_v4 = vld [vmem:[%s16595_s3 + $0x30] sm:$0xff]  ;;  %v7094_v5 = vld [vmem:[%s16595_s3 + $0x38] sm:$0xff] }
 0xfde   : > { %v6851_v10 = vmul.f32 %v6850_v9, %v6850_v9  ;;  %v14314_v6 = vpack.c.bf16 %v7094_v5, %v7093_v4  ;;  %v12105_v4 = vld [vmem:[%s16594_s1 + $0x1] ss:$0 sm:$0xff] }
 0xfe0   : > { %v6852_v11 = vsel %vm2807_vm1, %v6851_v10, 0.0  ;;  %v7118_v10 = vld [vmem:[%s16591_s15 + $0x58] sm:$0xff] }
 0xfe1   : > { %6853 = vadd.xlane.f32.xlu1 %v6852_v11 }
0x106e   : > { %v6854_v40 = vpop.xlane.xlu1 %6853 }
0x106f   : > { %v6855_v41 = vmul.f32 0.03125, %v6854_v40 }
0x1071   : > { %v6856_v42 = vadd.f32 1e-05, %v6855_v41 }
0x1073   : > { %14630 = vrsqrt.f32 %v6856_v42 }
0x107d   : > { %v14631_v43 = vpop.eup %14630 }
0x107e   : > { %v6858_v45 = vmul.f32 %v14631_v43, %v6850_v9  ;;  %v7117_v9 = vld [vmem:[%s16591_s15 + $0x50] sm:$0xff] }
0x107f   : > { %v14344_v11 = vpack.c.bf16 %v7118_v10, %v7117_v9  ;;  %v7096_v9 = vld [vmem:[%s16595_s3 + $0x48] sm:$0xff] }
0x1080   : > { %v6865_v48 = vmul.f32 %v12065_v44, %v6858_v45  ;;  %v7087_v45 = vld [vmem:[%s16595_s3] sm:$0xff] }
0x1082   : > { %v15898_v46 = vadd.f32 %v12066_v47, %v6865_v48  ;;  %v7088_v47 = vld [vmem:[%s16595_s3 + $0x8] sm:$0xff] }
0x1083   : > { %v14305_v48 = vpack.c.bf16 %v7088_v47, %v7087_v45  ;;  %v7142_v45 = vld [vmem:[%s16593_s2 + $0x78] sm:$0xff] }
0x1084   : > { %13334 = vmatmul.mubr.msk.f32.vlgmr.msra.gmra.mrb[62].mxu0 %vm2807_vm1, %v15898_v46 }
0x1085   : > { %13379 = vmatprep.mubr.msk.f32.mxu0 %vm14751_vm0, %v14752_v30  ;;  %14306 = vmatpush3.bf16.msra.mxu0 %v14305_v48  ;;  %v12106_v48 = vld [vmem:[%s16594_s1 + $0x2] ss:$0 sm:$0xff] }
0x1086   : > { %14307 = vmatprep.subr.bf16.mxu0 %v14750_v22 }
0x1157   : > { %v6955_v58 = vpop.f32.mrb[62].mxu0 }
0x1158   : > { %v6956_v60 = vadd.f32 %v12072_v51, %v6955_v58  ;;  %v13335_v61 = vpop.f32.mrb[63].mxu0  ;;  %v12094_v58 = vld [vmem:[%s16589_s19 + $0x1] ss:$0 sm:$0xff] }
0x1159   : > { %v7091_v61 = vld [vmem:[%s16595_s3 + $0x20] sm:$0xff] }
0x115a   : > { %v6959_v63 = vmax.f32 %v6956_v60, 0.0 }
0x115c   : > { %13369 = vmatmul.mubr.f32.vlgmr.msra.gmra.mrb[54].mxu1 %v6959_v63  ;;  %v12095_v63 = vld [vmem:[%s16590_s11 + $0x1] ss:$0 sm:$0xff] }
0x115d   : > { %14330 = vmatpush3.bf16.msra.mxu1 %v14329_v62  ;;  %13423 = vmatprep.mubr.msk.f32.mxu1 %vm14751_vm0, %v14752_v30  ;;  %v7092_v62 = vld [vmem:[%s16595_s3 + $0x28] sm:$0xff] }
0x115e   : > { %14331 = vmatprep.subr.bf16.mxu1 %v14750_v22  ;;  %v14311_v2 = vpack.c.bf16 %v7092_v62, %v7091_v61 }
0x1161   : > { %14333 = vmatpush3.bf16.msra.mxu1 %v14332_v3 }
0x1162   : > { %14340 = vmatprep.subr.bf16.mxu1 %v14750_v22 }
0x1164   : > { %13424 = vmatmul.mubr.msk.f32.vlgmr.msra.gmra.mrb[56].mxu1 %vm2807_vm1, %v15919_v8 }
0x1165   : > { %14342 = vmatpush3.bf16.msra.mxu1 %v14341_v7  ;;  %13445 = vmatprep.mubr.msk.f32.mxu1 %vm14751_vm0, %v14752_v30  ;;  %v7095_v7 = vld [vmem:[%s16595_s3 + $0x40] sm:$0xff] }
0x1166   : > { %14343 = vmatprep.subr.bf16.mxu1 %v14750_v22  ;;  %v14317_v10 = vpack.c.bf16 %v7096_v9, %v7095_v7 }
0x1169   : > { %14345 = vmatpush3.bf16.msra.mxu1 %v14344_v11  ;;  %v7097_v11 = vld [vmem:[%s16595_s3 + $0x50] sm:$0xff] }
0x116a   : > { %14352 = vmatprep.subr.bf16.mxu1 %v14750_v22  ;;  %v14320_v14 = vpack.c.bf16 %v7098_v12, %v7097_v11  ;;  %v12099_v12 = vld [vmem:[%s16596_s0 + $0x3] ss:$0 sm:$0xff] }
0x116c   : > { %13446 = vmatmul.mubr.msk.f32.vlgmr.msra.gmra.mrb[58].mxu1 %vm2807_vm1, %v15919_v8 }
0x116d   : > { %14354 = vmatpush3.bf16.msra.mxu1 %v14353_v1  ;;  %13467 = vmatprep.mubr.msk.f32.mxu1 %vm14751_vm0, %v14752_v30  ;;  %v7099_v1 = vld [vmem:[%s16595_s3 + $0x60] sm:$0xff] }
0x116e   : > { %14355 = vmatprep.subr.bf16.mxu1 %v14750_v22  ;;  %v14323_v53 = vpack.c.bf16 %v7100_v15, %v7099_v1 }
0x1171   : > { %14357 = vmatpush3.bf16.msra.mxu1 %v14356_v16  ;;  %v7101_v16 = vld [vmem:[%s16595_s3 + $0x70] sm:$0xff] }
0x1172   : > { %14364 = vmatprep.subr.bf16.mxu1 %v14750_v22  ;;  %v14326_v18 = vpack.c.bf16 %v7102_v17, %v7101_v16 }
0x1174   : > { %13468 = vmatmul.mubr.msk.f32.vlgmr.msra.gmra.mrb[60].mxu1 %vm2807_vm1, %v15919_v8 }
0x1175   : > { %14366 = vmatpush3.bf16.msra.mxu1 %v14365_v19  ;;  %13489 = vmatprep.mubr.msk.f32.mxu1 %vm14751_vm0, %v14752_v30  ;;  %v7111_v19 = vld [vmem:[%s16591_s15 + $0x20] sm:$0xff] }
0x1176   : > { %14367 = vmatprep.subr.bf16.mxu1 %v14750_v22  ;;  %v14335_v21 = vpack.c.bf16 %v7112_v20, %v7111_v19 }
0x1179   : > { %14369 = vmatpush3.bf16.msra.mxu1 %v14368_v23  ;;  %v7113_v23 = vld [vmem:[%s16591_s15 + $0x30] sm:$0xff] }
0x117a   : > { %13503 = vmatprep.subr.mxu1 %v14752_v30 }
0x117c   : > { %13490 = vmatmul.mubr.msk.f32.vlgmr.msra.gmra.mrb[62].mxu1 %vm2807_vm1, %v15919_v8 }
0x117d   : > { %13505 = vmatprep.mubr.msk.f32.mxu1 %vm14751_vm0, %v14752_v30 }
0x122f   : > { %v7051_v25 = vpop.f32.mrb[54].mxu1 }
0x1230   : > { %v7052_v26 = vadd.f32 %v12091_v24, %v7051_v25  ;;  %v13370_v27 = vpop.f32.mrb[55].mxu1  ;;  %v7114_v24 = vld [vmem:[%s16591_s15 + $0x38] sm:$0xff] }
0x1231   : > { %v14338_v25 = vpack.c.bf16 %v7114_v24, %v7113_v23  ;;  %v7120_v27 = vld [vmem:[%s16591_s15 + $0x68] sm:$0xff] }
0x1232   : > { %v7055_v13 = vadd.f32 %v7052_v26, %v15898_v46  ;;  %v7089_v46 = vld [vmem:[%s16595_s3 + $0x10] sm:$0xff]  ;;  %v7119_v26 = vld [vmem:[%s16591_s15 + $0x60] sm:$0xff]  ;;  %s16597_s3 = sld [smem:[#allocation22_spill]] }
0x1233   : > { %v14308_v36 = vpack.c.bf16 %v7090_v49, %v7089_v46  ;;  %v12096_v49 = vld [vmem:[%s16596_s0] ss:$0 sm:$0xff] }
0x1234   : > { %v7060_v28 = vsel %vm2807_vm1, %v7055_v13, 0.0 }
0x1235   : > { %7061 = vadd.xlane.f32.xlu0 %v7060_v28  ;;  %14309 = vmatpush3.bf16.msra.mxu0 %v14308_v36  ;;  %v7121_v28 = vld [vmem:[%s16591_s15 + $0x70] sm:$0xff] }
0x1236   : > { %14310 = vmatprep.subr.bf16.mxu0 %v14750_v22 }
0x1237   : > { %v7552_v31 = vpop.f32.mrb[56].mxu1 }
0x1238   : > { %v7553_v56 = vadd.f32 %v12104_v29, %v7552_v31  ;;  %v13425_v32 = vpop.f32.mrb[57].mxu1  ;;  %v7122_v29 = vld [vmem:[%s16591_s15 + $0x78] sm:$0xff] }
0x1239   : > { %v14350_v31 = vpack.c.bf16 %v7122_v29, %v7121_v28  ;;  %v7132_v32 = vld [vmem:[%s16593_s2 + $0x28] sm:$0xff] }
0x123a   : > { %13504 = vmatpush3.xpose.msk.msra.mxu1 %vm3699_vm2, %v7553_v56  ;;  %v7131_v56 = vld [vmem:[%s16593_s2 + $0x20] sm:$0xff] }
0x123b   : > { %13508 = vmatprep.subr.mxu1 %v14752_v30 }
0x123f   : > { %v15960_v34 = vpop.f32.mrb[58].mxu1 }
0x1240   : > { %v13447_v35 = vpop.f32.mrb[59].mxu1  ;;  %v7693_v46 = vadd.f32 %v12106_v48, %v15960_v34 }
0x1241   : > { %v14359_v35 = vpack.c.bf16 %v7132_v32, %v7131_v56 }
0x1247   : > { %v15962_v33 = vpop.f32.mrb[60].mxu1 }
0x1248   : > { %v13469_v37 = vpop.f32.mrb[61].mxu1 }
0x1249   : > { %v7133_v37 = vld [vmem:[%s16593_s2 + $0x30] sm:$0xff] }
0x124f   : > { %v15964_v38 = vpop.f32.mrb[62].mxu1 }
0x1250   : > { %v13491_v39 = vpop.f32.mrb[63].mxu1 }
0x1251   : > { %v7134_v39 = vld [vmem:[%s16593_s2 + $0x38] sm:$0xff] }
0x12c2   : > { %v7062_v40 = vpop.xlane.xlu0 %7061 }
0x12c3   : > { %v7063_v41 = vmul.f32 0.03125, %v7062_v40  ;;  %v14362_v40 = vpack.c.bf16 %v7134_v39, %v7133_v37 }
0x12c5   : > { %v7064_v42 = vsub.f32 %v7055_v13, %v7063_v41  ;;  %v14347_v13 = vpack.c.bf16 %v7120_v27, %v7119_v26  ;;  %v7139_v41 = vld [vmem:[%s16593_s2 + $0x60] sm:$0xff] }
0x12c7   : > { %v7065_v43 = vmul.f32 %v7064_v42, %v7064_v42 }
0x12c9   : > { %v7066_v44 = vsel %vm2807_vm1, %v7065_v43, 0.0 }
0x12ca   : > { %7067 = vadd.xlane.f32.xlu1 %v7066_v44  ;;  %v7141_v44 = vld [vmem:[%s16593_s2 + $0x70] sm:$0xff] }
0x12cb   : > { %v14374_v47 = vpack.c.bf16 %v7142_v45, %v7141_v44 }
0x1357   : > { %v7068_v50 = vpop.xlane.xlu1 %7067 }
0x1358   : > { %v7069_v51 = vmul.f32 0.03125, %v7068_v50 }
0x135a   : > { %v7070_v54 = vadd.f32 1e-05, %v7069_v51 }
0x135c   : > { %14632 = vrsqrt.f32 %v7070_v54 }
0x1366   : > { %v14633_v55 = vpop.eup %14632 }
0x1367   : > { %v7072_v60 = vmul.f32 %v14633_v55, %v7064_v42  ;;  %v7140_v42 = vld [vmem:[%s16593_s2 + $0x68] sm:$0xff]  ;;  %s16598_s2 = sld [smem:[#allocation3_spill]] }
0x1368   : > { %v14371_v43 = vpack.c.bf16 %v7140_v42, %v7139_v41 }
0x1369   : > { %v7079_v0 = vmul.f32 %v12094_v58, %v7072_v60  ;;  %v12098_v58 = vld [vmem:[%s16596_s0 + $0x2] ss:$0 sm:$0xff]  ;;  %v12112_v60 = vld [vmem:[%s16597_s3] ss:$0 sm:$0xff] }
0x136b   : > { %v15977_v3 = vadd.f32 %v12095_v63, %v7079_v0  ;;  %v7857_v63 = vadd.f32 %v12112_v60, %v15962_v33 }
0x136d   : > { %13380 = vmatmul.mubr.msk.f32.vlgmr.msra.gmra.mrb[64].mxu0 %vm2807_vm1, %v15977_v3 }
0x136e   : > { %14312 = vmatpush3.bf16.msra.mxu0 %v14311_v2  ;;  %13390 = vmatprep.mubr.msk.f32.mxu0 %vm14751_vm0, %v14752_v30 }
0x136f   : > { %14313 = vmatprep.subr.bf16.mxu0 %v14750_v22 }
0x1372   : > { %14315 = vmatpush3.bf16.msra.mxu0 %v14314_v6  ;;  %v12097_v6 = vld [vmem:[%s16596_s0 + $0x1] ss:$0 sm:$0xff]  ;;  %s1854_s0 = scalar_lea.vmem %s16598_s2, %s16626_s10  ;;  %s16599_s2 = sld [smem:[#allocation23_spill]] }
0x1373   : > { %14316 = vmatprep.subr.bf16.mxu0 %v14750_v22 }
0x1375   : > { %13391 = vmatmul.mubr.msk.f32.vlgmr.msra.gmra.mrb[66].mxu0 %vm2807_vm1, %v15977_v3 }
0x1376   : > { %14318 = vmatpush3.bf16.msra.mxu0 %v14317_v10  ;;  %13401 = vmatprep.mubr.msk.f32.mxu0 %vm14751_vm0, %v14752_v30  ;;  %v12107_v10 = vld [vmem:[%s16594_s1 + $0x3] ss:$0 sm:$0xff]  ;;  %s16601_s1 = sld [smem:[#allocation29_spill]] }
0x1377   : > { %14319 = vmatprep.subr.bf16.mxu0 %v14750_v22 }
0x137a   : > { %14321 = vmatpush3.bf16.msra.mxu0 %v14320_v14 }
0x137b   : > { %14322 = vmatprep.subr.bf16.mxu0 %v14750_v22 }
0x137d   : > { %13402 = vmatmul.mubr.msk.f32.vlgmr.msra.gmra.mrb[68].mxu0 %vm2807_vm1, %v15977_v3 }
0x137e   : > { %14324 = vmatpush3.bf16.msra.mxu0 %v14323_v53  ;;  %13412 = vmatprep.mubr.msk.f32.mxu0 %vm14751_vm0, %v14752_v30  ;;  %v12113_v53 = vld [vmem:[%s16597_s3 + $0x1] ss:$0 sm:$0xff] }
0x137f   : > { %14325 = vmatprep.subr.bf16.mxu0 %v14750_v22 }
0x1382   : > { %14327 = vmatpush3.bf16.msra.mxu0 %v14326_v18 }
0x1383   : > { %14334 = vmatprep.subr.bf16.mxu0 %v14750_v22 }
0x1385   : > { %13413 = vmatmul.mubr.msk.f32.vlgmr.msra.gmra.mrb[70].mxu0 %vm2807_vm1, %v15977_v3 }
0x1386   : > { %14336 = vmatpush3.bf16.msra.mxu0 %v14335_v21  ;;  %13434 = vmatprep.mubr.msk.f32.mxu0 %vm14751_vm0, %v14752_v30  ;;  %v16086_v21 = vld [vmem:[%s1854_s0] sm:$0x1]  ;;  %s16600_s0 = sld [smem:[#allocation27_spill]] }
0x1387   : > { %14337 = vmatprep.subr.bf16.mxu0 %v14750_v22  ;;  %v1881_v23 = vmul.f32 -1e+09, %v16086_v21 }
0x1389   : > { %v8382_v24 = vrot.slane %v1881_v23, %v15547_v57 }
0x138a   : > { %14339 = vmatpush3.bf16.msra.mxu0 %v14338_v25 }
0x138b   : > { %14346 = vmatprep.subr.bf16.mxu0 %v14750_v22 }
0x138d   : > { %13435 = vmatmul.mubr.msk.f32.vlgmr.msra.gmra.mrb[72].mxu0 %vm2807_vm1, %v15919_v8 }
0x138e   : > { %14348 = vmatpush3.bf16.msra.mxu0 %v14347_v13  ;;  %13456 = vmatprep.mubr.msk.f32.mxu0 %vm14751_vm0, %v14752_v30 }
0x138f   : > { %14349 = vmatprep.subr.bf16.mxu0 %v14750_v22 }
0x1392   : > { %14351 = vmatpush3.bf16.msra.mxu0 %v14350_v31 }
0x1393   : > { %14358 = vmatprep.subr.bf16.mxu0 %v14750_v22 }
0x1395   : > { %13457 = vmatmul.mubr.msk.f32.vlgmr.msra.gmra.mrb[74].mxu0 %vm2807_vm1, %v15919_v8 }
0x1396   : > { %14360 = vmatpush3.bf16.msra.mxu0 %v14359_v35  ;;  %13478 = vmatprep.mubr.msk.f32.mxu0 %vm14751_vm0, %v14752_v30 }
0x1397   : > { %14361 = vmatprep.subr.bf16.mxu0 %v14750_v22 }
0x139a   : > { %14363 = vmatpush3.bf16.msra.mxu0 %v14362_v40 }
0x139b   : > { %14370 = vmatprep.subr.bf16.mxu0 %v14750_v22 }
0x139d   : > { %13479 = vmatmul.mubr.msk.f32.vlgmr.msra.gmra.mrb[76].mxu0 %vm2807_vm1, %v15919_v8 }
0x139e   : > { %14372 = vmatpush3.bf16.msra.mxu0 %v14371_v43  ;;  %13500 = vmatprep.mubr.msk.f32.mxu0 %vm14751_vm0, %v14752_v30 }
0x139f   : > { %14373 = vmatprep.subr.bf16.mxu0 %v14750_v22 }
0x13a2   : > { %14375 = vmatpush3.bf16.msra.mxu0 %v14374_v47 }
0x13a3   : > { %13513 = vmatprep.subr.mxu0 %v14752_v30 }
0x13a5   : > { %13501 = vmatmul.mubr.msk.f32.vlgmr.msra.gmra.mrb[78].mxu0 %vm2807_vm1, %v15919_v8 }
0x13a6   : > { %13515 = vmatprep.mubr.msk.f32.mxu0 %vm14751_vm0, %v14752_v30 }
0x13ab   : > { %13514 = vmatpush3.xpose.msk.msra.mxu0 %vm3699_vm2, %v7693_v46 }
0x13ac   : > { %13523 = vmatprep.subr.mxu0 %v14752_v30 }
0x1440   : > { %v7245_v36 = vpop.f32.mrb[64].mxu0 }
0x1441   : > { %v7246_v50 = vadd.f32 %v12096_v49, %v7245_v36  ;;  %v13381_v51 = vpop.f32.mrb[65].mxu0 }
0x1443   : > { %13506 = vmatmul.mubr.msk.f32.vlgmr.msra.gmra.mrb[64].mxu1 %vm3699_vm2, %v7246_v50 }
0x1444   : > { %13510 = vmatprep.mubr.msk.f32.mxu1 %vm14751_vm0, %v14752_v30 }
0x1448   : > { %v7315_v54 = vpop.f32.mrb[66].mxu0 }
0x1449   : > { %v13392_v55 = vpop.f32.mrb[67].mxu0  ;;  %v7316_v33 = vadd.f32 %v12097_v6, %v7315_v54 }
0x1450   : > { %v7385_v34 = vpop.f32.mrb[68].mxu0 }
0x1451   : > { %v7386_v61 = vadd.f32 %v12098_v58, %v7385_v34  ;;  %v13403_v62 = vpop.f32.mrb[69].mxu0 }
0x1453   : > { %13516 = vmatmul.mubr.msk.f32.vlgmr.msra.gmra.mrb[80].mxu0 %vm3699_vm2, %v7386_v61 }
0x1454   : > { %13524 = vmatpush3.msra.mxu0 %v7857_v63  ;;  %13525 = vmatprep.mubr.msk.f32.mxu0 %vm14751_vm0, %v14752_v30 }
0x1455   : > { %13533 = vmatprep.subr.mxu0 %v14752_v30 }
0x1458   : > { %v7455_v0 = vpop.f32.mrb[70].mxu0 }
0x1459   : > { %v13414_v2 = vpop.f32.mrb[71].mxu0  ;;  %v7456_v15 = vadd.f32 %v12099_v12, %v7455_v0 }
0x1460   : > { %v7622_v5 = vpop.f32.mrb[72].mxu0 }
0x1461   : > { %v7623_v7 = vadd.f32 %v12105_v4, %v7622_v5  ;;  %v13436_v9 = vpop.f32.mrb[73].mxu0 }
0x1463   : > { %13509 = vmatpush3.xpose.msk.msra.mxu1 %vm3699_vm2, %v7623_v7 }
0x1464   : > { %13518 = vmatprep.subr.mxu1 %v14752_v30 }
0x1466   : > { %13511 = vmatmul.mubr.msk.f32.vlgmr.msra.gmra.mrb[66].mxu1 %vm3699_vm2, %v7316_v33 }
0x1467   : > { %13520 = vmatprep.mubr.msk.f32.mxu1 %vm14751_vm0, %v14752_v30 }
0x1468   : > { %v7762_v11 = vpop.f32.mrb[74].mxu0 }
0x1469   : > { %v7763_v14 = vadd.f32 %v12107_v10, %v7762_v11  ;;  %v13458_v1 = vpop.f32.mrb[75].mxu0  ;;  %v12114_v10 = vld [vmem:[%s16597_s3 + $0x2] ss:$0 sm:$0xff] }
0x146b   : > { %13519 = vmatpush3.xpose.msk.msra.mxu1 %vm3699_vm2, %v7763_v14  ;;  %v7997_v14 = vadd.f32 %v12114_v10, %v15964_v38 }
0x146c   : > { %13528 = vmatprep.subr.mxu1 %v14752_v30 }
0x146e   : > { %13521 = vmatmul.mubr.msk.f32.vlgmr.msra.gmra.mrb[68].mxu1 %vm3699_vm2, %v7456_v15 }
0x146f   : > { %13530 = vmatprep.mubr.msk.f32.mxu1 %vm14751_vm0, %v14752_v30 }
0x1470   : > { %v7926_v16 = vpop.f32.mrb[76].mxu0 }
0x1471   : > { %v7927_v17 = vadd.f32 %v12113_v53, %v7926_v16  ;;  %v13480_v18 = vpop.f32.mrb[77].mxu0 }
0x1473   : > { %13529 = vmatpush3.msra.mxu1 %v7927_v17  ;;  %v12115_v17 = vld [vmem:[%s16597_s3 + $0x3] ss:$0 sm:$0xff]  ;;  %s16602_s3 = sld [smem:[#allocation31_spill]] }
0x1474   : > { %13538 = vmatprep.subr.mxu1 %v14752_v30 }
0x1478   : > { %v16082_v19 = vpop.f32.mrb[78].mxu0 }
0x1479   : > { %v13502_v20 = vpop.f32.mrb[79].mxu0  ;;  %v8067_v23 = vadd.f32 %v12115_v17, %v16082_v19  ;;  %v7148_v19 = vld [vmem:[%s16599_s2 + $0x8] sm:$0xff] }
0x147a   : > { %v9101_v10 = vld [vmem:[%s16602_s3 + $0x8] sm:$0xff] }
0x1516   : > { %v8142_v25 = vpop.f32.mrb[64].mxu1 }
0x1517   : > { %v8374_v26 = vmul.f32 0.35355338, %v8142_v25  ;;  %v13507_v27 = vpop.f32.mrb[65].mxu1 }
0x1518   : > { %v7149_v27 = vld [vmem:[%s16599_s2 + $0x10] sm:$0xff] }
0x1519   : > { %v8384_v13 = vadd.f32 %v8382_v24, %v8374_v26  ;;  %v7147_v26 = vld [vmem:[%s16599_s2] sm:$0xff] }
0x151b   : > { %v8388_v28 = vsel %vm3699_vm2, %v8384_v13, -inf }
0x151c   : > { %8389 = vmax.xlane.f32.xlu0 %v8388_v28 }
0x1526   : > { %v8294_v29 = vpop.f32.mrb[80].mxu0 }
0x1527   : > { %v8376_v31 = vmul.f32 0.35355338, %v8294_v29  ;;  %v13517_v56 = vpop.f32.mrb[81].mxu0  ;;  %v9060_v29 = vld [vmem:[%s16600_s0] sm:$0xff] }
0x1529   : > { %v8386_v32 = vadd.f32 %v8382_v24, %v8376_v31  ;;  %v9061_v31 = vld [vmem:[%s16600_s0 + $0x8] sm:$0xff] }
0x152a   : > { %v14377_v56 = vpack.c.bf16 %v9061_v31, %v9060_v29 }
0x152b   : > { %v8394_v35 = vsel %vm3699_vm2, %v8386_v32, -inf }
0x152c   : > { %8395 = vmax.xlane.f32.xlu0 %v8394_v35  ;;  %v9063_v35 = vld [vmem:[%s16600_s0 + $0x18] sm:$0xff] }
0x1539   : > { %v8218_v37 = vpop.f32.mrb[66].mxu1 }
0x153a   : > { %v8375_v39 = vmul.f32 0.35355338, %v8218_v37  ;;  %v13512_v40 = vpop.f32.mrb[67].mxu1 }
0x153c   : > { %v8385_v41 = vadd.f32 %v8382_v24, %v8375_v39 }
0x153e   : > { %v8391_v42 = vsel %vm3699_vm2, %v8385_v41, -inf }
0x153f   : > { %8392 = vmax.xlane.f32.xlu1 %v8391_v42  ;;  %v9069_v42 = vld [vmem:[%s16600_s0 + $0x48] sm:$0xff] }
0x1541   : > { %v8370_v43 = vpop.f32.mrb[68].mxu1 }
0x1542   : > { %v8377_v44 = vmul.f32 0.35355338, %v8370_v43  ;;  %v13522_v45 = vpop.f32.mrb[69].mxu1 }
0x1543   : > { %v9071_v45 = vld [vmem:[%s16600_s0 + $0x58] sm:$0xff] }
0x1544   : > { %v8387_v47 = vadd.f32 %v8382_v24, %v8377_v44  ;;  %v9070_v44 = vld [vmem:[%s16600_s0 + $0x50] sm:$0xff] }
0x1546   : > { %v8397_v48 = vsel %vm3699_vm2, %v8387_v47, -inf }
0x1547   : > { %8398 = vmax.xlane.f32.xlu1 %v8397_v48  ;;  %v9080_v48 = vld [vmem:[%s16601_s1] sm:$0xff] }
0x15a9   : > { %v8390_v46 = vpop.xlane.xlu0 %8389 }
0x15aa   : > { %v8400_v49 = vsub.f32 %v8384_v13, %v8390_v46  ;;  %v9081_v46 = vld [vmem:[%s16601_s1 + $0x8] sm:$0xff] }
0x15ac   : > { %v8404_v36 = vmul.f32 1.442695, %v8400_v49  ;;  %v14401_v49 = vpack.c.bf16 %v9081_v46, %v9080_v48  ;;  %v9106_v48 = vld [vmem:[%s16602_s3 + $0x30] sm:$0xff]  ;;  %v9107_v46 = vld [vmem:[%s16602_s3 + $0x38] sm:$0xff] }
0x15ae   : > { %14634 = vpow2.f32 %v8404_v36  ;;  %v9082_v36 = vld [vmem:[%s16601_s1 + $0x10] sm:$0xff] }
0x15b8   : > { %v14635_v50 = vpop.eup %14634 }
0x15b9   : > { %v8396_v51 = vpop.xlane.xlu0 %8395  ;;  %v8412_v54 = vsel %vm3699_vm2, %v14635_v50, 0.0 }
0x15ba   : > { %v8402_v55 = vsub.f32 %v8386_v32, %v8396_v51  ;;  %8413 = vadd.xlane.f32.xlu0 %v8412_v54  ;;  %v9062_v32 = vld [vmem:[%s16600_s0 + $0x10] sm:$0xff]  ;;  %v7150_v54 = vld [vmem:[%s16599_s2 + $0x18] sm:$0xff]  ;;  %s16605_s2 = sld [smem:[#allocation32_spill]] }
0x15bb   : > { %v14380_v40 = vpack.c.bf16 %v9063_v35, %v9062_v32  ;;  %v9087_v32 = vld [vmem:[%s16601_s1 + $0x38] sm:$0xff] }
0x15bc   : > { %v8408_v58 = vmul.f32 1.442695, %v8402_v55 }
0x15be   : > { %14636 = vpow2.f32 %v8408_v58  ;;  %v9088_v58 = vld [vmem:[%s16601_s1 + $0x40] sm:$0xff] }
0x15c8   : > { %v14637_v60 = vpop.eup %14636 }
0x15c9   : > { %v8418_v34 = vsel %vm3699_vm2, %v14637_v60, 0.0 }
0x15ca   : > { %8419 = vadd.xlane.f32.xlu0 %v8418_v34 }
0x15cc   : > { %v8393_v61 = vpop.xlane.xlu1 %8392 }
0x15cd   : > { %v8401_v62 = vsub.f32 %v8385_v41, %v8393_v61  ;;  %v9068_v41 = vld [vmem:[%s16600_s0 + $0x40] sm:$0xff] }
0x15ce   : > { %v14389_v43 = vpack.c.bf16 %v9069_v42, %v9068_v41  ;;  %v9094_v41 = vld [vmem:[%s16601_s1 + $0x70] sm:$0xff]  ;;  %v9095_v42 = vld [vmem:[%s16601_s1 + $0x78] sm:$0xff] }
0x15cf   : > { %v8406_v63 = vmul.f32 1.442695, %v8401_v62  ;;  %v9064_v62 = vld [vmem:[%s16600_s0 + $0x20] sm:$0xff] }
0x15d1   : > { %14638 = vpow2.f32 %v8406_v63  ;;  %v9065_v63 = vld [vmem:[%s16600_s0 + $0x28] sm:$0xff] }
0x15d4   : > { %v8399_v0 = vpop.xlane.xlu1 %8398 }
0x15d5   : > { %v8403_v2 = vsub.f32 %v8387_v47, %v8399_v0  ;;  %v14392_v47 = vpack.c.bf16 %v9071_v45, %v9070_v44  ;;  %v9090_v0 = vld [vmem:[%s16601_s1 + $0x50] sm:$0xff]  ;;  %v9104_v44 = vld [vmem:[%s16602_s3 + $0x20] sm:$0xff]  ;;  %v9105_v45 = vld [vmem:[%s16602_s3 + $0x28] sm:$0xff] }
0x15d7   : > { %v8410_v4 = vmul.f32 1.442695, %v8403_v2  ;;  %v9091_v2 = vld [vmem:[%s16601_s1 + $0x58] sm:$0xff] }
0x15d9   : > { %14640 = vpow2.f32 %v8410_v4  ;;  %v14383_v4 = vpack.c.bf16 %v9065_v63, %v9064_v62 }
0x15db   : > { %v14639_v5 = vpop.eup %14638 }
0x15dc   : > { %v8415_v6 = vsel %vm3699_vm2, %v14639_v5, 0.0 }
0x15dd   : > { %8416 = vadd.xlane.f32.xlu1 %v8415_v6  ;;  %v9066_v6 = vld [vmem:[%s16600_s0 + $0x30] sm:$0xff] }
0x15e3   : > { %v14641_v7 = vpop.eup %14640 }
0x15e4   : > { %v8421_v9 = vsel %vm3699_vm2, %v14641_v7, 0.0 }
0x15e5   : > { %8422 = vadd.xlane.f32.xlu1 %v8421_v9 }
0x1647   : > { %v8414_v33 = vpop.xlane.xlu0 %8413 }
0x1648   : > { %14642 = vrcp.f32 %v8414_v33  ;;  %v9100_v33 = vld [vmem:[%s16602_s3] sm:$0xff] }
0x1652   : > { %v14643_v11 = vpop.eup %14642 }
0x1653   : > { %v8428_v12 = vmul.f32 %v14643_v11, %v14635_v50  ;;  %v9083_v50 = vld [vmem:[%s16601_s1 + $0x18] sm:$0xff] }
0x1654   : > { %v14404_v51 = vpack.c.bf16 %v9083_v50, %v9082_v36  ;;  %v9112_v36 = vld [vmem:[%s16602_s3 + $0x60] sm:$0xff]  ;;  %v9113_v50 = vld [vmem:[%s16602_s3 + $0x68] sm:$0xff] }
0x1655   : > { %13526 = vmatmul.mubr.msk.f32.vlgmr.msra.gmra.mrb[82].mxu0 %vm3699_vm2, %v8428_v12 }
0x1656   : > { %13534 = vmatpush3.msra.mxu0 %v7997_v14  ;;  %13535 = vmatprep.mubr.msk.f32.mxu0 %vm14751_vm0, %v14752_v30  ;;  %v14425_v14 = vpack.c.bf16 %v9101_v10, %v9100_v33 }
0x1657   : > { %v8420_v1 = vpop.xlane.xlu0 %8419  ;;  %13543 = vmatprep.subr.mxu0 %v14752_v30 }
0x1658   : > { %14644 = vrcp.f32 %v8420_v1  ;;  %v9072_v1 = vld [vmem:[%s16600_s0 + $0x60] sm:$0xff] }
0x1662   : > { %v14645_v15 = vpop.eup %14644 }
0x1663   : > { %v8430_v53 = vmul.f32 %v14645_v15, %v14637_v60  ;;  %v9089_v60 = vld [vmem:[%s16601_s1 + $0x48] sm:$0xff] }
0x1664   : > { %v14413_v61 = vpack.c.bf16 %v9089_v60, %v9088_v58  ;;  %v9073_v15 = vld [vmem:[%s16600_s0 + $0x68] sm:$0xff] }
0x1665   : > { %13536 = vmatmul.mubr.msk.f32.vlgmr.msra.gmra.mrb[84].mxu0 %vm3699_vm2, %v8430_v53  ;;  %v9102_v53 = vld [vmem:[%s16602_s3 + $0x10] sm:$0xff] }
0x1666   : > { %13545 = vmatprep.mubr.msk.f32.mxu0 %vm14751_vm0, %v14752_v30  ;;  %13544 = vmatpush3.msra.mxu0 %v7147_v26 }
0x1667   : > { %13553 = vmatprep.subr.mxu0 %v14752_v30 }
0x166a   : > { %v8417_v16 = vpop.xlane.xlu1 %8416 }
0x166b   : > { %14646 = vrcp.f32 %v8417_v16  ;;  %v9103_v16 = vld [vmem:[%s16602_s3 + $0x18] sm:$0xff] }
0x166c   : > { %v14428_v17 = vpack.c.bf16 %v9103_v16, %v9102_v53 }
0x1672   : > { %v8423_v38 = vpop.xlane.xlu1 %8422 }
0x1673   : > { %14648 = vrcp.f32 %v8423_v38  ;;  %v14395_v38 = vpack.c.bf16 %v9073_v15, %v9072_v1 }
0x1675   : > { %v14647_v18 = vpop.eup %14646 }
0x1676   : > { %v8429_v20 = vmul.f32 %v14647_v18, %v14639_v5  ;;  %v14416_v5 = vpack.c.bf16 %v9091_v2, %v9090_v0  ;;  %v9074_v18 = vld [vmem:[%s16600_s0 + $0x70] sm:$0xff] }
0x1678   : > { %13531 = vmatmul.mubr.msk.f32.vlgmr.msra.gmra.mrb[70].mxu1 %vm3699_vm2, %v8429_v20  ;;  %v9075_v20 = vld [vmem:[%s16600_s0 + $0x78] sm:$0xff] }
0x1679   : > { %13539 = vmatpush3.msra.mxu1 %v8067_v23  ;;  %13540 = vmatprep.mubr.msk.f32.mxu1 %vm14751_vm0, %v14752_v30  ;;  %v9108_v23 = vld [vmem:[%s16602_s3 + $0x40] sm:$0xff] }
0x167a   : > { %13548 = vmatprep.subr.mxu1 %v14752_v30 }
0x167d   : > { %v14649_v24 = vpop.eup %14648 }
0x167e   : > { %v8431_v25 = vmul.f32 %v14649_v24, %v14641_v7  ;;  %v9067_v7 = vld [vmem:[%s16600_s0 + $0x38] sm:$0xff]  ;;  %v9109_v24 = vld [vmem:[%s16602_s3 + $0x48] sm:$0xff]  ;;  %s16603_s0 = sld [smem:[#allocation30_spill]] }
0x167f   : > { %v14386_v12 = vpack.c.bf16 %v9067_v7, %v9066_v6  ;;  %v14437_v26 = vpack.c.bf16 %v9109_v24, %v9108_v23 }
0x1680   : > { %13541 = vmatmul.mubr.msk.f32.vlgmr.msra.gmra.mrb[72].mxu1 %vm3699_vm2, %v8431_v25  ;;  %v14398_v25 = vpack.c.bf16 %v9075_v20, %v9074_v18 }
0x1681   : > { %13550 = vmatprep.mubr.msk.f32.mxu1 %vm14751_vm0, %v14752_v30  ;;  %13549 = vmatpush3.msra.mxu1 %v7148_v19  ;;  %v9084_v19 = vld [vmem:[%s16601_s1 + $0x20] sm:$0xff] }
0x1682   : > { %13558 = vmatprep.subr.mxu1 %v14752_v30 }
0x1684   : > { %v12149_v23 = vld [vmem:[%s16603_s0 + $0x2] ss:$0 sm:$0xff] }
0x1728   : > { %v8501_v13 = vpop.f32.mrb[82].mxu0 }
0x1729   : > { %v13527_v28 = vpop.f32.mrb[83].mxu0  ;;  %13546 = vmatmul.mubr.msk.f32.vlgmr.msra.gmra.mrb[86].mxu0 %vm3699_vm2, %v8501_v13  ;;  %v9110_v13 = vld [vmem:[%s16602_s3 + $0x50] sm:$0xff] }
0x172a   : > { %13554 = vmatpush3.msra.mxu0 %v7149_v27  ;;  %13555 = vmatprep.mubr.msk.f32.mxu0 %vm14751_vm0, %v14752_v30  ;;  %v9085_v27 = vld [vmem:[%s16601_s1 + $0x28] sm:$0xff]  ;;  %v9111_v28 = vld [vmem:[%s16602_s3 + $0x58] sm:$0xff] }
0x172b   : > { %14376 = vmatprep.subr.bf16.mxu0 %v14750_v22  ;;  %v14407_v29 = vpack.c.bf16 %v9085_v27, %v9084_v19  ;;  %v14440_v31 = vpack.c.bf16 %v9111_v28, %v9110_v13 }
0x1738   : > { %v8647_v37 = vpop.f32.mrb[84].mxu0 }
0x1739   : > { %v13537_v39 = vpop.f32.mrb[85].mxu0  ;;  %13556 = vmatmul.mubr.msk.f32.vlgmr.msra.gmra.mrb[88].mxu0 %vm3699_vm2, %v8647_v37  ;;  %v9092_v37 = vld [vmem:[%s16601_s1 + $0x60] sm:$0xff] }
0x173a   : > { %14378 = vmatpush3.bf16.msra.mxu0 %v14377_v56  ;;  %13571 = vmatprep.mubr.msk.f32.mxu0 %vm14751_vm0, %v14752_v30  ;;  %v9086_v56 = vld [vmem:[%s16601_s1 + $0x30] sm:$0xff]  ;;  %v9093_v39 = vld [vmem:[%s16601_s1 + $0x68] sm:$0xff]  ;;  %s16604_s1 = sld [smem:[#allocation28_spill]] }
0x173b   : > { %14379 = vmatprep.subr.bf16.mxu0 %v14750_v22  ;;  %v14410_v35 = vpack.c.bf16 %v9087_v32, %v9086_v56 }
0x173e   : > { %14381 = vmatpush3.bf16.msra.mxu0 %v14380_v40  ;;  %v14419_v40 = vpack.c.bf16 %v9093_v39, %v9092_v37 }
0x173f   : > { %14388 = vmatprep.subr.bf16.mxu0 %v14750_v22 }
0x1740   : > { %v12139_v1 = vld [vmem:[%s16604_s1] ss:$0 sm:$0xff] }
0x1741   : > { %13572 = vmatmul.mubr.msk.f32.vlgmr.msra.gmra.mrb[90].mxu0 %vm2807_vm1, %v15919_v8 }
0x1742   : > { %14390 = vmatpush3.bf16.msra.mxu0 %v14389_v43  ;;  %13593 = vmatprep.mubr.msk.f32.mxu0 %vm14751_vm0, %v14752_v30  ;;  %v14422_v43 = vpack.c.bf16 %v9095_v42, %v9094_v41  ;;  %v12148_v41 = vld [vmem:[%s16603_s0 + $0x1] ss:$0 sm:$0xff] }
0x1743   : > { %14391 = vmatprep.subr.bf16.mxu0 %v14750_v22 }
0x1746   : > { %14393 = vmatpush3.bf16.msra.mxu0 %v14392_v47  ;;  %v14431_v47 = vpack.c.bf16 %v9105_v45, %v9104_v44 }
0x1747   : > { %14400 = vmatprep.subr.bf16.mxu0 %v14750_v22 }
0x1749   : > { %13594 = vmatmul.mubr.msk.f32.vlgmr.msra.gmra.mrb[92].mxu0 %vm2807_vm1, %v15919_v8 }
0x174a   : > { %14402 = vmatpush3.bf16.msra.mxu0 %v14401_v49  ;;  %13615 = vmatprep.mubr.msk.f32.mxu0 %vm14751_vm0, %v14752_v30  ;;  %v14434_v49 = vpack.c.bf16 %v9107_v46, %v9106_v48  ;;  %v12150_v48 = vld [vmem:[%s16603_s0 + $0x3] ss:$0 sm:$0xff] }
0x174b   : > { %v8574_v55 = vpop.f32.mrb[70].mxu1  ;;  %14403 = vmatprep.subr.bf16.mxu0 %v14750_v22 }
0x174c   : > { %v13532_v34 = vpop.f32.mrb[71].mxu1  ;;  %13551 = vmatmul.mubr.msk.f32.vlgmr.msra.gmra.mrb[74].mxu1 %vm3699_vm2, %v8574_v55  ;;  %v9115_v55 = vld [vmem:[%s16602_s3 + $0x78] sm:$0xff] }
0x174d   : > { %13559 = vmatpush3.msra.mxu1 %v7150_v54  ;;  %13560 = vmatprep.mubr.msk.f32.mxu1 %vm14751_vm0, %v14752_v30  ;;  %v9114_v54 = vld [vmem:[%s16602_s3 + $0x70] sm:$0xff]  ;;  %s16622_s3 = sld [smem:[#allocation47_spill]] }
0x174e   : > { %14405 = vmatpush3.bf16.msra.mxu0 %v14404_v51  ;;  %14382 = vmatprep.subr.bf16.mxu1 %v14750_v22  ;;  %v14443_v51 = vpack.c.bf16 %v9113_v50, %v9112_v36  ;;  %v14446_v58 = vpack.c.bf16 %v9115_v55, %v9114_v54  ;;  %v12156_v54 = vld [vmem:[%s16605_s2 + $0x1] ss:$0 sm:$0xff] }
0x174f   : > { %14412 = vmatprep.subr.bf16.mxu0 %v14750_v22 }
0x1751   : > { %13616 = vmatmul.mubr.msk.f32.vlgmr.msra.gmra.mrb[94].mxu0 %vm2807_vm1, %v15977_v3 }
0x1752   : > { %14414 = vmatpush3.bf16.msra.mxu0 %v14413_v61  ;;  %13637 = vmatprep.mubr.msk.f32.mxu0 %vm14751_vm0, %v14752_v30 }
0x1753   : > { %v8720_v9 = vpop.f32.mrb[72].mxu1  ;;  %14415 = vmatprep.subr.bf16.mxu0 %v14750_v22 }
0x1754   : > { %v13542_v11 = vpop.f32.mrb[73].mxu1  ;;  %13561 = vmatmul.mubr.msk.f32.vlgmr.msra.gmra.mrb[76].mxu1 %vm3699_vm2, %v8720_v9 }
0x1755   : > { %14384 = vmatpush3.bf16.msra.mxu1 %v14383_v4  ;;  %13582 = vmatprep.mubr.msk.f32.mxu1 %vm14751_vm0, %v14752_v30  ;;  %v12147_v11 = vld [vmem:[%s16603_s0] ss:$0 sm:$0xff]  ;;  %s16606_s0 = sld [smem:[#allocation24_spill]] }
0x1756   : > { %14417 = vmatpush3.bf16.msra.mxu0 %v14416_v5  ;;  %14385 = vmatprep.subr.bf16.mxu1 %v14750_v22 }
0x1757   : > { %14424 = vmatprep.subr.bf16.mxu0 %v14750_v22 }
0x1759   : > { %14387 = vmatpush3.bf16.msra.mxu1 %v14386_v12  ;;  %13638 = vmatmul.mubr.msk.f32.vlgmr.msra.gmra.mrb[96].mxu0 %vm2807_vm1, %v15977_v3 }
0x175a   : > { %14426 = vmatpush3.bf16.msra.mxu0 %v14425_v14  ;;  %14394 = vmatprep.subr.bf16.mxu1 %v14750_v22 }
0x175b   : > { %14427 = vmatprep.subr.bf16.mxu0 %v14750_v22  ;;  %13659 = vmatprep.mubr.msk.f32.mxu0 %vm14751_vm0, %v14752_v30 }
0x175c   : > { %13583 = vmatmul.mubr.msk.f32.vlgmr.msra.gmra.mrb[78].mxu1 %vm2807_vm1, %v15919_v8 }
0x175d   : > { %14396 = vmatpush3.bf16.msra.mxu1 %v14395_v38  ;;  %13604 = vmatprep.mubr.msk.f32.mxu1 %vm14751_vm0, %v14752_v30 }
0x175e   : > { %14429 = vmatpush3.bf16.msra.mxu0 %v14428_v17  ;;  %14397 = vmatprep.subr.bf16.mxu1 %v14750_v22 }
0x175f   : > { %14436 = vmatprep.subr.bf16.mxu0 %v14750_v22 }
0x1761   : > { %14399 = vmatpush3.bf16.msra.mxu1 %v14398_v25  ;;  %13660 = vmatmul.mubr.msk.f32.vlgmr.msra.gmra.mrb[98].mxu0 %vm2807_vm1, %v15977_v3  ;;  %v12141_v25 = vld [vmem:[%s16604_s1 + $0x2] ss:$0 sm:$0xff] }
0x1762   : > { %14438 = vmatpush3.bf16.msra.mxu0 %v14437_v26  ;;  %14406 = vmatprep.subr.bf16.mxu1 %v14750_v22 }
0x1763   : > { %14439 = vmatprep.subr.bf16.mxu0 %v14750_v22  ;;  %13681 = vmatprep.mubr.msk.f32.mxu0 %vm14751_vm0, %v14752_v30 }
0x1764   : > { %13605 = vmatmul.mubr.msk.f32.vlgmr.msra.gmra.mrb[80].mxu1 %vm2807_vm1, %v15919_v8 }
0x1765   : > { %14408 = vmatpush3.bf16.msra.mxu1 %v14407_v29  ;;  %13626 = vmatprep.mubr.msk.f32.mxu1 %vm14751_vm0, %v14752_v30  ;;  %v12155_v29 = vld [vmem:[%s16605_s2] ss:$0 sm:$0xff] }
0x1766   : > { %14441 = vmatpush3.bf16.msra.mxu0 %v14440_v31  ;;  %14409 = vmatprep.subr.bf16.mxu1 %v14750_v22 }
0x1767   : > { %13695 = vmatprep.subr.mxu0 %v14752_v30 }
0x1769   : > { %14411 = vmatpush3.bf16.msra.mxu1 %v14410_v35  ;;  %13682 = vmatmul.mubr.msk.f32.vlgmr.msra.gmra.mrb[100].mxu0 %vm2807_vm1, %v15977_v3 }
0x176a   : > { %14418 = vmatprep.subr.bf16.mxu1 %v14750_v22  ;;  %13697 = vmatprep.mubr.msk.f32.mxu0 %vm14751_vm0, %v14752_v30 }
0x176c   : > { %13627 = vmatmul.mubr.msk.f32.vlgmr.msra.gmra.mrb[82].mxu1 %vm2807_vm1, %v15977_v3 }
0x176d   : > { %14420 = vmatpush3.bf16.msra.mxu1 %v14419_v40  ;;  %13648 = vmatprep.mubr.msk.f32.mxu1 %vm14751_vm0, %v14752_v30 }
0x176e   : > { %14421 = vmatprep.subr.bf16.mxu1 %v14750_v22 }
0x1771   : > { %14423 = vmatpush3.bf16.msra.mxu1 %v14422_v43  ;;  %v12140_v43 = vld [vmem:[%s16604_s1 + $0x1] ss:$0 sm:$0xff] }
0x1772   : > { %14430 = vmatprep.subr.bf16.mxu1 %v14750_v22 }
0x1774   : > { %13649 = vmatmul.mubr.msk.f32.vlgmr.msra.gmra.mrb[84].mxu1 %vm2807_vm1, %v15977_v3 }
0x1775   : > { %14432 = vmatpush3.bf16.msra.mxu1 %v14431_v47  ;;  %13670 = vmatprep.mubr.msk.f32.mxu1 %vm14751_vm0, %v14752_v30 }
0x1776   : > { %14433 = vmatprep.subr.bf16.mxu1 %v14750_v22 }
0x1779   : > { %14435 = vmatpush3.bf16.msra.mxu1 %v14434_v49  ;;  %v12142_v49 = vld [vmem:[%s16604_s1 + $0x3] ss:$0 sm:$0xff]  ;;  %s16608_s1 = sld [smem:[#allocation25_spill]] }
0x177a   : > { %14442 = vmatprep.subr.bf16.mxu1 %v14750_v22 }
0x177c   : > { %13671 = vmatmul.mubr.msk.f32.vlgmr.msra.gmra.mrb[86].mxu1 %vm2807_vm1, %v15977_v3 }
0x177d   : > { %14444 = vmatpush3.bf16.msra.mxu1 %v14443_v51  ;;  %13692 = vmatprep.mubr.msk.f32.mxu1 %vm14751_vm0, %v14752_v30 }
0x177e   : > { %14445 = vmatprep.subr.bf16.mxu1 %v14750_v22 }
0x1781   : > { %14447 = vmatpush3.bf16.msra.mxu1 %v14446_v58 }
0x1782   : > { %13700 = vmatprep.subr.mxu1 %v14752_v30 }
0x1784   : > { %13693 = vmatmul.mubr.msk.f32.vlgmr.msra.gmra.mrb[88].mxu1 %vm2807_vm1, %v15977_v3 }
0x1785   : > { %13702 = vmatprep.mubr.msk.f32.mxu1 %vm14751_vm0, %v14752_v30 }
0x17fc   : > { %v8793_v60 = vpop.f32.mrb[86].mxu0 }
0x17fd   : > { %v13547_v34 = vpop.f32.mrb[87].mxu0  ;;  %v9016_v6 = vsel %vm2807_vm1, %v8793_v60, 0.0 }
0x180c   : > { %v8939_v61 = vpop.f32.mrb[88].mxu0 }
0x180d   : > { %v13557_v62 = vpop.f32.mrb[89].mxu0  ;;  %v9019_v10 = vsel %vm2807_vm1, %v8939_v61, 0.0 }
0x1814   : > { %v9215_v63 = vpop.f32.mrb[90].mxu0 }
0x1815   : > { %v13573_v0 = vpop.f32.mrb[91].mxu0  ;;  %v9216_v38 = vadd.f32 %v12139_v1, %v9215_v63 }
0x181c   : > { %v9355_v2 = vpop.f32.mrb[92].mxu0 }
0x181d   : > { %v13595_v4 = vpop.f32.mrb[93].mxu0  ;;  %v9356_v13 = vadd.f32 %v12141_v25, %v9355_v2 }
0x181f   : > { %v8866_v5 = vpop.f32.mrb[74].mxu1 }
0x1820   : > { %v9017_v7 = vsel %vm2807_vm1, %v8866_v5, 0.0  ;;  %v13552_v9 = vpop.f32.mrb[75].mxu1 }
0x1821   : > { %v9018_v33 = vadd.f32 %v9017_v7, %v9016_v6 }
0x1823   : > { %v9020_v12 = vadd.f32 %v9019_v10, %v9018_v33 }
0x1824   : > { %v9519_v14 = vpop.f32.mrb[94].mxu0 }
0x1825   : > { %v9520_v15 = vadd.f32 %v12147_v11, %v9519_v14  ;;  %v13617_v53 = vpop.f32.mrb[95].mxu0 }
0x1827   : > { %13696 = vmatpush3.xpose.msk.msra.mxu0 %vm3699_vm2, %v9520_v15  ;;  %v9012_v16 = vpop.f32.mrb[76].mxu1 }
0x1828   : > { %v9021_v17 = vsel %vm2807_vm1, %v9012_v16, 0.0  ;;  %v13562_v18 = vpop.f32.mrb[77].mxu1  ;;  %13705 = vmatprep.subr.mxu0 %v14752_v30 }
0x1829   : > { %v16264_v20 = vadd.f32 %v9021_v17, %v9020_v12 }
0x182a   : > { %13698 = vmatmul.mubr.msk.f32.vlgmr.msra.gmra.mrb[102].mxu0 %vm3699_vm2, %v9216_v38 }
0x182b   : > { %13707 = vmatprep.mubr.msk.f32.mxu0 %vm14751_vm0, %v14752_v30 }
0x182c   : > { %v9659_v24 = vpop.f32.mrb[96].mxu0 }
0x182d   : > { %v9660_v26 = vadd.f32 %v12149_v23, %v9659_v24  ;;  %v13639_v19 = vpop.f32.mrb[97].mxu0 }
0x182f   : > { %v9285_v27 = vpop.f32.mrb[78].mxu1  ;;  %13706 = vmatpush3.xpose.msk.msra.mxu0 %vm3699_vm2, %v9660_v26 }
0x1830   : > { %v13584_v28 = vpop.f32.mrb[79].mxu1  ;;  %13715 = vmatprep.subr.mxu0 %v14752_v30  ;;  %v9286_v47 = vadd.f32 %v12140_v43, %v9285_v27 }
0x1832   : > { %13708 = vmatmul.mubr.msk.f32.vlgmr.msra.gmra.mrb[104].mxu0 %vm3699_vm2, %v9356_v13 }
0x1833   : > { %13717 = vmatprep.mubr.msk.f32.mxu0 %vm14751_vm0, %v14752_v30 }
0x1834   : > { %v9823_v31 = vpop.f32.mrb[98].mxu0 }
0x1835   : > { %v9824_v56 = vadd.f32 %v12155_v29, %v9823_v31  ;;  %v13661_v32 = vpop.f32.mrb[99].mxu0 }
0x1837   : > { %v9425_v35 = vpop.f32.mrb[80].mxu1  ;;  %13716 = vmatpush3.msra.mxu0 %v9824_v56 }
0x1838   : > { %v13606_v37 = vpop.f32.mrb[81].mxu1  ;;  %13725 = vmatprep.subr.mxu0 %v14752_v30  ;;  %v9426_v51 = vadd.f32 %v12142_v49, %v9425_v35 }
0x183c   : > { %v16278_v39 = vpop.f32.mrb[100].mxu0 }
0x183d   : > { %v13683_v40 = vpop.f32.mrb[101].mxu0 }
0x183f   : > { %v9589_v42 = vpop.f32.mrb[82].mxu1 }
0x1840   : > { %v9590_v44 = vadd.f32 %v12148_v41, %v9589_v42  ;;  %v13628_v45 = vpop.f32.mrb[83].mxu1  ;;  %v12136_v42 = vld [vmem:[%s16606_s0] ss:$0 sm:$0xff]  ;;  %s16607_s0 = sld [smem:[#allocation33_spill]] }
0x1841   : > { %v9029_v43 = vadd.f32 %v12136_v42, %v16264_v20 }
0x1842   : > { %13701 = vmatpush3.xpose.msk.msra.mxu1 %vm3699_vm2, %v9590_v44 }
0x1843   : > { %13710 = vmatprep.subr.mxu1 %v14752_v30 }
0x1845   : > { %13703 = vmatmul.mubr.msk.f32.vlgmr.msra.gmra.mrb[90].mxu1 %vm3699_vm2, %v9286_v47  ;;  %v9030_v47 = vadd.f32 %v9029_v43, %v15977_v3 }
0x1846   : > { %13712 = vmatprep.mubr.msk.f32.mxu1 %vm14751_vm0, %v14752_v30 }
0x1847   : > { %v9729_v46 = vpop.f32.mrb[84].mxu1 }
0x1848   : > { %v9730_v36 = vadd.f32 %v12150_v48, %v9729_v46  ;;  %v13650_v50 = vpop.f32.mrb[85].mxu1  ;;  %v9033_v48 = vsel %vm2807_vm1, %v9030_v47, 0.0 }
0x184a   : > { %13711 = vmatpush3.xpose.msk.msra.mxu1 %vm3699_vm2, %v9730_v36  ;;  %v12157_v36 = vld [vmem:[%s16605_s2 + $0x2] ss:$0 sm:$0xff] }
0x184b   : > { %13720 = vmatprep.subr.mxu1 %v14752_v30 }
0x184d   : > { %13713 = vmatmul.mubr.msk.f32.vlgmr.msra.gmra.mrb[92].mxu1 %vm3699_vm2, %v9426_v51 }
0x184e   : > { %13722 = vmatprep.mubr.msk.f32.mxu1 %vm14751_vm0, %v14752_v30 }
0x184f   : > { %v9893_v55 = vpop.f32.mrb[86].mxu1 }
0x1850   : > { %v9894_v58 = vadd.f32 %v12156_v54, %v9893_v55  ;;  %v13672_v60 = vpop.f32.mrb[87].mxu1  ;;  %v9964_v54 = vadd.f32 %v12157_v36, %v16278_v39  ;;  %v12158_v39 = vld [vmem:[%s16605_s2 + $0x3] ss:$0 sm:$0xff]  ;;  %s16609_s2 = sld [smem:[#allocation26_spill]] }
0x1852   : > { %13721 = vmatpush3.msra.mxu1 %v9894_v58 }
0x1853   : > { %13730 = vmatprep.subr.mxu1 %v14752_v30 }
0x1857   : > { %v16296_v34 = vpop.f32.mrb[88].mxu1 }
0x1858   : > { %v13694_v61 = vpop.f32.mrb[89].mxu1 }
0x18fd   : > { %v10109_v62 = vpop.f32.mrb[102].mxu0 }
0x18fe   : > { %v10341_v63 = vmul.f32 0.35355338, %v10109_v62  ;;  %v13699_v0 = vpop.f32.mrb[103].mxu0 }
0x1900   : > { %v10345_v2 = vadd.f32 %v10341_v63, %v15550_v59  ;;  %v10034_v63 = vadd.f32 %v12158_v39, %v16296_v34  ;;  %v9120_v34 = vld [vmem:[%s16607_s0] sm:$0xff] }
0x1902   : > { %v10349_v4 = vsel %vm3699_vm2, %v10345_v2, -inf }
0x1903   : > { %10350 = vmax.xlane.f32.xlu0 %v10349_v4 }
0x1905   : > { %v10261_v5 = vpop.f32.mrb[104].mxu0 }
0x1906   : > { %v10343_v6 = vmul.f32 0.35355338, %v10261_v5  ;;  %v13709_v7 = vpop.f32.mrb[105].mxu0 }
0x1908   : > { %v10347_v9 = vadd.f32 %v10343_v6, %v15550_v59 }
0x190a   : > { %v10355_v33 = vsel %vm3699_vm2, %v10347_v9, -inf }
0x190b   : > { %10356 = vmax.xlane.f32.xlu0 %v10355_v33 }
0x1918   : > { %v10185_v10 = vpop.f32.mrb[90].mxu1 }
0x1919   : > { %v10342_v11 = vmul.f32 0.35355338, %v10185_v10  ;;  %v13704_v12 = vpop.f32.mrb[91].mxu1 }
0x191b   : > { %v10346_v14 = vadd.f32 %v10342_v11, %v15550_v59 }
0x191d   : > { %v10352_v1 = vsel %vm3699_vm2, %v10346_v14, -inf }
0x191e   : > { %10353 = vmax.xlane.f32.xlu1 %v10352_v1 }
0x1920   : > { %v10337_v15 = vpop.f32.mrb[92].mxu1 }
0x1921   : > { %v10344_v53 = vmul.f32 0.35355338, %v10337_v15  ;;  %v13714_v16 = vpop.f32.mrb[93].mxu1 }
0x1922   : > { %v12137_v16 = vld [vmem:[%s16608_s1] ss:$0 sm:$0xff]  ;;  %s16610_s1 = sld [smem:[#allocation34_spill]] }
0x1923   : > { %v10348_v38 = vadd.f32 %v10344_v53, %v15550_v59 }
0x1925   : > { %v10358_v17 = vsel %vm3699_vm2, %v10348_v38, -inf }
0x1926   : > { %10359 = vmax.xlane.f32.xlu1 %v10358_v17  ;;  %v12138_v17 = vld [vmem:[%s16609_s2] ss:$0 sm:$0xff]  ;;  %s16611_s2 = sld [smem:[#allocation37_spill]] }
0x1990   : > { %v10351_v18 = vpop.xlane.xlu0 %10350 }
0x1991   : > { %v10361_v23 = vsub.f32 %v10345_v2, %v10351_v18 }
0x1993   : > { %v10365_v24 = vmul.f32 1.442695, %v10361_v23 }
0x1995   : > { %14650 = vpow2.f32 %v10365_v24 }
0x1998   : > { %v10357_v25 = vpop.xlane.xlu0 %10356 }
0x1999   : > { %v10363_v26 = vsub.f32 %v10347_v9, %v10357_v25  ;;  %v9121_v9 = vld [vmem:[%s16607_s0 + $0x8] sm:$0xff]  ;;  %v9123_v25 = vld [vmem:[%s16607_s0 + $0x18] sm:$0xff] }
0x199b   : > { %v10369_v19 = vmul.f32 1.442695, %v10363_v26 }
0x199d   : > { %14652 = vpow2.f32 %v10369_v19 }
0x199f   : > { %v14651_v27 = vpop.eup %14650 }
0x19a0   : > { %v10373_v13 = vsel %vm3699_vm2, %v14651_v27, 0.0 }
0x19a1   : > { %10374 = vadd.xlane.f32.xlu0 %v10373_v13 }
0x19a7   : > { %v14653_v28 = vpop.eup %14652 }
0x19a8   : > { %v10379_v29 = vsel %vm3699_vm2, %v14653_v28, 0.0 }
0x19a9   : > { %10380 = vadd.xlane.f32.xlu0 %v10379_v29 }
0x19ab   : > { %v10354_v59 = vpop.xlane.xlu1 %10353 }
0x19ac   : > { %v10362_v31 = vsub.f32 %v10346_v14, %v10354_v59  ;;  %v9122_v14 = vld [vmem:[%s16607_s0 + $0x10] sm:$0xff]  ;;  %s16613_s0 = sld [smem:[#allocation36_spill]] }
0x19ae   : > { %v10367_v56 = vmul.f32 1.442695, %v10362_v31 }
0x19b0   : > { %14654 = vpow2.f32 %v10367_v56 }
0x19b3   : > { %v10360_v32 = vpop.xlane.xlu1 %10359 }
0x19b4   : > { %v10364_v35 = vsub.f32 %v10348_v38, %v10360_v32 }
0x19b6   : > { %v10371_v37 = vmul.f32 1.442695, %v10364_v35 }
0x19b8   : > { %14656 = vpow2.f32 %v10371_v37 }
0x19ba   : > { %v14655_v40 = vpop.eup %14654 }
0x19bb   : > { %v10376_v41 = vsel %vm3699_vm2, %v14655_v40, 0.0 }
0x19bc   : > { %10377 = vadd.xlane.f32.xlu1 %v10376_v41 }
0x19c2   : > { %v14657_v44 = vpop.eup %14656 }
0x19c3   : > { %v10382_v45 = vsel %vm3699_vm2, %v14657_v44, 0.0 }
0x19c4   : > { %10383 = vadd.xlane.f32.xlu1 %v10382_v45 }
0x19c8   : > { %9034 = vadd.xlane.f32.xlu1 %v9033_v48 }
0x1a2e   : > { %v10375_v46 = vpop.xlane.xlu0 %10374 }
0x1a2f   : > { %14658 = vrcp.f32 %v10375_v46 }
0x1a36   : > { %v10381_v49 = vpop.xlane.xlu0 %10380 }
0x1a37   : > { %14660 = vrcp.f32 %v10381_v49 }
0x1a39   : > { %v14659_v50 = vpop.eup %14658 }
0x1a3a   : > { %v10389_v51 = vmul.f32 %v14659_v50, %v14651_v27 }
0x1a3c   : > { %13718 = vmatmul.mubr.msk.f32.vlgmr.msra.gmra.mrb[106].mxu0 %vm3699_vm2, %v10389_v51 }
0x1a3d   : > { %13726 = vmatpush3.msra.mxu0 %v9964_v54  ;;  %13727 = vmatprep.mubr.msk.f32.mxu0 %vm14751_vm0, %v14752_v30 }
0x1a3e   : > { %13735 = vmatprep.subr.mxu0 %v14752_v30 }
0x1a41   : > { %v14661_v3 = vpop.eup %14660 }
0x1a42   : > { %v10391_v20 = vmul.f32 %v14661_v3, %v14653_v28 }
0x1a44   : > { %13728 = vmatmul.mubr.msk.f32.vlgmr.msra.gmra.mrb[108].mxu0 %vm3699_vm2, %v10391_v20 }
0x1a45   : > { %13737 = vmatprep.mubr.msk.f32.mxu0 %vm14751_vm0, %v14752_v30  ;;  %13736 = vmatpush3.msra.mxu0 %v9120_v34 }
0x1a46   : > { %13745 = vmatprep.subr.mxu0 %v14752_v30 }
0x1a49   : > { %v10378_v55 = vpop.xlane.xlu1 %10377 }
0x1a4a   : > { %14662 = vrcp.f32 %v10378_v55  ;;  %v1883_v55 = vsub.f32 1.0, %v16086_v21  ;;  %v11188_v21 = vld [vmem:[%s16611_s2 + $0x38] sm:$0xff] }
0x1a51   : > { %v10384_v58 = vpop.xlane.xlu1 %10383 }
0x1a52   : > { %14664 = vrcp.f32 %v10384_v58  ;;  %v14680_v58 = vld [vmem:[%s15541_s16] sm:$0x1]  ;;  %s16614_s16 = sld [smem:[#allocation4_spill]] }
0x1a53   : > { %v1882_v39 = vsub.f32 1.0, %v14680_v58  ;;  %v11349_v58 = vld [vmem:[%s16611_s2 + $0xb0] sm:$0xff] }
0x1a54   : > { %v14663_v60 = vpop.eup %14662 }
0x1a55   : > { %v10390_v61 = vmul.f32 %v14663_v60, %v14655_v40  ;;  %v9035_v62 = vpop.xlane.xlu1 %9034  ;;  %v11022_v60 = vsel %vm11021_vm3, %v1882_v39, 0.0 }
0x1a56   : > { %v9036_v0 = vmul.f32 0.03125, %v9035_v62  ;;  %v11186_v62 = vld [vmem:[%s16611_s2 + $0x28] sm:$0xff] }
0x1a57   : > { %13723 = vmatmul.mubr.msk.f32.vlgmr.msra.gmra.mrb[94].mxu1 %vm3699_vm2, %v10390_v61  ;;  %v11185_v61 = vld [vmem:[%s16611_s2 + $0x20] sm:$0xff] }
0x1a58   : > { %v9037_v2 = vsub.f32 %v9030_v47, %v9036_v0  ;;  %13731 = vmatpush3.msra.mxu1 %v10034_v63  ;;  %13732 = vmatprep.mubr.msk.f32.mxu1 %vm14751_vm0, %v14752_v30  ;;  %v11187_v63 = vld [vmem:[%s16611_s2 + $0x30] sm:$0xff]  ;;  %v14449_v0 = vpack.c.bf16 %v11186_v62, %v11185_v61 }
0x1a59   : > { %13740 = vmatprep.subr.mxu1 %v14752_v30 }
0x1a5a   : > { %v9038_v4 = vmul.f32 %v9037_v2, %v9037_v2 }
0x1a5c   : > { %v14665_v5 = vpop.eup %14664  ;;  %v9039_v6 = vsel %vm2807_vm1, %v9038_v4, 0.0 }
0x1a5d   : > { %v10392_v7 = vmul.f32 %v14665_v5, %v14657_v44  ;;  %9040 = vadd.xlane.f32.xlu1 %v9039_v6  ;;  %v12179_v44 = vld [vmem:[%s16610_s1] ss:$0 sm:$0xff]  ;;  %s16612_s1 = sld [smem:[#allocation35_spill]] }
0x1a5f   : > { %13733 = vmatmul.mubr.msk.f32.vlgmr.msra.gmra.mrb[96].mxu1 %vm3699_vm2, %v10392_v7 }
0x1a60   : > { %13742 = vmatprep.mubr.msk.f32.mxu1 %vm14751_vm0, %v14752_v30  ;;  %13741 = vmatpush3.msra.mxu1 %v9121_v9 }
0x1a61   : > { %13750 = vmatprep.subr.mxu1 %v14752_v30  ;;  %11023 = vadd.xlane.f32.xlu1 %v11022_v60  ;;  %v11351_v60 = vld [vmem:[%s16611_s2 + $0xc0] sm:$0xff] }
0x1a63   : > { %v12180_v34 = vld [vmem:[%s16612_s1] ss:$0 sm:$0xff] }
0x1aea   : > { %v9041_v33 = vpop.xlane.xlu1 %9040 }
0x1aeb   : > { %v9042_v10 = vmul.f32 0.03125, %v9041_v33  ;;  %v12181_v33 = vld [vmem:[%s16613_s0] ss:$0 sm:$0xff]  ;;  %s11906_s0 = sshll.u32 %s16626_s10, 1 }
0x1aec   : > { %s1858_s1 = scalar_lea.vmem %s16614_s16, %s11906_s0  ;;  %s16615_s16 = sld [smem:[#allocation38_spill]] }
0x1aed   : > { %v9043_v11 = vadd.f32 1e-05, %v9042_v10  ;;  %v11181_v10 = vld [vmem:[%s16611_s2] sm:$0xff]  ;;  %s16616_s0 = sld [smem:[#allocation39_spill]] }
0x1aef   : > { %14666 = vrsqrt.f32 %v9043_v11  ;;  %v11182_v11 = vld [vmem:[%s16611_s2 + $0x8] sm:$0xff] }
0x1af9   : > { %v14667_v12 = vpop.eup %14666 }
0x1afa   : > { %v9045_v15 = vmul.f32 %v14667_v12, %v9037_v2  ;;  %v14452_v2 = vpack.c.bf16 %v11188_v21, %v11187_v63 }
0x1afc   : > { %v9052_v38 = vmul.f32 %v12137_v16, %v9045_v15  ;;  %v11024_v15 = vpop.xlane.xlu1 %11023  ;;  %v11183_v16 = vld [vmem:[%s16611_s2 + $0x10] sm:$0xff] }
0x1afe   : > { %v9059_v23 = vadd.f32 %v12138_v17, %v9052_v38  ;;  %v11184_v38 = vld [vmem:[%s16611_s2 + $0x18] sm:$0xff] }
0x1b0f   : > { %v10462_v1 = vpop.f32.mrb[106].mxu0 }
0x1b10   : > { %v13719_v53 = vpop.f32.mrb[107].mxu0  ;;  %13738 = vmatmul.mubr.msk.f32.vlgmr.msra.gmra.mrb[110].mxu0 %vm3699_vm2, %v10462_v1  ;;  %v14455_v1 = vpack.c.bf16 %v11182_v11, %v11181_v10 }
0x1b11   : > { %13746 = vmatpush3.msra.mxu0 %v9122_v14  ;;  %13747 = vmatprep.mubr.msk.f32.mxu0 %vm14751_vm0, %v14752_v30  ;;  %v11025_v53 = vmax.f32 %v11024_v15, 1.0 }
0x1b12   : > { %13755 = vmatprep.subr.mxu0 %v14752_v30 }
0x1b17   : > { %v10608_v18 = vpop.f32.mrb[108].mxu0 }
0x1b18   : > { %v13729_v24 = vpop.f32.mrb[109].mxu0  ;;  %13748 = vmatmul.mubr.msk.f32.vlgmr.msra.gmra.mrb[112].mxu0 %vm3699_vm2, %v10608_v18  ;;  %v14458_v18 = vpack.c.bf16 %v11184_v38, %v11183_v16  ;;  %v11437_v16 = vld [vmem:[%s16616_s0] sm:$0x1]  ;;  %s16619_s0 = sld [smem:[#allocation41_spill]] }
0x1b19   : > { %13756 = vmatpush3.msra.mxu0 %v9059_v23  ;;  %13757 = vmatprep.mubr.msk.f32.mxu0 %vm14751_vm0, %v14752_v30 }
0x1b1a   : > { %14448 = vmatprep.subr.bf16.mxu0 %v14750_v22 }
0x1b1c   : > { %13758 = vmatmul.mubr.msk.f32.vlgmr.msra.gmra.mrb[114].mxu0 %vm3699_vm2, %v1882_v39  ;;  %v11350_v39 = vld [vmem:[%s16611_s2 + $0xb8] sm:$0xff] }
0x1b1d   : > { %13773 = vmatprep.mubr.msk.f32.mxu0 %vm14751_vm0, %v14752_v30  ;;  %14450 = vmatpush3.bf16.msra.mxu0 %v14449_v0 }
0x1b1e   : > { %14451 = vmatprep.subr.bf16.mxu0 %v14750_v22 }
0x1b21   : > { %14453 = vmatpush3.bf16.msra.mxu0 %v14452_v2 }
0x1b22   : > { %14460 = vmatprep.subr.bf16.mxu0 %v14750_v22 }
0x1b2a   : > { %v10535_v26 = vpop.f32.mrb[94].mxu1 }
0x1b2b   : > { %v13724_v19 = vpop.f32.mrb[95].mxu1  ;;  %13743 = vmatmul.mubr.msk.f32.vlgmr.msra.gmra.mrb[98].mxu1 %vm3699_vm2, %v10535_v26 }
0x1b2c   : > { %13751 = vmatpush3.msra.mxu1 %v9123_v25  ;;  %13752 = vmatprep.mubr.msk.f32.mxu1 %vm14751_vm0, %v14752_v30 }
0x1b2d   : > { %13760 = vmatprep.subr.mxu1 %v14752_v30 }
0x1b32   : > { %v10681_v27 = vpop.f32.mrb[96].mxu1 }
0x1b33   : > { %v13734_v13 = vpop.f32.mrb[97].mxu1  ;;  %13753 = vmatmul.mubr.msk.f32.vlgmr.msra.gmra.mrb[100].mxu1 %vm3699_vm2, %v10681_v27  ;;  %v11359_v27 = vsub.s32 1, %v15543_v52 }
0x1b34   : > { %13762 = vmatprep.mubr.msk.f32.mxu1 %vm14751_vm0, %v14752_v30  ;;  %v11335_v13 = vld [vmem:[%s16611_s2 + $0x40] sm:$0xff] }
0x1be3   : > { %v10754_v28 = vpop.f32.mrb[110].mxu0 }
0x1be4   : > { %v13739_v29 = vpop.f32.mrb[111].mxu0  ;;  %v10977_v32 = vsel %vm2807_vm1, %v10754_v28, 0.0  ;;  %v11336_v28 = vld [vmem:[%s16611_s2 + $0x48] sm:$0xff] }
0x1be5   : > { %v11180_v29 = vld [vmem:[%s1858_s1] sm:$0x3]  ;;  %s16617_s1 = sld [smem:[#allocation40_spill]] }
0x1be6   : > { %v11356_v61 = vrot.slane %v11180_v29, %v15547_v57 }
0x1beb   : > { %v10900_v59 = vpop.f32.mrb[112].mxu0 }
0x1bec   : > { %v13749_v31 = vpop.f32.mrb[113].mxu0  ;;  %v10980_v41 = vsel %vm2807_vm1, %v10900_v59, 0.0 }
0x1bef   : > { %v11099_v23 = vpop.f32.mrb[114].mxu0 }
0x1bf0   : > { %v13759_v25 = vpop.f32.mrb[115].mxu0 }
0x1bfe   : > { %v10827_v56 = vpop.f32.mrb[98].mxu1 }
0x1bff   : > { %v10978_v35 = vsel %vm2807_vm1, %v10827_v56, 0.0  ;;  %v13744_v37 = vpop.f32.mrb[99].mxu1  ;;  %v14461_v56 = vpack.c.bf16 %v11336_v28, %v11335_v13 }
0x1c00   : > { %v10979_v40 = vadd.f32 %v10978_v35, %v10977_v32  ;;  %v11360_v32 = vrot.slane %v11180_v29, %v11359_v27 }
0x1c02   : > { %v10981_v42 = vadd.f32 %v10980_v41, %v10979_v40  ;;  %v11337_v40 = vld [vmem:[%s16611_s2 + $0x50] sm:$0xff]  ;;  %v11338_v41 = vld [vmem:[%s16611_s2 + $0x58] sm:$0xff] }
0x1c03   : > { %v14464_v52 = vpack.c.bf16 %v11338_v41, %v11337_v40 }
0x1c06   : > { %v10973_v43 = vpop.f32.mrb[100].mxu1 }
0x1c07   : > { %v10982_v45 = vsel %vm2807_vm1, %v10973_v43, 0.0  ;;  %v13754_v47 = vpop.f32.mrb[101].mxu1  ;;  %v11340_v43 = vld [vmem:[%s16611_s2 + $0x68] sm:$0xff] }
0x1c08   : > { %v10983_v48 = vadd.f32 %v10982_v45, %v10981_v42  ;;  %v11339_v42 = vld [vmem:[%s16611_s2 + $0x60] sm:$0xff]  ;;  %v11341_v45 = vld [vmem:[%s16611_s2 + $0x70] sm:$0xff]  ;;  %v11342_v47 = vld [vmem:[%s16611_s2 + $0x78] sm:$0xff] }
0x1c0a   : > { %v10990_v46 = vadd.f32 %v12179_v44, %v10983_v48  ;;  %v14467_v44 = vpack.c.bf16 %v11340_v43, %v11339_v42  ;;  %v14470_v48 = vpack.c.bf16 %v11342_v47, %v11341_v45 }
0x1c0c   : > { %v10991_v49 = vadd.f32 %v10990_v46, %v15919_v8  ;;  %v11026_v8 = vsel %vm11021_vm3, %v1883_v55, 0.0  ;;  %v11343_v46 = vld [vmem:[%s16611_s2 + $0x80] sm:$0xff] }
0x1c0e   : > { %v10994_v36 = vsel %vm2807_vm1, %v10991_v49, 0.0 }
0x1c0f   : > { %10995 = vadd.xlane.f32.xlu0 %v10994_v36 }
0x1c9c   : > { %v10996_v50 = vpop.xlane.xlu0 %10995 }
0x1c9d   : > { %v10997_v51 = vmul.f32 0.03125, %v10996_v50  ;;  %v11345_v50 = vld [vmem:[%s16611_s2 + $0x90] sm:$0xff] }
0x1c9f   : > { %v10998_v54 = vsub.f32 %v10991_v49, %v10997_v51  ;;  %v11344_v49 = vld [vmem:[%s16611_s2 + $0x88] sm:$0xff]  ;;  %v11346_v51 = vld [vmem:[%s16611_s2 + $0x98] sm:$0xff] }
0x1ca0   : > { %v14473_v36 = vpack.c.bf16 %v11344_v49, %v11343_v46  ;;  %v11457_v46 = vld [vmem:[%s16619_s0] sm:$0x1]  ;;  %s16624_s0 = sld [smem:[#allocation46_spill]] }
0x1ca1   : > { %v10999_v3 = vmul.f32 %v10998_v54, %v10998_v54 }
0x1ca3   : > { %v11000_v20 = vsel %vm2807_vm1, %v10999_v3, 0.0  ;;  %v11347_v3 = vld [vmem:[%s16611_s2 + $0xa0] sm:$0xff] }
0x1ca4   : > { %11001 = vadd.xlane.f32.xlu0 %v11000_v20  ;;  %v11348_v20 = vld [vmem:[%s16611_s2 + $0xa8] sm:$0xff]  ;;  %s16621_s2 = sld [smem:[#allocation44_spill]] }
0x1ca8   : > { %11027 = vadd.xlane.f32.xlu0 %v11026_v8  ;;  %v14482_v8 = vpack.c.bf16 %v11350_v39, %v11349_v58 }
0x1d31   : > { %v11002_v4 = vpop.xlane.xlu0 %11001 }
0x1d32   : > { %v11003_v5 = vmul.f32 0.03125, %v11002_v4 }
0x1d34   : > { %v11004_v6 = vadd.f32 1e-05, %v11003_v5  ;;  %v11435_v5 = vld [vmem:[%s16615_s16] sm:$0x1]  ;;  %s16618_s16 = sld [smem:[#allocation43_spill]] }
0x1d35   : > { %v11028_v26 = vpop.xlane.xlu0 %11027 }
0x1d36   : > { %14668 = vrsqrt.f32 %v11004_v6  ;;  %v11029_v19 = vmax.f32 %v11028_v26, 1.0 }
0x1d37   : > { %14670 = vrcp.f32 %v11025_v53 }
0x1d38   : > { %14672 = vrcp.f32 %v11029_v19 }
0x1d3a   : > { %v11475_v29 = vld [vmem:[%s16618_s16] sm:$0xff]  ;;  %v11480_v40 = vld [vmem:[%s16618_s16 + $0x28] sm:$0xff]  ;;  %v11482_v42 = vld [vmem:[%s16618_s16 + $0x38] sm:$0xff] }
0x1d40   : > { %v14669_v7 = vpop.eup %14668 }
0x1d41   : > { %v11006_v9 = vmul.f32 %v14669_v7, %v10998_v54  ;;  %v14671_v17 = vpop.eup %14670  ;;  %v14476_v54 = vpack.c.bf16 %v11346_v51, %v11345_v50 }
0x1d42   : > { %v11104_v24 = vmul.f32 %v14671_v17, %v11099_v23  ;;  %v14673_v59 = vpop.eup %14672  ;;  %v11438_v17 = vld [vmem:[%s16617_s1] sm:$0x1]  ;;  %s16620_s1 = sld [smem:[#allocation42_spill]] }
0x1d43   : > { %v11013_v12 = vmul.f32 %v12180_v34, %v11006_v9 }
0x1d45   : > { %v11020_v14 = vadd.f32 %v12181_v33, %v11013_v12 }
0x1d47   : > { %13761 = vmatpush3.msra.mxu1 %v11020_v14 }
0x1d48   : > { %13763 = vmatmul.mubr.msk.f32.vlgmr.msra.gmra.mrb[102].mxu1 %vm3699_vm2, %v1883_v55  ;;  %14454 = vmatprep.subr.bf16.mxu1 %v14750_v22  ;;  %v14479_v55 = vpack.c.bf16 %v11348_v20, %v11347_v3  ;;  %v11483_v3 = vld [vmem:[%s16621_s2] sm:$0x1]  ;;  %s16623_s2 = sld [smem:[#allocation45_spill]] }
0x1d49   : > { %14456 = vmatpush3.bf16.msra.mxu1 %v14455_v1  ;;  %13784 = vmatprep.mubr.msk.f32.mxu1 %vm14751_vm0, %v14752_v30 }
0x1d4a   : > { %14457 = vmatprep.subr.bf16.mxu1 %v14750_v22 }
0x1d4d   : > { %14459 = vmatpush3.bf16.msra.mxu1 %v14458_v18 }
0x1d4e   : > { %14484 = vmatprep.subr.bf16.mxu1 %v14750_v22 }
0x1d50   : > { %13785 = vmatmul.mubr.msk.f32.vlgmr.msra.gmra.mrb[104].mxu1 %vm2807_vm1, %v11104_v24 }
0x1d51   : > { %13803 = vmatprep.mubr.msk.f32.mxu1 %vm14751_vm0, %v14752_v30 }
0x1e1b   : > { %v11174_v31 = vpop.f32.mrb[102].mxu1 }
0x1e1c   : > { %v11179_v35 = vmul.f32 %v14673_v59, %v11174_v31  ;;  %v13764_v37 = vpop.f32.mrb[103].mxu1  ;;  %v11476_v59 = vld [vmem:[%s16618_s16 + $0x8] sm:$0xff] }
0x1e1d   : > { %v14485_v31 = vpack.c.bf16 %v11476_v59, %v11475_v29  ;;  %v11479_v37 = vld [vmem:[%s16618_s16 + $0x20] sm:$0xff]  ;;  %v11664_v29 = vld [vmem:[%s15057_s17 + $0x28] sm:$0xff] }
0x1e1e   : > { %13774 = vmatmul.mubr.msk.f32.vlgmr.msra.gmra.mrb[116].mxu0 %vm2807_vm1, %v11179_v35  ;;  %v14491_v41 = vpack.c.bf16 %v11480_v40, %v11479_v37 }
0x1e1f   : > { %14462 = vmatpush1.bf16.msra.mxu0 %v14461_v56  ;;  %12186 = vmatprep.mubr.msk.f32.mxu0 %vm3699_vm2, %v11360_v32  ;;  %v11477_v56 = vld [vmem:[%s16618_s16 + $0x10] sm:$0xff]  ;;  %v11478_v32 = vld [vmem:[%s16618_s16 + $0x18] sm:$0xff] }
0x1e20   : > { %14463 = vmatprep.subr.bf16.mxu0 %v14750_v22  ;;  %14486 = vmatpush3.bf16.msra.mxu1 %v14485_v31  ;;  %v14488_v35 = vpack.c.bf16 %v11478_v32, %v11477_v56  ;;  %v11665_v31 = vld [vmem:[%s15057_s17 + $0x30] sm:$0xff]  ;;  %v11666_v56 = vld [vmem:[%s15057_s17 + $0x38] sm:$0xff] }
0x1e21   : > { %14487 = vmatprep.subr.bf16.mxu1 %v14750_v22  ;;  %v14518_v32 = vpack.c.bf16 %v11666_v56, %v11665_v31 }
0x1e23   : > { %14465 = vmatpush1.bf16.msra.mxu0 %v14464_v52  ;;  %v11331_v62 = vpop.f32.mrb[104].mxu1  ;;  %v11481_v52 = vld [vmem:[%s16618_s16 + $0x30] sm:$0xff] }
0x1e24   : > { %14466 = vmatprep.subr.bf16.mxu0 %v14750_v22  ;;  %v13786_v63 = vpop.f32.mrb[105].mxu1  ;;  %14489 = vmatpush3.bf16.msra.mxu1 %v14488_v35  ;;  %v14494_v43 = vpack.c.bf16 %v11482_v42, %v11481_v52  ;;  %v11584_v35 = vld [vmem:[%s15052_s21] sm:$0x1]  ;;  %v14753_v52 = vmov 0  }
0x1e25   : > { %14490 = vmatprep.subr.bf16.mxu1 %v14750_v22  ;;  %14593 = vset.pattern.permute.xlu0 %v14753_v52  ;;  %v11667_v42 = vld [vmem:[#allocation2] sm:$0x1] }
0x1e27   : > { %14468 = vmatpush1.bf16.msra.mxu0 %v14467_v44 }
0x1e28   : > { %14469 = vmatprep.subr.bf16.mxu0 %v14750_v22  ;;  %14492 = vmatpush3.bf16.msra.mxu1 %v14491_v41 }
0x1e29   : > { %14493 = vmatprep.subr.bf16.mxu1 %v14750_v22 }
0x1e2b   : > { %14471 = vmatpush1.bf16.msra.mxu0 %v14470_v48 }
0x1e2c   : > { %14472 = vmatprep.subr.bf16.mxu0 %v14750_v22  ;;  %14495 = vmatpush3.bf16.msra.mxu1 %v14494_v43 }
0x1e2d   : > { %14496 = vmatprep.subr.bf16.mxu1 %v14750_v22 }
0x1e2f   : > { %14474 = vmatpush1.bf16.msra.mxu0 %v14473_v36  ;;  %v11458_v36 = vld [vmem:[%s16620_s1] sm:$0x1]  ;;  %s1861_s1 = scalar_lea.vmem %s15065_s4, %s16626_s10 }
0x1e30   : > { %14475 = vmatprep.subr.bf16.mxu0 %v14750_v22 }
0x1e33   : > { %14477 = vmatpush1.bf16.msra.mxu0 %v14476_v54 }
0x1e34   : > { %14478 = vmatprep.subr.bf16.mxu0 %v14750_v22 }
0x1e37   : > { %14480 = vmatpush1.bf16.msra.mxu0 %v14479_v55 }
0x1e38   : > { %14481 = vmatprep.subr.bf16.mxu0 %v14750_v22 }
0x1e3b   : > { %14483 = vmatpush1.bf16.msra.mxu0 %v14482_v8 }
0x1e3c   : > { %11396 = vmatprep.subr.mxu0 %v14752_v30 }
0x1e3f   : > { %11397 = vmatpush1.msra.mxu0 %v11351_v60 }
0x1e40   : > { %11429 = vmatmul.mubr.f32.vlgmr.msra.gmra.mrb[118].mxu0 %v11356_v61 }
0x1ef1   : > { %v11258_v0 = vpop.f32.mrb[116].mxu0 }
0x1ef2   : > { %v13775_v21 = vpop.f32.mrb[117].mxu0  ;;  %v11332_v2 = vadd.f32 %v11331_v62, %v11258_v0  ;;  %v11576_v0 = vld [vmem:[%s16622_s3] sm:$0xff] }
0x1ef3   : > { %v11577_v21 = vld [vmem:[%s16622_s3 + $0x8] sm:$0xff] }
0x1f13   : > { %v11430_v4 = vpop.f32.mrb[118].mxu0 }
0x1f14   : > { %v11434_v6 = vadd.f32 %v11430_v4, %v11332_v2  ;;  %v11432_v7 = vpop.f32.mrb[119].mxu0  ;;  %v14497_v2 = vpack.c.bf16 %v11577_v21, %v11576_v0  ;;  %v11578_v4 = vld [vmem:[%s16622_s3 + $0x10] sm:$0xff] }
0x1f15   : > { %v11580_v7 = vld [vmem:[%s16622_s3 + $0x20] sm:$0xff] }
0x1f16   : > { %v11436_v34 = vadd.f32 %v11435_v5, %v11434_v6  ;;  %v11579_v5 = vld [vmem:[%s16622_s3 + $0x18] sm:$0xff] }
0x1f17   : > { %v14500_v6 = vpack.c.bf16 %v11579_v5, %v11578_v4 }
0x1f18   : > { %v11440_v9 = vsel %vm11439_vm4, %v11436_v34, 0.0 }
0x1f19   : > { %11441 = vadd.xlane.f32.xlu0 %v11440_v9 }
0x1fa6   : > { %v11442_v33 = vpop.xlane.xlu0 %11441 }
0x1fa7   : > { %v11444_v57 = vmul.f32 0.015625, %v11442_v33  ;;  %v11582_v33 = vld [vmem:[%s16622_s3 + $0x30] sm:$0xff] }
0x1fa9   : > { %v11445_v10 = vsub.f32 %v11436_v34, %v11444_v57  ;;  %v11581_v34 = vld [vmem:[%s16622_s3 + $0x28] sm:$0xff]  ;;  %v11583_v57 = vld [vmem:[%s16622_s3 + $0x38] sm:$0xff] }
0x1faa   : > { %v14503_v9 = vpack.c.bf16 %v11581_v34, %v11580_v7 }
0x1fab   : > { %v11446_v11 = vmul.f32 %v11445_v10, %v11445_v10 }
0x1fad   : > { %v11447_v12 = vsel %vm11439_vm4, %v11446_v11, 0.0 }
0x1fae   : > { %11448 = vadd.xlane.f32.xlu1 %v11447_v12 }
0x203b   : > { %v11449_v14 = vpop.xlane.xlu1 %11448 }
0x203c   : > { %v11450_v1 = vmul.f32 0.015625, %v11449_v14 }
0x203e   : > { %v11451_v15 = vadd.f32 1e-05, %v11450_v1 }
0x2040   : > { %14674 = vrsqrt.f32 %v11451_v15  ;;  %v11558_v15 = vld [vmem:[%s16623_s2] sm:$0x1] }
0x204a   : > { %v14675_v53 = vpop.eup %14674 }
0x204b   : > { %v11453_v38 = vmul.f32 %v14675_v53, %v11445_v10  ;;  %v14506_v10 = vpack.c.bf16 %v11583_v57, %v11582_v33 }
0x204d   : > { %v11454_v18 = vmul.f32 %v11453_v38, %v11437_v16  ;;  %v11559_v16 = vld [vmem:[%s16624_s0] sm:$0x1] }
0x204f   : > { %v11455_v23 = vadd.f32 %v11454_v18, %v11438_v17  ;;  %v11659_v17 = vld [vmem:[%s15057_s17] sm:$0xff]  ;;  %v11660_v18 = vld [vmem:[%s15057_s17 + $0x8] sm:$0xff] }
0x2051   : > { %v16426_v24 = vmax.f32 %v11455_v23, 0.0 }
0x2053   : > { %v11459_v25 = vsel %vm11439_vm4, %v16426_v24, 0.0 }
0x2054   : > { %11460 = vadd.xlane.f32.xlu0 %v11459_v25  ;;  %v14509_v25 = vpack.c.bf16 %v11660_v18, %v11659_v17 }
0x20e1   : > { %v11461_v26 = vpop.xlane.xlu0 %11460 }
0x20e2   : > { %v11462_v19 = vmul.f32 0.015625, %v11461_v26 }
0x20e4   : > { %v11463_v27 = vsub.f32 %v16426_v24, %v11462_v19  ;;  %v11661_v19 = vld [vmem:[%s15057_s17 + $0x10] sm:$0xff] }
0x20e6   : > { %v11464_v13 = vmul.f32 %v11463_v27, %v11463_v27 }
0x20e8   : > { %v11465_v28 = vsel %vm11439_vm4, %v11464_v13, 0.0 }
0x20e9   : > { %11466 = vadd.xlane.f32.xlu1 %v11465_v28  ;;  %v11663_v28 = vld [vmem:[%s15057_s17 + $0x20] sm:$0xff] }
0x20ea   : > { %v14515_v59 = vpack.c.bf16 %v11664_v29, %v11663_v28 }
0x2176   : > { %v11467_v44 = vpop.xlane.xlu1 %11466 }
0x2177   : > { %v11468_v45 = vmul.f32 0.015625, %v11467_v44 }
0x2179   : > { %v11469_v47 = vadd.f32 1e-05, %v11468_v45 }
0x217b   : > { %14676 = vrsqrt.f32 %v11469_v47 }
0x2185   : > { %v14677_v48 = vpop.eup %14676 }
0x2186   : > { %v11471_v49 = vmul.f32 %v14677_v48, %v11463_v27  ;;  %v11662_v27 = vld [vmem:[%s15057_s17 + $0x18] sm:$0xff] }
0x2187   : > { %v14512_v13 = vpack.c.bf16 %v11662_v27, %v11661_v19 }
0x2188   : > { %v11472_v50 = vmul.f32 %v11471_v49, %v11457_v46 }
0x218a   : > { %v11473_v51 = vadd.f32 %v11472_v50, %v11458_v36 }
0x218c   : > { %v11474_v54 = vmax.f32 %v11473_v51, 0.0 }
0x218e   : > { %13804 = vmatmul.mubr.msk.f32.vlgmr.msra.gmra.mrb[106].mxu1 %vm11484_vm5, %v11474_v54 }
0x218f   : > { %13822 = vmatprep.mubr.msk.f32.mxu1 %vm14751_vm0, %v14752_v30  ;;  %14498 = vmatpush3.bf16.msra.mxu1 %v14497_v2 }
0x2190   : > { %14499 = vmatprep.subr.bf16.mxu1 %v14750_v22 }
0x2193   : > { %14501 = vmatpush3.bf16.msra.mxu1 %v14500_v6 }
0x2194   : > { %14502 = vmatprep.subr.bf16.mxu1 %v14750_v22 }
0x2197   : > { %14504 = vmatpush3.bf16.msra.mxu1 %v14503_v9 }
0x2198   : > { %14505 = vmatprep.subr.bf16.mxu1 %v14750_v22 }
0x219b   : > { %14507 = vmatpush3.bf16.msra.mxu1 %v14506_v10 }
0x219c   : > { %14508 = vmatprep.subr.bf16.mxu1 %v14750_v22 }
0x2261   : > { %v11554_v20 = vpop.f32.mrb[106].mxu1 }
0x2262   : > { %v11555_v55 = vadd.f32 %v11554_v20, %v11483_v3  ;;  %v13805_v58 = vpop.f32.mrb[107].mxu1 }
0x2264   : > { %v11560_v39 = vsel %vm11439_vm4, %v11555_v55, 0.0 }
0x2265   : > { %11561 = vadd.xlane.f32.xlu0 %v11560_v39 }
0x22f2   : > { %v11562_v8 = vpop.xlane.xlu0 %11561 }
0x22f3   : > { %v11563_v60 = vmul.f32 0.015625, %v11562_v8 }
0x22f5   : > { %v11564_v61 = vsub.f32 %v11555_v55, %v11563_v60 }
0x22f7   : > { %v11565_v62 = vmul.f32 %v11564_v61, %v11564_v61 }
0x22f9   : > { %v11566_v63 = vsel %vm11439_vm4, %v11565_v62, 0.0 }
0x22fa   : > { %11567 = vadd.xlane.f32.xlu1 %v11566_v63 }
0x2387   : > { %v11568_v11 = vpop.xlane.xlu1 %11567 }
0x2388   : > { %v11569_v12 = vmul.f32 0.015625, %v11568_v11 }
0x238a   : > { %v11570_v14 = vadd.f32 1e-05, %v11569_v12 }
0x238c   : > { %14678 = vrsqrt.f32 %v11570_v14 }
0x2396   : > { %v14679_v1 = vpop.eup %14678 }
0x2397   : > { %v11572_v53 = vmul.f32 %v14679_v1, %v11564_v61 }
0x2399   : > { %v11573_v38 = vmul.f32 %v11572_v53, %v11558_v15 }
0x239b   : > { %v11574_v23 = vadd.f32 %v11573_v38, %v11559_v16 }
0x239d   : > { %v11575_v26 = vmax.f32 %v11574_v23, 0.0 }
0x239f   : > { %13823 = vmatmul.mubr.msk.f32.vlgmr.msra.gmra.mrb[108].mxu1 %vm11484_vm5, %v11575_v26 }
0x23a0   : > { %14510 = vmatpush3.bf16.msra.mxu1 %v14509_v25  ;;  %13841 = vmatprep.mubr.msk.f32.mxu1 %vm14751_vm0, %v14752_v30 }
0x23a1   : > { %14511 = vmatprep.subr.bf16.mxu1 %v14750_v22 }
0x23a4   : > { %14513 = vmatpush3.bf16.msra.mxu1 %v14512_v13 }
0x23a5   : > { %14514 = vmatprep.subr.bf16.mxu1 %v14750_v22 }
0x23a8   : > { %14516 = vmatpush3.bf16.msra.mxu1 %v14515_v59 }
0x23a9   : > { %14517 = vmatprep.subr.bf16.mxu1 %v14750_v22 }
0x23ac   : > { %14519 = vmatpush3.bf16.msra.mxu1 %v14518_v32 }
0x2472   : > { %v11654_v37 = vpop.f32.mrb[108].mxu1 }
0x2473   : > { %v11655_v30 = vadd.f32 %v11654_v37, %v11584_v35  ;;  %v13824_v40 = vpop.f32.mrb[109].mxu1 }
0x2475   : > { %v11658_v41 = vadd.f32 %v11655_v30, %v16426_v24 }
0x2477   : > { %13842 = vmatmul.mubr.msk.f32.vlgmr.msra.gmra.mrb[110].mxu1 %vm11484_vm5, %v11658_v41 }
0x254a   : > { %v11737_v43 = vpop.f32.mrb[110].mxu1 }
0x254b   : > { %v11738_v44 = vadd.f32 %v11737_v43, %v11667_v42  ;;  %v13843_v22 = vpop.f32.mrb[111].mxu1 }
0x254d   : > { %11743 = vperm.xlu0 %14593, %v11738_v44  }
0x25cc   : > { %v11744_v45 = vpop.permute.xlu0 %11743 }
0x25cd   : > { %11746 = vst [vmem:[%s1861_s1] sm:$0x1] %v11744_v45 }
0x25ce PF: > { %s135_s7 = sadd.s32 1, %s14687_s7  }
0x25cf   : > { %p132_p4 = scmp.ge.s32.totalorder %s135_s7, 4  }
0x25d1   :  { %134 = sbr.rel (!%p132_p4) target bundleno = 133 (0x85), region = 383 }

</bundles_post_ra>
